<compile_context>
chip_gen: v6e
topology: v6e:2x2x1
jax: 0.10.0
libtpu: 0.0.40
codegen_flags: <defaults>
</compile_context>

<pallas_src>
import jax
import jax.numpy as jnp
from jax.experimental import pallas as pl
from jax.experimental.pallas import tpu as pltpu


# ----------------------------------------------------------------------------
# Fused kernel: one grid step == one (round, level).  hf / hs are resident
# outputs; hs_proj is a VMEM scratch computed once at step 0.
# ----------------------------------------------------------------------------
def _fused_kernel(onehot_ref, wf_ref, bf_ref, ws_ref, ab_ref, wt_ref,
                  wih_ref, bih_ref, whh_ref, bhhn_ref, adj_ref, mask_ref,
                  hs_ref, hf_ref, hsproj_ref):
    step = pl.program_id(0)
    hidden = hf_ref.shape[-1]

    @pl.when(step == 0)
    def _():
        # Prologue folded in: hf = 0, hs = one_hot @ W_fused + b, hs_proj[g] = hs @ W_s[g] + b_g
        hf_ref[...] = jnp.zeros_like(hf_ref)
        hs = (jnp.dot(onehot_ref[...], wf_ref[...],
                      preferred_element_type=jnp.float32) + bf_ref[...])
        hs_ref[...] = hs
        hs_bf = hs.astype(jnp.bfloat16)
        for g in range(3):  # static unroll: AND, NOT, XOR
            hsproj_ref[g] = (jnp.dot(hs_bf, ws_ref[g],
                                     preferred_element_type=jnp.float32) + ab_ref[g])

    # Start-of-level state snapshot (matches reference node_state semantics).
    h = hf_ref[...]                       # (N, H) f32, VMEM resident
    h_bf = h.astype(jnp.bfloat16)
    adj = adj_ref[0]                      # (N, N) bf16, shared across gate types this level
    masks = mask_ref[...]                 # (1, 3, N, 1) f32 disjoint per-gate node masks

    for g in range(3):  # static unroll over gate types; all weights are VMEM-resident
        # Aggregation: msg = A_level @ (hs @ W_s[g] + b + hf @ W_t[g]); hs part precomputed.
        pre = hsproj_ref[g] + jnp.dot(h_bf, wt_ref[g],
                                      preferred_element_type=jnp.float32)
        msg = jnp.dot(adj, pre.astype(jnp.bfloat16),
                      preferred_element_type=jnp.float32)

        # Fused one-step GRU cell, gates stacked [r | z | n] along the lane axis.
        # b_hh's r/z parts were folded into b_ih at init; b_hn stays inside the r* term.
        gi = jnp.dot(msg.astype(jnp.bfloat16), wih_ref[g],
                     preferred_element_type=jnp.float32) + bih_ref[g]
        gh = jnp.dot(h_bf, whh_ref[g], preferred_element_type=jnp.float32)

        rz = jax.nn.sigmoid(gi[:, : 2 * hidden] + gh[:, : 2 * hidden])
        r = rz[:, :hidden]
        z = rz[:, hidden:]
        n_gate = jnp.tanh(gi[:, 2 * hidden:] + r * (gh[:, 2 * hidden:] + bhhn_ref[g]))
        h_new = (1.0 - z) * n_gate + z * h

        m = masks[0, g]                   # (N, 1) 0/1 mask for (this level, gate g)
        h = h + m * (h_new - h)           # masked merge without compare/select

    hf_ref[...] = h


def _vmem_budget_bytes(n, h):
    """Explicit scoped-VMEM budget: resident weights + double-buffered adj + state."""
    lane, f32, bf16 = 128, 4, 2
    b = 0
    b += 2 * n * n * bf16                      # adjacency block, double-buffered
    b += 2 * 3 * n * lane * f32                # (3, N, 1) masks, lane-padded, double-buffered
    b += 2 * n * lane * f32                    # one_hot (last dim 6 -> lane padded)
    b += 2 * 2 * 8 * lane * f32                # fused (6,H) linear + bias, sublane-padded
    b += 2 * 2 * 3 * h * h * bf16              # ws, wt
    b += 2 * 2 * 3 * h * 3 * h * bf16          # w_ih, w_hh
    b += 2 * 3 * 8 * (3 * h + 2 * h) * f32     # biases (sublane-padded, generous)
    b += 2 * 2 * n * h * f32                   # hs, hf resident outputs
    b += 3 * n * h * f32                       # hs_proj scratch
    b += 12 * n * h * f32                      # in-kernel temporaries (pre/msg/gi/gh/...)
    b += 4 << 20                               # headroom
    return int(min(b, 120 << 20))


def fused_forward(one_hot, adj_all, mask_all, params, num_rounds):
    n = one_hot.shape[0]
    num_levels_m1 = adj_all.shape[0]
    h = params["w_fused"].shape[1]
    total_steps = int(num_rounds) * int(num_levels_m1)

    c2 = lambda s: (0, 0)
    c3 = lambda s: (0, 0, 0)
    lvl3 = lambda s: (s % num_levels_m1, 0, 0)
    lvl4 = lambda s: (s % num_levels_m1, 0, 0, 0)

    return pl.pallas_call(
        _fused_kernel,
        out_shape=(
            jax.ShapeDtypeStruct((n, h), jnp.float32),   # hs
            jax.ShapeDtypeStruct((n, h), jnp.float32),   # hf
        ),
        grid=(total_steps,),
        in_specs=[
            pl.BlockSpec((n, 6), c2),                    # one_hot           (resident)
            pl.BlockSpec((6, h), c2),                    # W_fused           (resident)
            pl.BlockSpec((1, h), c2),                    # b_fused           (resident)
            pl.BlockSpec((3, h, h), c3),                 # W_s  per gate     (resident)
            pl.BlockSpec((3, 1, h), c3),                 # aggr bias         (resident)
            pl.BlockSpec((3, h, h), c3),                 # W_t  per gate     (resident)
            pl.BlockSpec((3, h, 3 * h), c3),             # W_ih [r|z|n]      (resident)
            pl.BlockSpec((3, 1, 3 * h), c3),             # b_ih (+b_hh[r|z]) (resident)
            pl.BlockSpec((3, h, 3 * h), c3),             # W_hh              (resident)
            pl.BlockSpec((3, 1, h), c3),                 # b_hh n-part       (resident)
            pl.BlockSpec((1, n, n), lvl3),               # per-level adjacency (streamed)
            pl.BlockSpec((1, 3, n, 1), lvl4),            # per-level gate masks (streamed)
        ],
        out_specs=(
            pl.BlockSpec((n, h), c2),                    # hs (written once at step 0)
            pl.BlockSpec((n, h), c2),                    # hf (resident accumulator)
        ),
        scratch_shapes=[pltpu.VMEM((3, n, h), jnp.float32)],   # hs_proj
        compiler_params=pltpu.CompilerParams(
            dimension_semantics=("arbitrary",),
            vmem_limit_bytes=_vmem_budget_bytes(n, h),
        ),
    )(one_hot, params["w_fused"], params["b_fused"], params["ws"],
      params["aggr_b"], params["wt"], params["w_ih"], params["b_ih"],
      params["w_hh"], params["b_hh_n"], adj_all, mask_all)


# ----------------------------------------------------------------------------
# Parameter init (random, deterministic) + forward-pass orchestration
# ----------------------------------------------------------------------------
def init_params(key, dim_hidden):
    h = dim_hidden

    def dense(k, shape, scale=0.1):
        return scale * jax.random.normal(k, shape, dtype=jnp.float32)

    keys = iter(jax.random.split(key, 40))
    enc_ws = dense(next(keys), (6, h)); enc_bs = dense(next(keys), (1, h))
    enc_wt = dense(next(keys), (6, h)); enc_bt = dense(next(keys), (1, h))
    hs_w = dense(next(keys), (2 * h, h)); hs_b = dense(next(keys), (1, h))

    # Fold struct-encoder (s, t) + hs_linear(concat(s,t)) into one (6, H) linear.
    w_fused = enc_ws @ hs_w[:h] + enc_wt @ hs_w[h:]
    b_fused = enc_bs @ hs_w[:h] + enc_bt @ hs_w[h:] + hs_b

    ws, wt, ab = [], [], []
    wih, bih, whh, bhhn = [], [], [], []
    for _ in range(3):  # gate types in order (AND, NOT, XOR) — must match gate_codes below
        aggr_w = dense(next(keys), (2 * h, h))
        ws.append(aggr_w[:h])            # acts on hs
        wt.append(aggr_w[h:])            # acts on hf
        ab.append(dense(next(keys), (1, h)))
        w_ih = dense(next(keys), (h, 3 * h))      # GRU gates [r|z|n] lane-dense
        b_ih = dense(next(keys), (1, 3 * h))
        w_hh = dense(next(keys), (h, 3 * h))
        b_hh = dense(next(keys), (1, 3 * h))
        wih.append(w_ih)
        # Fold b_hh's r/z parts into b_ih (one fewer (N,2H) add per step);
        # b_hn must stay separate (it sits inside the r* multiply of the GRU).
        bih.append(jnp.concatenate(
            [b_ih[:, :2 * h] + b_hh[:, :2 * h], b_ih[:, 2 * h:]], axis=-1))
        whh.append(w_hh)
        bhhn.append(b_hh[:, 2 * h:])

    return {
        "w_fused": w_fused,                               # (6, H)   f32
        "b_fused": b_fused,                               # (1, H)   f32
        "ws": jnp.stack(ws).astype(jnp.bfloat16),         # (3, H, H)
        "wt": jnp.stack(wt).astype(jnp.bfloat16),         # (3, H, H)
        "aggr_b": jnp.stack(ab),                          # (3, 1, H) f32
        "w_ih": jnp.stack(wih).astype(jnp.bfloat16),      # (3, H, 3H)
        "b_ih": jnp.stack(bih),                           # (3, 1, 3H) f32 (b_hh r/z folded)
        "w_hh": jnp.stack(whh).astype(jnp.bfloat16),      # (3, H, 3H)
        "b_hh_n": jnp.stack(bhhn),                        # (3, 1, H) f32
    }


def model_forward(params, gate, edge_index, forward_level, num_layers_f,
                  dim_hidden, num_rounds=1):
    n = gate.shape[0]
    h = dim_hidden

    # Pad node axis to a lane-dense multiple of 128; padded nodes are inert
    # (gate/level = -1 -> never selected; zero adjacency rows/cols).
    n_pad = max(128, ((n + 127) // 128) * 128)
    gate_p = jnp.full((n_pad,), -1, jnp.int32).at[:n].set(gate)
    lvl_p = jnp.full((n_pad,), -1, jnp.int32).at[:n].set(forward_level)
    one_hot = jax.nn.one_hot(gate_p, 6, dtype=jnp.float32)   # out-of-range -> all-zero row

    src, tgt = edge_index[0], edge_index[1]
    gate_codes = (3, 2, 5)   # AND, NOT, XOR — matches the stacking order in init_params

    # Structure-only precompute: ONE adjacency per level (edges into all level-l nodes)
    # shared by the three gate types, plus disjoint per-gate node masks.
    adjs, masks = [], []
    for level in range(1, num_layers_f):
        lvl_sel = (lvl_p == level)
        edge_sel = lvl_sel[tgt].astype(jnp.float32)     # keep edges targeting level-l nodes
        adjs.append(jnp.zeros((n_pad, n_pad), jnp.float32).at[tgt, src].add(edge_sel))
        masks.append(jnp.stack(
            [(lvl_sel & (gate_p == c)).astype(jnp.float32)[:, None] for c in gate_codes]))

    rounds = max(int(num_rounds), 0)
    if not adjs or rounds == 0:
        # Degenerate circuit / zero rounds: one dummy all-zero level so hs is still
        # computed in-kernel while hf stays zero (matches reference semantics).
        adjs = [jnp.zeros((n_pad, n_pad), jnp.float32)]
        masks = [jnp.zeros((3, n_pad, 1), jnp.float32)]
        rounds = 1

    adj_all = jnp.stack(adjs).astype(jnp.bfloat16)      # (L-1, Np, Np), small ints exact in bf16
    mask_all = jnp.stack(masks)                         # (L-1, 3, Np, 1) f32

    hs_pad, hf_pad = fused_forward(one_hot, adj_all, mask_all, params, rounds)
    return hs_pad[:n], hf_pad[:n]


# ----------------------------------------------------------------------------
# Example: a tiny XAG circuit (gate codes: PI=0, NOT=2, AND=3, XOR=5)
# ----------------------------------------------------------------------------
if __name__ == "__main__":
    key = jax.random.PRNGKey(0)
    DIM_HIDDEN = 128   # module default; keeps every output lane-dense
    N = 16

    # nodes 0-7: primary inputs (level 0)
    # nodes 8-11: AND (level 1); 12: NOT, 13: XOR, 15: NOT (level 2); 14: AND (level 3)
    gate = jnp.array([0] * 8 + [3, 3, 3, 3] + [2, 5, 3, 2], dtype=jnp.int32)
    forward_level = jnp.array([0] * 8 + [1, 1, 1, 1] + [2, 2, 3, 2], dtype=jnp.int32)
    edge_index = jnp.array(
        [[0, 1, 2, 3, 4, 5, 6, 7, 8, 9, 10, 11, 12, 13],
         [8, 8, 9, 9, 10, 10, 11, 11, 12, 13, 13, 15, 14, 14]],
        dtype=jnp.int32,
    )
    num_layers_f = int(jnp.max(forward_level)) + 1

    params = init_params(key, DIM_HIDDEN)
    hs, hf = model_forward(params, gate, edge_index, forward_level,
                           num_layers_f, DIM_HIDDEN, num_rounds=1)
    jax.block_until_ready((hs, hf))
    assert hs.shape == (N, DIM_HIDDEN) and hf.shape == (N, DIM_HIDDEN)
    assert bool(jnp.all(jnp.isfinite(hs))) and bool(jnp.all(jnp.isfinite(hf)))
    print("KERNEL_OK")
</pallas_src>

<mosaic_0001>
module attributes {stable_mosaic.version = 11 : i64} {
  func.func @_fused_kernel(%arg0: i32, %arg1: memref<128x6xf32, #tpu.memory_space<vmem>>, %arg2: memref<6x128xf32, #tpu.memory_space<vmem>>, %arg3: memref<1x128xf32, #tpu.memory_space<vmem>>, %arg4: memref<3x128x128xbf16, #tpu.memory_space<vmem>>, %arg5: memref<3x1x128xf32, #tpu.memory_space<vmem>>, %arg6: memref<3x128x128xbf16, #tpu.memory_space<vmem>>, %arg7: memref<3x128x384xbf16, #tpu.memory_space<vmem>>, %arg8: memref<3x1x384xf32, #tpu.memory_space<vmem>>, %arg9: memref<3x128x384xbf16, #tpu.memory_space<vmem>>, %arg10: memref<3x1x128xf32, #tpu.memory_space<vmem>>, %arg11: memref<1x128x128xbf16, #tpu.memory_space<vmem>>, %arg12: memref<1x3x128x1xf32, #tpu.memory_space<vmem>>, %arg13: memref<128x128xf32, #tpu.memory_space<vmem>>, %arg14: memref<128x128xf32, #tpu.memory_space<vmem>>, %arg15: memref<3x128x128xf32, #tpu.memory_space<vmem>>) attributes {dimension_semantics = [#tpu.dimension_semantics<arbitrary>], iteration_bounds = array<i64: 3>, scalar_prefetch = 0 : i64, scratch_operands = 1 : i64, tpu.core_type = #tpu.core_type<tc>, window_params = [{pipeline_mode = #tpu.pipeline_mode<synchronous>, transform_indices = @transform_0, window_bounds = array<i64: 128, 6>}, {pipeline_mode = #tpu.pipeline_mode<synchronous>, transform_indices = @transform_1, window_bounds = array<i64: 6, 128>}, {pipeline_mode = #tpu.pipeline_mode<synchronous>, transform_indices = @transform_2, window_bounds = array<i64: 1, 128>}, {pipeline_mode = #tpu.pipeline_mode<synchronous>, transform_indices = @transform_3, window_bounds = array<i64: 3, 128, 128>}, {pipeline_mode = #tpu.pipeline_mode<synchronous>, transform_indices = @transform_4, window_bounds = array<i64: 3, 1, 128>}, {pipeline_mode = #tpu.pipeline_mode<synchronous>, transform_indices = @transform_5, window_bounds = array<i64: 3, 128, 128>}, {pipeline_mode = #tpu.pipeline_mode<synchronous>, transform_indices = @transform_6, window_bounds = array<i64: 3, 128, 384>}, {pipeline_mode = #tpu.pipeline_mode<synchronous>, transform_indices = @transform_7, window_bounds = array<i64: 3, 1, 384>}, {pipeline_mode = #tpu.pipeline_mode<synchronous>, transform_indices = @transform_8, window_bounds = array<i64: 3, 128, 384>}, {pipeline_mode = #tpu.pipeline_mode<synchronous>, transform_indices = @transform_9, window_bounds = array<i64: 3, 1, 128>}, {transform_indices = @transform_10, window_bounds = array<i64: 1, 128, 128>}, {transform_indices = @transform_11, window_bounds = array<i64: 1, 3, 128, 1>}, {pipeline_mode = #tpu.pipeline_mode<synchronous>, transform_indices = @transform_12, window_bounds = array<i64: 128, 128>}, {pipeline_mode = #tpu.pipeline_mode<synchronous>, transform_indices = @transform_13, window_bounds = array<i64: 128, 128>}]} {
    %c0_i32 = arith.constant 0 : i32
    %0 = arith.cmpi eq, %arg0, %c0_i32 : i32
    %1 = arith.extui %0 : i1 to i32
    %c0_i32_0 = arith.constant 0 : i32
    %2 = arith.cmpi ne, %1, %c0_i32_0 : i32
    scf.if %2 {
      %cst_80 = arith.constant 0.000000e+00 : f32
      %156 = vector.broadcast %cst_80 : f32 to vector<128x128xf32>
      %c0_81 = arith.constant 0 : index
      %c0_82 = arith.constant 0 : index
      %157 = vector.load %arg14[%c0_81, %c0_82] : memref<128x128xf32, #tpu.memory_space<vmem>>, vector<128x128xf32>
      tpu.vector_store %arg14[%c0_81, %c0_82], %156 {strides = array<i32>} : memref<128x128xf32, #tpu.memory_space<vmem>>, vector<128x128xf32>,
      %c0_83 = arith.constant 0 : index
      %c0_84 = arith.constant 0 : index
      %158 = vector.load %arg1[%c0_83, %c0_84] : memref<128x6xf32, #tpu.memory_space<vmem>>, vector<128x6xf32>
      %c0_85 = arith.constant 0 : index
      %c0_86 = arith.constant 0 : index
      %159 = vector.load %arg2[%c0_85, %c0_86] : memref<6x128xf32, #tpu.memory_space<vmem>>, vector<6x128xf32>
      %cst_87 = arith.constant dense<0.000000e+00> : vector<128x128xf32>
      %160 = tpu.matmul %158, %159, %cst_87 {dimension_numbers = #tpu.dot_dimension_numbers<[1], [0], [0], [1], [0, 0, 1, 1], [], []>} : vector<128x6xf32>, vector<6x128xf32>, vector<128x128xf32> -> vector<128x128xf32>
      %c0_88 = arith.constant 0 : index
      %c0_89 = arith.constant 0 : index
      %161 = vector.load %arg3[%c0_88, %c0_89] : memref<1x128xf32, #tpu.memory_space<vmem>>, vector<1x128xf32>
      %162 = vector.broadcast %161 : vector<1x128xf32> to vector<128x128xf32>
      %163 = arith.addf %160, %162 : vector<128x128xf32>
      %c0_90 = arith.constant 0 : index
      %c0_91 = arith.constant 0 : index
      %164 = vector.load %arg13[%c0_90, %c0_91] : memref<128x128xf32, #tpu.memory_space<vmem>>, vector<128x128xf32>
      tpu.vector_store %arg13[%c0_90, %c0_91], %163 {strides = array<i32>} : memref<128x128xf32, #tpu.memory_space<vmem>>, vector<128x128xf32>,
      %165 = arith.truncf %163 : vector<128x128xf32> to vector<128x128xbf16>
      %c0_92 = arith.constant 0 : index
      %c0_93 = arith.constant 0 : index
      %c0_94 = arith.constant 0 : index
      %166 = vector.load %arg4[%c0_92, %c0_93, %c0_94] : memref<3x128x128xbf16, #tpu.memory_space<vmem>>, vector<1x128x128xbf16>
      %167 = vector.shape_cast %166 : vector<1x128x128xbf16> to vector<128x128xbf16>
      %cst_95 = arith.constant dense<0.000000e+00> : vector<128x128xf32>
      %168 = tpu.matmul %165, %167, %cst_95 {dimension_numbers = #tpu.dot_dimension_numbers<[1], [0], [0], [1], [0, 0, 1, 1], [], []>} : vector<128x128xbf16>, vector<128x128xbf16>, vector<128x128xf32> -> vector<128x128xf32>
      %c0_96 = arith.constant 0 : index
      %c0_97 = arith.constant 0 : index
      %c0_98 = arith.constant 0 : index
      %169 = vector.load %arg5[%c0_96, %c0_97, %c0_98] : memref<3x1x128xf32, #tpu.memory_space<vmem>>, vector<1x1x128xf32>
      %170 = vector.shape_cast %169 : vector<1x1x128xf32> to vector<1x128xf32>
      %171 = vector.broadcast %170 : vector<1x128xf32> to vector<128x128xf32>
      %172 = arith.addf %168, %171 : vector<128x128xf32>
      %c0_99 = arith.constant 0 : index
      %c0_100 = arith.constant 0 : index
      %c0_101 = arith.constant 0 : index
      %173 = vector.load %arg15[%c0_99, %c0_100, %c0_101] : memref<3x128x128xf32, #tpu.memory_space<vmem>>, vector<1x128x128xf32>
      %174 = vector.shape_cast %173 : vector<1x128x128xf32> to vector<128x128xf32>
      %175 = vector.shape_cast %172 : vector<128x128xf32> to vector<1x128x128xf32>
      tpu.vector_store %arg15[%c0_99, %c0_100, %c0_101], %175 {strides = array<i32>} : memref<3x128x128xf32, #tpu.memory_space<vmem>>, vector<1x128x128xf32>,
      %c1_102 = arith.constant 1 : index
      %c0_103 = arith.constant 0 : index
      %c0_104 = arith.constant 0 : index
      %176 = vector.load %arg4[%c1_102, %c0_103, %c0_104] : memref<3x128x128xbf16, #tpu.memory_space<vmem>>, vector<1x128x128xbf16>
      %177 = vector.shape_cast %176 : vector<1x128x128xbf16> to vector<128x128xbf16>
      %cst_105 = arith.constant dense<0.000000e+00> : vector<128x128xf32>
      %178 = tpu.matmul %165, %177, %cst_105 {dimension_numbers = #tpu.dot_dimension_numbers<[1], [0], [0], [1], [0, 0, 1, 1], [], []>} : vector<128x128xbf16>, vector<128x128xbf16>, vector<128x128xf32> -> vector<128x128xf32>
      %c1_106 = arith.constant 1 : index
      %c0_107 = arith.constant 0 : index
      %c0_108 = arith.constant 0 : index
      %179 = vector.load %arg5[%c1_106, %c0_107, %c0_108] : memref<3x1x128xf32, #tpu.memory_space<vmem>>, vector<1x1x128xf32>
      %180 = vector.shape_cast %179 : vector<1x1x128xf32> to vector<1x128xf32>
      %181 = vector.broadcast %180 : vector<1x128xf32> to vector<128x128xf32>
      %182 = arith.addf %178, %181 : vector<128x128xf32>
      %c1_109 = arith.constant 1 : index
      %c0_110 = arith.constant 0 : index
      %c0_111 = arith.constant 0 : index
      %183 = vector.load %arg15[%c1_109, %c0_110, %c0_111] : memref<3x128x128xf32, #tpu.memory_space<vmem>>, vector<1x128x128xf32>
      %184 = vector.shape_cast %183 : vector<1x128x128xf32> to vector<128x128xf32>
      %185 = vector.shape_cast %182 : vector<128x128xf32> to vector<1x128x128xf32>
      tpu.vector_store %arg15[%c1_109, %c0_110, %c0_111], %185 {strides = array<i32>} : memref<3x128x128xf32, #tpu.memory_space<vmem>>, vector<1x128x128xf32>,
      %c2_112 = arith.constant 2 : index
      %c0_113 = arith.constant 0 : index
      %c0_114 = arith.constant 0 : index
      %186 = vector.load %arg4[%c2_112, %c0_113, %c0_114] : memref<3x128x128xbf16, #tpu.memory_space<vmem>>, vector<1x128x128xbf16>
      %187 = vector.shape_cast %186 : vector<1x128x128xbf16> to vector<128x128xbf16>
      %cst_115 = arith.constant dense<0.000000e+00> : vector<128x128xf32>
      %188 = tpu.matmul %165, %187, %cst_115 {dimension_numbers = #tpu.dot_dimension_numbers<[1], [0], [0], [1], [0, 0, 1, 1], [], []>} : vector<128x128xbf16>, vector<128x128xbf16>, vector<128x128xf32> -> vector<128x128xf32>
      %c2_116 = arith.constant 2 : index
      %c0_117 = arith.constant 0 : index
      %c0_118 = arith.constant 0 : index
      %189 = vector.load %arg5[%c2_116, %c0_117, %c0_118] : memref<3x1x128xf32, #tpu.memory_space<vmem>>, vector<1x1x128xf32>
      %190 = vector.shape_cast %189 : vector<1x1x128xf32> to vector<1x128xf32>
      %191 = vector.broadcast %190 : vector<1x128xf32> to vector<128x128xf32>
      %192 = arith.addf %188, %191 : vector<128x128xf32>
      %c2_119 = arith.constant 2 : index
      %c0_120 = arith.constant 0 : index
      %c0_121 = arith.constant 0 : index
      %193 = vector.load %arg15[%c2_119, %c0_120, %c0_121] : memref<3x128x128xf32, #tpu.memory_space<vmem>>, vector<1x128x128xf32>
      %194 = vector.shape_cast %193 : vector<1x128x128xf32> to vector<128x128xf32>
      %195 = vector.shape_cast %192 : vector<128x128xf32> to vector<1x128x128xf32>
      tpu.vector_store %arg15[%c2_119, %c0_120, %c0_121], %195 {strides = array<i32>} : memref<3x128x128xf32, #tpu.memory_space<vmem>>, vector<1x128x128xf32>,
    } else {
    }
    %c0 = arith.constant 0 : index
    %c0_1 = arith.constant 0 : index
    %3 = vector.load %arg14[%c0, %c0_1] : memref<128x128xf32, #tpu.memory_space<vmem>>, vector<128x128xf32>
    %4 = arith.truncf %3 : vector<128x128xf32> to vector<128x128xbf16>
    %c0_2 = arith.constant 0 : index
    %c0_3 = arith.constant 0 : index
    %c0_4 = arith.constant 0 : index
    %5 = vector.load %arg11[%c0_2, %c0_3, %c0_4] : memref<1x128x128xbf16, #tpu.memory_space<vmem>>, vector<1x128x128xbf16>
    %6 = vector.shape_cast %5 : vector<1x128x128xbf16> to vector<128x128xbf16>
    %c0_5 = arith.constant 0 : index
    %c0_6 = arith.constant 0 : index
    %c0_7 = arith.constant 0 : index
    %c0_8 = arith.constant 0 : index
    %7 = vector.load %arg12[%c0_5, %c0_6, %c0_7, %c0_8] : memref<1x3x128x1xf32, #tpu.memory_space<vmem>>, vector<1x3x128x1xf32>
    %c0_9 = arith.constant 0 : index
    %c0_10 = arith.constant 0 : index
    %c0_11 = arith.constant 0 : index
    %8 = vector.load %arg15[%c0_9, %c0_10, %c0_11] : memref<3x128x128xf32, #tpu.memory_space<vmem>>, vector<1x128x128xf32>
    %9 = vector.shape_cast %8 : vector<1x128x128xf32> to vector<128x128xf32>
    %c0_12 = arith.constant 0 : index
    %c0_13 = arith.constant 0 : index
    %c0_14 = arith.constant 0 : index
    %10 = vector.load %arg6[%c0_12, %c0_13, %c0_14] : memref<3x128x128xbf16, #tpu.memory_space<vmem>>, vector<1x128x128xbf16>
    %11 = vector.shape_cast %10 : vector<1x128x128xbf16> to vector<128x128xbf16>
    %cst = arith.constant dense<0.000000e+00> : vector<128x128xf32>
    %12 = tpu.matmul %4, %11, %cst {dimension_numbers = #tpu.dot_dimension_numbers<[1], [0], [0], [1], [0, 0, 1, 1], [], []>} : vector<128x128xbf16>, vector<128x128xbf16>, vector<128x128xf32> -> vector<128x128xf32>
    %13 = arith.addf %9, %12 : vector<128x128xf32>
    %14 = arith.truncf %13 : vector<128x128xf32> to vector<128x128xbf16>
    %cst_15 = arith.constant dense<0.000000e+00> : vector<128x128xf32>
    %15 = tpu.matmul %6, %14, %cst_15 {dimension_numbers = #tpu.dot_dimension_numbers<[1], [0], [0], [1], [0, 0, 1, 1], [], []>} : vector<128x128xbf16>, vector<128x128xbf16>, vector<128x128xf32> -> vector<128x128xf32>
    %16 = arith.truncf %15 : vector<128x128xf32> to vector<128x128xbf16>
    %c0_16 = arith.constant 0 : index
    %c0_17 = arith.constant 0 : index
    %c0_18 = arith.constant 0 : index
    %17 = vector.load %arg7[%c0_16, %c0_17, %c0_18] : memref<3x128x384xbf16, #tpu.memory_space<vmem>>, vector<1x128x384xbf16>
    %18 = vector.shape_cast %17 : vector<1x128x384xbf16> to vector<128x384xbf16>
    %cst_19 = arith.constant dense<0.000000e+00> : vector<128x384xf32>
    %19 = tpu.matmul %16, %18, %cst_19 {dimension_numbers = #tpu.dot_dimension_numbers<[1], [0], [0], [1], [0, 0, 1, 1], [], []>} : vector<128x128xbf16>, vector<128x384xbf16>, vector<128x384xf32> -> vector<128x384xf32>
    %c0_20 = arith.constant 0 : index
    %c0_21 = arith.constant 0 : index
    %c0_22 = arith.constant 0 : index
    %20 = vector.load %arg8[%c0_20, %c0_21, %c0_22] : memref<3x1x384xf32, #tpu.memory_space<vmem>>, vector<1x1x384xf32>
    %21 = vector.shape_cast %20 : vector<1x1x384xf32> to vector<1x384xf32>
    %22 = vector.broadcast %21 : vector<1x384xf32> to vector<128x384xf32>
    %23 = arith.addf %19, %22 : vector<128x384xf32>
    %c0_23 = arith.constant 0 : index
    %c0_24 = arith.constant 0 : index
    %c0_25 = arith.constant 0 : index
    %24 = vector.load %arg9[%c0_23, %c0_24, %c0_25] : memref<3x128x384xbf16, #tpu.memory_space<vmem>>, vector<1x128x384xbf16>
    %25 = vector.shape_cast %24 : vector<1x128x384xbf16> to vector<128x384xbf16>
    %cst_26 = arith.constant dense<0.000000e+00> : vector<128x384xf32>
    %26 = tpu.matmul %4, %25, %cst_26 {dimension_numbers = #tpu.dot_dimension_numbers<[1], [0], [0], [1], [0, 0, 1, 1], [], []>} : vector<128x128xbf16>, vector<128x384xbf16>, vector<128x384xf32> -> vector<128x384xf32>
    %27 = vector.extract_strided_slice %23 {offsets = [0, 0], sizes = [128, 256], strides = [1, 1]} : vector<128x384xf32> to vector<128x256xf32>
    %28 = vector.extract_strided_slice %26 {offsets = [0, 0], sizes = [128, 256], strides = [1, 1]} : vector<128x384xf32> to vector<128x256xf32>
    %29 = arith.addf %27, %28 : vector<128x256xf32>
    %30 = arith.negf %29 : vector<128x256xf32>
    %31 = math.exp %30 : vector<128x256xf32>
    %cst_27 = arith.constant 1.000000e+00 : f32
    %32 = vector.broadcast %cst_27 : f32 to vector<128x256xf32>
    %33 = arith.addf %32, %31 : vector<128x256xf32>
    %34 = arith.divf %32, %33 : vector<128x256xf32>
    %35 = vector.extract_strided_slice %34 {offsets = [0, 0], sizes = [128, 128], strides = [1, 1]} : vector<128x256xf32> to vector<128x128xf32>
    %36 = vector.extract_strided_slice %34 {offsets = [0, 128], sizes = [128, 128], strides = [1, 1]} : vector<128x256xf32> to vector<128x128xf32>
    %37 = vector.extract_strided_slice %23 {offsets = [0, 256], sizes = [128, 128], strides = [1, 1]} : vector<128x384xf32> to vector<128x128xf32>
    %38 = vector.extract_strided_slice %26 {offsets = [0, 256], sizes = [128, 128], strides = [1, 1]} : vector<128x384xf32> to vector<128x128xf32>
    %c0_28 = arith.constant 0 : index
    %c0_29 = arith.constant 0 : index
    %c0_30 = arith.constant 0 : index
    %39 = vector.load %arg10[%c0_28, %c0_29, %c0_30] : memref<3x1x128xf32, #tpu.memory_space<vmem>>, vector<1x1x128xf32>
    %40 = vector.shape_cast %39 : vector<1x1x128xf32> to vector<1x128xf32>
    %41 = vector.broadcast %40 : vector<1x128xf32> to vector<128x128xf32>
    %42 = arith.addf %38, %41 : vector<128x128xf32>
    %43 = arith.mulf %35, %42 : vector<128x128xf32>
    %44 = arith.addf %37, %43 : vector<128x128xf32>
    %45 = math.tanh %44 : vector<128x128xf32>
    %cst_31 = arith.constant 1.000000e+00 : f32
    %46 = vector.broadcast %cst_31 : f32 to vector<128x128xf32>
    %47 = arith.subf %46, %36 : vector<128x128xf32>
    %48 = arith.mulf %47, %45 : vector<128x128xf32>
    %49 = arith.mulf %36, %3 : vector<128x128xf32>
    %50 = arith.addf %48, %49 : vector<128x128xf32>
    %51 = vector.extract_strided_slice %7 {offsets = [0, 0, 0, 0], sizes = [1, 1, 128, 1], strides = [1, 1, 1, 1]} : vector<1x3x128x1xf32> to vector<1x1x128x1xf32>
    %52 = vector.shape_cast %51 : vector<1x1x128x1xf32> to vector<128x1xf32>
    %53 = arith.subf %50, %3 : vector<128x128xf32>
    %54 = vector.broadcast %52 : vector<128x1xf32> to vector<128x128xf32>
    %55 = arith.mulf %54, %53 : vector<128x128xf32>
    %56 = arith.addf %3, %55 : vector<128x128xf32>
    %c1 = arith.constant 1 : index
    %c0_32 = arith.constant 0 : index
    %c0_33 = arith.constant 0 : index
    %57 = vector.load %arg15[%c1, %c0_32, %c0_33] : memref<3x128x128xf32, #tpu.memory_space<vmem>>, vector<1x128x128xf32>
    %58 = vector.shape_cast %57 : vector<1x128x128xf32> to vector<128x128xf32>
    %c1_34 = arith.constant 1 : index
    %c0_35 = arith.constant 0 : index
    %c0_36 = arith.constant 0 : index
    %59 = vector.load %arg6[%c1_34, %c0_35, %c0_36] : memref<3x128x128xbf16, #tpu.memory_space<vmem>>, vector<1x128x128xbf16>
    %60 = vector.shape_cast %59 : vector<1x128x128xbf16> to vector<128x128xbf16>
    %cst_37 = arith.constant dense<0.000000e+00> : vector<128x128xf32>
    %61 = tpu.matmul %4, %60, %cst_37 {dimension_numbers = #tpu.dot_dimension_numbers<[1], [0], [0], [1], [0, 0, 1, 1], [], []>} : vector<128x128xbf16>, vector<128x128xbf16>, vector<128x128xf32> -> vector<128x128xf32>
    %62 = arith.addf %58, %61 : vector<128x128xf32>
    %63 = arith.truncf %62 : vector<128x128xf32> to vector<128x128xbf16>
    %cst_38 = arith.constant dense<0.000000e+00> : vector<128x128xf32>
    %64 = tpu.matmul %6, %63, %cst_38 {dimension_numbers = #tpu.dot_dimension_numbers<[1], [0], [0], [1], [0, 0, 1, 1], [], []>} : vector<128x128xbf16>, vector<128x128xbf16>, vector<128x128xf32> -> vector<128x128xf32>
    %65 = arith.truncf %64 : vector<128x128xf32> to vector<128x128xbf16>
    %c1_39 = arith.constant 1 : index
    %c0_40 = arith.constant 0 : index
    %c0_41 = arith.constant 0 : index
    %66 = vector.load %arg7[%c1_39, %c0_40, %c0_41] : memref<3x128x384xbf16, #tpu.memory_space<vmem>>, vector<1x128x384xbf16>
    %67 = vector.shape_cast %66 : vector<1x128x384xbf16> to vector<128x384xbf16>
    %cst_42 = arith.constant dense<0.000000e+00> : vector<128x384xf32>
    %68 = tpu.matmul %65, %67, %cst_42 {dimension_numbers = #tpu.dot_dimension_numbers<[1], [0], [0], [1], [0, 0, 1, 1], [], []>} : vector<128x128xbf16>, vector<128x384xbf16>, vector<128x384xf32> -> vector<128x384xf32>
    %c1_43 = arith.constant 1 : index
    %c0_44 = arith.constant 0 : index
    %c0_45 = arith.constant 0 : index
    %69 = vector.load %arg8[%c1_43, %c0_44, %c0_45] : memref<3x1x384xf32, #tpu.memory_space<vmem>>, vector<1x1x384xf32>
    %70 = vector.shape_cast %69 : vector<1x1x384xf32> to vector<1x384xf32>
    %71 = vector.broadcast %70 : vector<1x384xf32> to vector<128x384xf32>
    %72 = arith.addf %68, %71 : vector<128x384xf32>
    %c1_46 = arith.constant 1 : index
    %c0_47 = arith.constant 0 : index
    %c0_48 = arith.constant 0 : index
    %73 = vector.load %arg9[%c1_46, %c0_47, %c0_48] : memref<3x128x384xbf16, #tpu.memory_space<vmem>>, vector<1x128x384xbf16>
    %74 = vector.shape_cast %73 : vector<1x128x384xbf16> to vector<128x384xbf16>
    %cst_49 = arith.constant dense<0.000000e+00> : vector<128x384xf32>
    %75 = tpu.matmul %4, %74, %cst_49 {dimension_numbers = #tpu.dot_dimension_numbers<[1], [0], [0], [1], [0, 0, 1, 1], [], []>} : vector<128x128xbf16>, vector<128x384xbf16>, vector<128x384xf32> -> vector<128x384xf32>
    %76 = vector.extract_strided_slice %72 {offsets = [0, 0], sizes = [128, 256], strides = [1, 1]} : vector<128x384xf32> to vector<128x256xf32>
    %77 = vector.extract_strided_slice %75 {offsets = [0, 0], sizes = [128, 256], strides = [1, 1]} : vector<128x384xf32> to vector<128x256xf32>
    %78 = arith.addf %76, %77 : vector<128x256xf32>
    %79 = arith.negf %78 : vector<128x256xf32>
    %80 = math.exp %79 : vector<128x256xf32>
    %cst_50 = arith.constant 1.000000e+00 : f32
    %81 = vector.broadcast %cst_50 : f32 to vector<128x256xf32>
    %82 = arith.addf %81, %80 : vector<128x256xf32>
    %83 = arith.divf %81, %82 : vector<128x256xf32>
    %84 = vector.extract_strided_slice %83 {offsets = [0, 0], sizes = [128, 128], strides = [1, 1]} : vector<128x256xf32> to vector<128x128xf32>
    %85 = vector.extract_strided_slice %83 {offsets = [0, 128], sizes = [128, 128], strides = [1, 1]} : vector<128x256xf32> to vector<128x128xf32>
    %86 = vector.extract_strided_slice %72 {offsets = [0, 256], sizes = [128, 128], strides = [1, 1]} : vector<128x384xf32> to vector<128x128xf32>
    %87 = vector.extract_strided_slice %75 {offsets = [0, 256], sizes = [128, 128], strides = [1, 1]} : vector<128x384xf32> to vector<128x128xf32>
    %c1_51 = arith.constant 1 : index
    %c0_52 = arith.constant 0 : index
    %c0_53 = arith.constant 0 : index
    %88 = vector.load %arg10[%c1_51, %c0_52, %c0_53] : memref<3x1x128xf32, #tpu.memory_space<vmem>>, vector<1x1x128xf32>
    %89 = vector.shape_cast %88 : vector<1x1x128xf32> to vector<1x128xf32>
    %90 = vector.broadcast %89 : vector<1x128xf32> to vector<128x128xf32>
    %91 = arith.addf %87, %90 : vector<128x128xf32>
    %92 = arith.mulf %84, %91 : vector<128x128xf32>
    %93 = arith.addf %86, %92 : vector<128x128xf32>
    %94 = math.tanh %93 : vector<128x128xf32>
    %cst_54 = arith.constant 1.000000e+00 : f32
    %95 = vector.broadcast %cst_54 : f32 to vector<128x128xf32>
    %96 = arith.subf %95, %85 : vector<128x128xf32>
    %97 = arith.mulf %96, %94 : vector<128x128xf32>
    %98 = arith.mulf %85, %56 : vector<128x128xf32>
    %99 = arith.addf %97, %98 : vector<128x128xf32>
    %100 = vector.extract_strided_slice %7 {offsets = [0, 1, 0, 0], sizes = [1, 1, 128, 1], strides = [1, 1, 1, 1]} : vector<1x3x128x1xf32> to vector<1x1x128x1xf32>
    %101 = vector.shape_cast %100 : vector<1x1x128x1xf32> to vector<128x1xf32>
    %102 = arith.subf %99, %56 : vector<128x128xf32>
    %103 = vector.broadcast %101 : vector<128x1xf32> to vector<128x128xf32>
    %104 = arith.mulf %103, %102 : vector<128x128xf32>
    %105 = arith.addf %56, %104 : vector<128x128xf32>
    %c2 = arith.constant 2 : index
    %c0_55 = arith.constant 0 : index
    %c0_56 = arith.constant 0 : index
    %106 = vector.load %arg15[%c2, %c0_55, %c0_56] : memref<3x128x128xf32, #tpu.memory_space<vmem>>, vector<1x128x128xf32>
    %107 = vector.shape_cast %106 : vector<1x128x128xf32> to vector<128x128xf32>
    %c2_57 = arith.constant 2 : index
    %c0_58 = arith.constant 0 : index
    %c0_59 = arith.constant 0 : index
    %108 = vector.load %arg6[%c2_57, %c0_58, %c0_59] : memref<3x128x128xbf16, #tpu.memory_space<vmem>>, vector<1x128x128xbf16>
    %109 = vector.shape_cast %108 : vector<1x128x128xbf16> to vector<128x128xbf16>
    %cst_60 = arith.constant dense<0.000000e+00> : vector<128x128xf32>
    %110 = tpu.matmul %4, %109, %cst_60 {dimension_numbers = #tpu.dot_dimension_numbers<[1], [0], [0], [1], [0, 0, 1, 1], [], []>} : vector<128x128xbf16>, vector<128x128xbf16>, vector<128x128xf32> -> vector<128x128xf32>
    %111 = arith.addf %107, %110 : vector<128x128xf32>
    %112 = arith.truncf %111 : vector<128x128xf32> to vector<128x128xbf16>
    %cst_61 = arith.constant dense<0.000000e+00> : vector<128x128xf32>
    %113 = tpu.matmul %6, %112, %cst_61 {dimension_numbers = #tpu.dot_dimension_numbers<[1], [0], [0], [1], [0, 0, 1, 1], [], []>} : vector<128x128xbf16>, vector<128x128xbf16>, vector<128x128xf32> -> vector<128x128xf32>
    %114 = arith.truncf %113 : vector<128x128xf32> to vector<128x128xbf16>
    %c2_62 = arith.constant 2 : index
    %c0_63 = arith.constant 0 : index
    %c0_64 = arith.constant 0 : index
    %115 = vector.load %arg7[%c2_62, %c0_63, %c0_64] : memref<3x128x384xbf16, #tpu.memory_space<vmem>>, vector<1x128x384xbf16>
    %116 = vector.shape_cast %115 : vector<1x128x384xbf16> to vector<128x384xbf16>
    %cst_65 = arith.constant dense<0.000000e+00> : vector<128x384xf32>
    %117 = tpu.matmul %114, %116, %cst_65 {dimension_numbers = #tpu.dot_dimension_numbers<[1], [0], [0], [1], [0, 0, 1, 1], [], []>} : vector<128x128xbf16>, vector<128x384xbf16>, vector<128x384xf32> -> vector<128x384xf32>
    %c2_66 = arith.constant 2 : index
    %c0_67 = arith.constant 0 : index
    %c0_68 = arith.constant 0 : index
    %118 = vector.load %arg8[%c2_66, %c0_67, %c0_68] : memref<3x1x384xf32, #tpu.memory_space<vmem>>, vector<1x1x384xf32>
    %119 = vector.shape_cast %118 : vector<1x1x384xf32> to vector<1x384xf32>
    %120 = vector.broadcast %119 : vector<1x384xf32> to vector<128x384xf32>
    %121 = arith.addf %117, %120 : vector<128x384xf32>
    %c2_69 = arith.constant 2 : index
    %c0_70 = arith.constant 0 : index
    %c0_71 = arith.constant 0 : index
    %122 = vector.load %arg9[%c2_69, %c0_70, %c0_71] : memref<3x128x384xbf16, #tpu.memory_space<vmem>>, vector<1x128x384xbf16>
    %123 = vector.shape_cast %122 : vector<1x128x384xbf16> to vector<128x384xbf16>
    %cst_72 = arith.constant dense<0.000000e+00> : vector<128x384xf32>
    %124 = tpu.matmul %4, %123, %cst_72 {dimension_numbers = #tpu.dot_dimension_numbers<[1], [0], [0], [1], [0, 0, 1, 1], [], []>} : vector<128x128xbf16>, vector<128x384xbf16>, vector<128x384xf32> -> vector<128x384xf32>
    %125 = vector.extract_strided_slice %121 {offsets = [0, 0], sizes = [128, 256], strides = [1, 1]} : vector<128x384xf32> to vector<128x256xf32>
    %126 = vector.extract_strided_slice %124 {offsets = [0, 0], sizes = [128, 256], strides = [1, 1]} : vector<128x384xf32> to vector<128x256xf32>
    %127 = arith.addf %125, %126 : vector<128x256xf32>
    %128 = arith.negf %127 : vector<128x256xf32>
    %129 = math.exp %128 : vector<128x256xf32>
    %cst_73 = arith.constant 1.000000e+00 : f32
    %130 = vector.broadcast %cst_73 : f32 to vector<128x256xf32>
    %131 = arith.addf %130, %129 : vector<128x256xf32>
    %132 = arith.divf %130, %131 : vector<128x256xf32>
    %133 = vector.extract_strided_slice %132 {offsets = [0, 0], sizes = [128, 128], strides = [1, 1]} : vector<128x256xf32> to vector<128x128xf32>
    %134 = vector.extract_strided_slice %132 {offsets = [0, 128], sizes = [128, 128], strides = [1, 1]} : vector<128x256xf32> to vector<128x128xf32>
    %135 = vector.extract_strided_slice %121 {offsets = [0, 256], sizes = [128, 128], strides = [1, 1]} : vector<128x384xf32> to vector<128x128xf32>
    %136 = vector.extract_strided_slice %124 {offsets = [0, 256], sizes = [128, 128], strides = [1, 1]} : vector<128x384xf32> to vector<128x128xf32>
    %c2_74 = arith.constant 2 : index
    %c0_75 = arith.constant 0 : index
    %c0_76 = arith.constant 0 : index
    %137 = vector.load %arg10[%c2_74, %c0_75, %c0_76] : memref<3x1x128xf32, #tpu.memory_space<vmem>>, vector<1x1x128xf32>
    %138 = vector.shape_cast %137 : vector<1x1x128xf32> to vector<1x128xf32>
    %139 = vector.broadcast %138 : vector<1x128xf32> to vector<128x128xf32>
    %140 = arith.addf %136, %139 : vector<128x128xf32>
    %141 = arith.mulf %133, %140 : vector<128x128xf32>
    %142 = arith.addf %135, %141 : vector<128x128xf32>
    %143 = math.tanh %142 : vector<128x128xf32>
    %cst_77 = arith.constant 1.000000e+00 : f32
    %144 = vector.broadcast %cst_77 : f32 to vector<128x128xf32>
    %145 = arith.subf %144, %134 : vector<128x128xf32>
    %146 = arith.mulf %145, %143 : vector<128x128xf32>
    %147 = arith.mulf %134, %105 : vector<128x128xf32>
    %148 = arith.addf %146, %147 : vector<128x128xf32>
    %149 = vector.extract_strided_slice %7 {offsets = [0, 2, 0, 0], sizes = [1, 1, 128, 1], strides = [1, 1, 1, 1]} : vector<1x3x128x1xf32> to vector<1x1x128x1xf32>
    %150 = vector.shape_cast %149 : vector<1x1x128x1xf32> to vector<128x1xf32>
    %151 = arith.subf %148, %105 : vector<128x128xf32>
    %152 = vector.broadcast %150 : vector<128x1xf32> to vector<128x128xf32>
    %153 = arith.mulf %152, %151 : vector<128x128xf32>
    %154 = arith.addf %105, %153 : vector<128x128xf32>
    %c0_78 = arith.constant 0 : index
    %c0_79 = arith.constant 0 : index
    %155 = vector.load %arg14[%c0_78, %c0_79] : memref<128x128xf32, #tpu.memory_space<vmem>>, vector<128x128xf32>
    tpu.vector_store %arg14[%c0_78, %c0_79], %154 {strides = array<i32>} : memref<128x128xf32, #tpu.memory_space<vmem>>, vector<128x128xf32>,
    return
  }
  func.func @transform_0(%arg0: i32) -> (i32, i32) {
    %c0_i32 = arith.constant 0 : i32
    %c0_i32_0 = arith.constant 0 : i32
    %c0_i32_1 = arith.constant 0 : i32
    return %c0_i32, %c0_i32_0 : i32, i32
  }
  func.func @transform_1(%arg0: i32) -> (i32, i32) {
    %c0_i32 = arith.constant 0 : i32
    %c0_i32_0 = arith.constant 0 : i32
    %c0_i32_1 = arith.constant 0 : i32
    return %c0_i32, %c0_i32_0 : i32, i32
  }
  func.func @transform_2(%arg0: i32) -> (i32, i32) {
    %c0_i32 = arith.constant 0 : i32
    %c0_i32_0 = arith.constant 0 : i32
    %c0_i32_1 = arith.constant 0 : i32
    return %c0_i32, %c0_i32_0 : i32, i32
  }
  func.func @transform_3(%arg0: i32) -> (i32, i32, i32) {
    %c0_i32 = arith.constant 0 : i32
    %c0_i32_0 = arith.constant 0 : i32
    %c0_i32_1 = arith.constant 0 : i32
    %c0_i32_2 = arith.constant 0 : i32
    return %c0_i32, %c0_i32_0, %c0_i32_1 : i32, i32, i32
  }
  func.func @transform_4(%arg0: i32) -> (i32, i32, i32) {
    %c0_i32 = arith.constant 0 : i32
    %c0_i32_0 = arith.constant 0 : i32
    %c0_i32_1 = arith.constant 0 : i32
    %c0_i32_2 = arith.constant 0 : i32
    return %c0_i32, %c0_i32_0, %c0_i32_1 : i32, i32, i32
  }
  func.func @transform_5(%arg0: i32) -> (i32, i32, i32) {
    %c0_i32 = arith.constant 0 : i32
    %c0_i32_0 = arith.constant 0 : i32
    %c0_i32_1 = arith.constant 0 : i32
    %c0_i32_2 = arith.constant 0 : i32
    return %c0_i32, %c0_i32_0, %c0_i32_1 : i32, i32, i32
  }
  func.func @transform_6(%arg0: i32) -> (i32, i32, i32) {
    %c0_i32 = arith.constant 0 : i32
    %c0_i32_0 = arith.constant 0 : i32
    %c0_i32_1 = arith.constant 0 : i32
    %c0_i32_2 = arith.constant 0 : i32
    return %c0_i32, %c0_i32_0, %c0_i32_1 : i32, i32, i32
  }
  func.func @transform_7(%arg0: i32) -> (i32, i32, i32) {
    %c0_i32 = arith.constant 0 : i32
    %c0_i32_0 = arith.constant 0 : i32
    %c0_i32_1 = arith.constant 0 : i32
    %c0_i32_2 = arith.constant 0 : i32
    return %c0_i32, %c0_i32_0, %c0_i32_1 : i32, i32, i32
  }
  func.func @transform_8(%arg0: i32) -> (i32, i32, i32) {
    %c0_i32 = arith.constant 0 : i32
    %c0_i32_0 = arith.constant 0 : i32
    %c0_i32_1 = arith.constant 0 : i32
    %c0_i32_2 = arith.constant 0 : i32
    return %c0_i32, %c0_i32_0, %c0_i32_1 : i32, i32, i32
  }
  func.func @transform_9(%arg0: i32) -> (i32, i32, i32) {
    %c0_i32 = arith.constant 0 : i32
    %c0_i32_0 = arith.constant 0 : i32
    %c0_i32_1 = arith.constant 0 : i32
    %c0_i32_2 = arith.constant 0 : i32
    return %c0_i32, %c0_i32_0, %c0_i32_1 : i32, i32, i32
  }
  func.func @transform_10(%arg0: i32) -> (i32, i32, i32) {
    %c3_i32 = arith.constant 3 : i32
    %c0_i32 = arith.constant 0 : i32
    %0 = arith.cmpi eq, %c3_i32, %c0_i32 : i32
    %c1_i32 = arith.constant 1 : i32
    %1 = arith.select %0, %c1_i32, %c3_i32 : i32
    %2 = arith.remsi %arg0, %1 : i32
    %c0_i32_0 = arith.constant 0 : i32
    %3 = arith.cmpi ne, %2, %c0_i32_0 : i32
    %c0_i32_1 = arith.constant 0 : i32
    %4 = arith.cmpi slt, %2, %c0_i32_1 : i32
    %c0_i32_2 = arith.constant 0 : i32
    %5 = arith.cmpi slt, %1, %c0_i32_2 : i32
    %6 = arith.xori %4, %5 : i1
    %7 = arith.andi %6, %3 : i1
    %8 = arith.addi %2, %1 : i32
    %9 = arith.select %7, %8, %2 : i32
    %c0_i32_3 = arith.constant 0 : i32
    %c0_i32_4 = arith.constant 0 : i32
    %c0_i32_5 = arith.constant 0 : i32
    return %9, %c0_i32_3, %c0_i32_4 : i32, i32, i32
  }
  func.func @transform_11(%arg0: i32) -> (i32, i32, i32, i32) {
    %c3_i32 = arith.constant 3 : i32
    %c0_i32 = arith.constant 0 : i32
    %0 = arith.cmpi eq, %c3_i32, %c0_i32 : i32
    %c1_i32 = arith.constant 1 : i32
    %1 = arith.select %0, %c1_i32, %c3_i32 : i32
    %2 = arith.remsi %arg0, %1 : i32
    %c0_i32_0 = arith.constant 0 : i32
    %3 = arith.cmpi ne, %2, %c0_i32_0 : i32
    %c0_i32_1 = arith.constant 0 : i32
    %4 = arith.cmpi slt, %2, %c0_i32_1 : i32
    %c0_i32_2 = arith.constant 0 : i32
    %5 = arith.cmpi slt, %1, %c0_i32_2 : i32
    %6 = arith.xori %4, %5 : i1
    %7 = arith.andi %6, %3 : i1
    %8 = arith.addi %2, %1 : i32
    %9 = arith.select %7, %8, %2 : i32
    %c0_i32_3 = arith.constant 0 : i32
    %c0_i32_4 = arith.constant 0 : i32
    %c0_i32_5 = arith.constant 0 : i32
    %c0_i32_6 = arith.constant 0 : i32
    return %9, %c0_i32_3, %c0_i32_4, %c0_i32_5 : i32, i32, i32, i32
  }
  func.func @transform_12(%arg0: i32) -> (i32, i32) {
    %c0_i32 = arith.constant 0 : i32
    %c0_i32_0 = arith.constant 0 : i32
    %c0_i32_1 = arith.constant 0 : i32
    return %c0_i32, %c0_i32_0 : i32, i32
  }
  func.func @transform_13(%arg0: i32) -> (i32, i32) {
    %c0_i32 = arith.constant 0 : i32
    %c0_i32_0 = arith.constant 0 : i32
    %c0_i32_1 = arith.constant 0 : i32
    return %c0_i32, %c0_i32_0 : i32, i32
  }
}

</mosaic_0001>

<bundles_post_ra>
// kernel: tpu_custom_call.1
= control target key start
LH: loop header
LB: loop body
LE: loop exit
PB: predicated region body
PF: predicated region fallthrough
CT: control target
= control target key end

     0   :  { %s11077_s0 = inlined_call_operand.vmem [shape: f32[128,6], index: 0, kind: input, shape index: {}]   ;;  %s11078_s1 = inlined_call_operand.vmem [shape: f32[6,128], index: 1, kind: input, shape index: {}]   ;;  %s11079_s2 = inlined_call_operand.vmem [shape: f32[1,128], index: 2, kind: input, shape index: {}]   ;;  %s11080_s3 = inlined_call_operand.hbm [shape: bf16[3,128,128], index: 3, kind: input, shape index: {}]   ;;  %s11081_s4 = inlined_call_operand.vmem [shape: f32[3,1,128], index: 4, kind: input, shape index: {}]   ;;  %s11082_s5 = inlined_call_operand.hbm [shape: bf16[3,128,128], index: 5, kind: input, shape index: {}]   ;;  %s11083_s6 = inlined_call_operand.vmem [shape: bf16[3,128,384], index: 6, kind: input, shape index: {}]   ;;  %s11084_s7 = inlined_call_operand.vmem [shape: f32[3,1,384], index: 7, kind: input, shape index: {}]   ;;  %s11085_s8 = inlined_call_operand.vmem [shape: bf16[3,128,384], index: 8, kind: input, shape index: {}]   ;;  %s11086_s9 = inlined_call_operand.vmem [shape: f32[3,1,128], index: 9, kind: input, shape index: {}]   ;;  %s11087_s10 = inlined_call_operand.hbm [shape: bf16[3,128,128], index: 10, kind: input, shape index: {}]   ;;  %s11088_s11 = inlined_call_operand.vmem [shape: f32[3,3,128,1], index: 11, kind: input, shape index: {}]   ;;  %s11089_s12 = inlined_call_operand.hbm [shape: f32[128,128], index: 12, kind: output, shape index: {0}]   ;;  %s11090_s13 = inlined_call_operand.hbm [shape: f32[128,128], index: 13, kind: output, shape index: {1}]  }
   0x1   :  { %11137 = sst [smem:[#allocation55_spill]] %s11080_s3 }
   0x2   :  { %11138 = sst [smem:[#allocation56_spill]] %s11084_s7 }
   0x3   :  { %11139 = sst [smem:[#allocation57_spill]] %s11085_s8 }
   0x4   :  { %11140 = sst [smem:[#allocation58_spill]] %s11086_s9 }
   0x5   :  { %11141 = sst [smem:[#allocation59_spill]] %s11089_s12 }
   0x6   :  { %11142 = sst [smem:[#allocation60_spill]] %s11090_s13 }
   0x7   :  { %19 = vsyncpa [#allocation4], 0 }
   0x8   :  { %20 = vsyncpa [#allocation7], 0 }
   0x9   :  { %21 = vsyncpa [#allocation5], 0 }
   0xa   :  { %22 = vsyncpa [#allocation11], 0  ;;  %s8783_s25 = smov 0   ;;  %s8785_s26 = smov 0  }
   0xb   :  { %s8787_s27 = smov 0   ;;  %s8789_s28 = smov 0  }
   0xc LB: > { %s8802_s29 = sadd.s32 4294967295, %s8700_s28   ;;  %p278_p0 = scmp.ne.s32.totalorder %s8696_s27, %s8692_s26  ;;  %s8700_s28 = sphi %s8789_s28, %s11306_s28   ;;  %s8696_s27 = sphi %s8787_s27, %s11305_s27   ;;  %s8692_s26 = sphi %s8785_s26, %s11304_s26   ;;  %s8688_s25 = sphi %s8783_s25, %s11303_s25  }
   0xd   : > { %p279_p1 = scmp.eq.s32.totalorder %s8700_s28, 0  ;;  %p284_p2 = scmp.ne.s32.totalorder %s8692_s26, %s8688_s25 }
   0xe   : > { %p11091_p3 = scmp.eq.s32.totalorder %s8802_s29, 0  ;;  %p6402_p4 = scmp.ge.s32.totalorder %s8700_s28, 1 }
   0xf   : > { %p280_p5 = por %p279_p1, %p278_p0  ;;  %p389_p6 = scmp.lt.s32.totalorder %s8700_s28, 4 }
  0x10   : > { %p8813_p7 = por %p11091_p3, %p284_p2  ;;  %s8702_s15 = smov [#allocation3]  }
  0x11   : > { %p8818_p9 = pnand %p6402_p4, %p389_p6  ;;  %s410_s16 = sshll.u32 %s8702_s15, 4  ;;  %s411_s16 = int_to_ptr.vmem [resolvable:$true] %s410_s16 }
  0x12   : > { %s11143_s30 = scalar_select %p8813_p7, 1, 0 }
  0x13   : > { %s11144_s14 = scalar_select %p8818_p9, 1, 0 }
  0x14   : > { %p7680_p10 = pneg %p8818_p9  ;;  %p7693_p12 = scmp.lt.s32.totalorder %s8700_s28, 3 }
  0x15   : > { %s8533_s19 = scalar_lea.vmem %s411_s16, 3072  ;;  %p8541_p6 = scmp.lt.s32.totalorder %s411_s16, %s411_s16 }
  0x16   : > { %p8826_p11 = pnand %p7680_p10, %p11091_p3  ;;  %p8831_p13 = pnand %p7693_p12, %p280_p5 }
  0x17   : > { %p8534_p1 = scmp.ne.s32.totalorder %s411_s16, %s8533_s19  ;;  %p8542_p10 = scmp.lt.s32.totalorder %s8533_s19, %s8533_s19 }
  0x18   : > { %p8524_p0 = pneg %p8826_p11 }
  0x19   : > { %p8543_p8 = por %p8542_p10, %p8541_p6 }
  0x1a   : > { %p8536_p2 = pnand %p8534_p1, %p8524_p0 }
  0x1c   : > { %p8537_p4 = pneg %p8536_p2 }
  0x1e   : > { %p8544_p3 = pnand %p8543_p8, %p8537_p4 }
  0x20   : > { %8547 = shalt.err (!%p8544_p3)
}
  0x21   : > { %s11095_s20 = smov 64   ;;  %s8704_s21 = smov 4  }
  0x22   : > { %s11147_s3 = sld [smem:[#allocation55_spill]]  ;;  %s8705_s24 = smov [#allocation6]  }
  0x23   : > { %s426_s25 = sshll.u32 %s8705_s24, 4  ;;  %s8849_s15 = sadd.s32 1, %s8700_s28   ;;  %s427_s25 = int_to_ptr.vmem [resolvable:$true] %s426_s25 }
  0x24   : > { %s8559_s19 = scalar_lea.vmem %s427_s25, 3072  ;;  %p8567_p12 = scmp.lt.s32.totalorder %s427_s25, %s427_s25 }
  0x25   : > { %p8560_p3 = scmp.ne.s32.totalorder %s427_s25, %s8559_s19  ;;  %p8568_p1 = scmp.lt.s32.totalorder %s8559_s19, %s8559_s19 }
  0x27   : > { %p8562_p5 = pnand %p8560_p3, %p8524_p0  ;;  %p8569_p2 = por %p8568_p1, %p8567_p12 }
  0x28   : > { %7683 = dma.hbm_to_vmem [thread:$0]  (!%p8826_p11), %s11147_s3, 3072, %s411_s16, [#allocation4], %s11095_s20, %s11095_s20, %s8704_s21  }
  0x29   : > { %p8563_p8 = pneg %p8562_p5 }
  0x2b   : > { %p8570_p4 = pnand %p8569_p2, %p8563_p8 }
  0x2d   : > { %8573 = shalt.err (!%p8570_p4)
}
  0x2e   : > { %7686 = dma.hbm_to_vmem [thread:$0]  (!%p8826_p11), %s11082_s5, 3072, %s427_s25, [#allocation7], %s11095_s20, %s11095_s20, %s8704_s21  }
  0x2f   : > { %s243_s23 = ssub.s32 0, %s8700_s28  ;;  %s256_s19 = ssub.s32 0, %s8849_s15 }
  0x30   : > { %s6390_s24 = smin.u32 %s8700_s28, %s243_s23  ;;  %s6393_s17 = smin.u32 %s256_s19, %s8849_s15 }
  0x31   : > { %7744 = sdivrem.u32 %s6390_s24, 3  ;;  %s454_s3 = sand.u32 1, %s8696_s27  }
  0x32   : > { %7746 = sdivrem.u32 %s6393_s17, 3  ;;  %p242_p0 = scmp.lt.s32.totalorder %s8700_s28, 0 }
  0x33   : > { %s6406_s13 = sshll.u32 %s454_s3, 6  ;;  %p255_p6 = scmp.lt.s32.totalorder %s8849_s15, 0 }
  0x34   : > { %s452_s22 = sand.u32 1, %s8700_s28   ;;  %s456_s25 = scalar_lea.vmem [#allocation8], %s6406_s13 }
  0x35   : > { %s476_s20 = sshll.u32 %s456_s25, 4  ;;  %s8882_s13 = scalar_lea.sflag [#allocation4], %s452_s22  ;;  %s8873_s20 = int_to_ptr.vmem [resolvable:$true] %s476_s20 }
  0x36   : > { %p8576_p5 = pneg %p8831_p13 }
  0x3a   : > { %s7745_s16 = spop.drf %7744 }
  0x3b   : > { %s247_s12 = ssub.s32 0, %s7745_s16  ;;  %s7747_s9 = spop.drf %7746 }
  0x3c   : > { %s11308_s12 = smov (!%p242_p0, %s247_s12), %s7745_s16  ;;  %s260_s8 = ssub.s32 0, %s7747_s9 }
  0x3d   : > { %p6392_p10 = scmp.lt.s32.totalorder %s11308_s12, 0  ;;  %s253_s7 = sadd.s32 3, %s11308_s12 }
  0x3e   : > { %s11312_s8 = smov (!%p255_p6, %s260_s8), %s7747_s9  ;;  %s8579_s16 = scalar_lea.hbm %s11087_s10, 3072 }
  0x3f   : > { %s11310_s7 = smov (!%p6392_p10, %s253_s7), %s11308_s12  ;;  %p6395_p11 = scmp.lt.s32.totalorder %s11312_s8, 0 }
  0x40   : > { %s6881_s23 = sshll.u32 %s11310_s7, 10  ;;  %s266_s3 = sadd.s32 3, %s11312_s8 }
  0x41   : > { %s8878_s19 = scalar_lea.hbm %s11087_s10, %s6881_s23  ;;  %s11314_s3 = smov (!%p6395_p11, %s266_s3), %s11312_s8 }
  0x42   : > { %s8574_s12 = scalar_lea.hbm %s8878_s19, 1024  ;;  %p8580_p1 = scmp.lt.s32.totalorder %s8878_s19, %s11087_s10 }
  0x43   : > { %p8575_p3 = scmp.ne.s32.totalorder %s8878_s19, %s8574_s12  ;;  %p8581_p2 = scmp.lt.s32.totalorder %s8579_s16, %s8574_s12 }
  0x45   : > { %p8577_p8 = pnand %p8576_p5, %p8575_p3  ;;  %p8582_p4 = por %p8581_p2, %p8580_p1 }
  0x47   : > { %p8578_p12 = pneg %p8577_p8 }
  0x49   : > { %p8583_p0 = pnand %p8582_p4, %p8578_p12 }
  0x4b   : > { %8586 = shalt.err (!%p8583_p0)
}
  0x4c   : > { %s8587_s8 = scalar_lea.vmem %s8873_s20, 1024  ;;  %s8706_s22 = smov [#allocation8]  }
  0x4d   : > { %p8588_p6 = scmp.ne.s32.totalorder %s8873_s20, %s8587_s8  ;;  %s8592_s24 = sshll.u32 %s8706_s22, 4  ;;  %s8593_s24 = int_to_ptr.vmem [resolvable:$false] %s8592_s24 }
  0x4e   : > { %s8594_s28 = scalar_lea.vmem %s8593_s24, 2048  ;;  %p8595_p3 = scmp.lt.s32.totalorder %s8873_s20, %s8593_s24 }
  0x4f   : > { %p8590_p10 = pnand %p8588_p6, %p8576_p5  ;;  %p8596_p8 = scmp.lt.s32.totalorder %s8594_s28, %s8587_s8 }
  0x51   : > { %p8591_p11 = pneg %p8590_p10  ;;  %p8597_p7 = por %p8596_p8, %p8595_p3 }
  0x53   : > { %p8598_p9 = pnand %p8597_p7, %p8591_p11 }
  0x55   : > { %8601 = shalt.err (!%p8598_p9)
}
  0x56   : > { %s11148_s12 = smov 64   ;;  %s268_s9 = ssub.s32 %s11310_s7, %s11314_s3 }
  0x57   : > { %7690 = dma.hbm_to_vmem [thread:$0]  (!%p8831_p13), %s8878_s19, 1024, %s8873_s20, %s8882_s13, %s11148_s12, %s11148_s12, %s8704_s21  }
  0x58   : > { %s271_s17 = sadd.s32 1, %s8696_s27  ;;  %p269_p5 = scmp.eq.s32.totalorder %s268_s9, 0 }
  0x59   : > { %p11149_p7 = scmp.ne.s32.totalorder %s11144_s14, 0 }
  0x5a   : > { %s8910_s16 = scalar_select %p269_p5, %s8696_s27, %s271_s17  }
  0x5b   : > { %522 = sbr.rel (%p11149_p7) target bundleno = 2564 (0xa04), region = 68 }
  0x60   : > { %p11150_p9 = scmp.eq.s32.totalorder %s8802_s29, 0 }
  0x62   : > { %8667 = dma.done.wait (%p11150_p9), [#allocation4], 3072   ;;  %p11151_p12 = pmov %p11150_p9 }
  0x63   : > { %p11152_p1 = pmov %p11150_p9 }
  0x64   : > { %8669 = vsyncadd (%p11151_p12), [#allocation4], 4294964224 }
  0x65   : > { %8671 = dma.done.wait (%p11152_p1), [#allocation7], 3072   ;;  %p11153_p2 = pmov %p11152_p1 }
  0x66   : > { %s532_s7 = sand.u32 1, %s8802_s29   ;;  %s534_s18 = sand.u32 1, %s8692_s26  }
  0x67   : > { %8673 = vsyncadd (%p11153_p2), [#allocation7], 4294964224  ;;  %s6415_s20 = sshll.u32 %s534_s18, 6  ;;  %s533_s14 = scalar_lea.sflag [#allocation4], %s532_s7 }
  0x68   : > { %s8924_s21 = scalar_lea.vmem [#allocation8], %s6415_s20  ;;  %p11154_p13 = scmp.ne.s32.totalorder %s11143_s30, 0 }
  0x6a   : > { %8675 = dma.done.wait (%p11154_p13), %s533_s14, 1024  }
  0x6b   : > { %8677 = vsyncadd (%p11154_p13), %s533_s14, 4294966272  ;;  %s606_s3 = ssub.s32 0, %s8802_s29  ;;  %p605_p4 = scmp.lt.s32.totalorder %s8802_s29, 0 }
  0x6c   : > { %s6416_s19 = smin.u32 %s8802_s29, %s606_s3  ;;  %p11155_p10 = scmp.ne.s32.totalorder %s8802_s29, 0 }
  0x6d   : > { %7748 = sdivrem.u32 %s6416_s19, 3 }
  0x76   : > { %s7749_s13 = spop.drf %7748 }
  0x77   : > { %s610_s25 = ssub.s32 0, %s7749_s13 }
  0x78   : > { %s11316_s25 = smov (!%p605_p4, %s610_s25), %s7749_s13 }
  0x79   : > { %p6418_p0 = scmp.lt.s32.totalorder %s11316_s25, 0  ;;  %s616_s23 = sadd.s32 3, %s11316_s25 }
  0x7b   : > { %s11318_s23 = smov (!%p6418_p0, %s616_s23), %s11316_s25 }
  0x7c   : > { %p618_p6 = scmp.lt.s32.totalorder %s11318_s23, 2 }
  0x7d   : > { %640 = sbr.rel (%p11155_p10) target bundleno = 586 (0x24a), region = 84 }
  0x7e   : > { %s11320_s23 = smov (!%p618_p6, %s11318_s23), 2 }
  0x7f   : > { %s7661_s8 = smul.u32 384, %s11320_s23 }
  0x81   : > { %s8936_s30 = scalar_lea.vmem %s11088_s11, %s7661_s8 }
  0x82   : > { %v673_v0 = vld [vmem:[%s11078_s1] sm:$0x3f]  ;;  %vm730_vm0 = vcmask 1045504   ;;  %vm681_vm1 = vcmask 48128   ;;  %v8707_v2 = vmov 0.0   ;;  %v658_v3 = vld [vmem:[%s11077_s0 + $0x8] sm:$0xff] }
  0x83   : > { %v657_v1 = vld [vmem:[%s11077_s0] sm:$0xff]  ;;  %641 = vst [vmem:[#allocation10] sm:$0xff] %v8707_v2  ;;  %642 = vst [vmem:[#allocation10 + $0x8] sm:$0xff] %v8707_v2  ;;  %7139 = vmatprep.subr.msk.mxu0 %vm730_vm0, %v673_v0  ;;  %v659_v4 = vld [vmem:[%s11077_s0 + $0x10] sm:$0xff] }
  0x84   : > { %643 = vst [vmem:[#allocation10 + $0x10] sm:$0xff] %v8707_v2  ;;  %644 = vst [vmem:[#allocation10 + $0x18] sm:$0xff] %v8707_v2  ;;  %7141 = vmatprep.mubr.msk.f32.mxu0 %vm681_vm1, %v657_v1  ;;  %7140 = vmatpush3.msk.msra.mxu0 %vm730_vm0, %v673_v0  ;;  %v660_v5 = vld [vmem:[%s11077_s0 + $0x18] sm:$0xff]  ;;  %v661_v6 = vld [vmem:[%s11077_s0 + $0x20] sm:$0xff] }
  0x85   : > { %645 = vst [vmem:[#allocation10 + $0x20] sm:$0xff] %v8707_v2  ;;  %646 = vst [vmem:[#allocation10 + $0x28] sm:$0xff] %v8707_v2  ;;  %7142 = vmatmul.mubr.msk.f32.vlgmr.msra.gmra.mxu0 %vm681_vm1, %v658_v3  ;;  %v662_v7 = vld [vmem:[%s11077_s0 + $0x28] sm:$0xff]  ;;  %v7750_v8 = vld [vmem:[#allocation3 + $0x38] sm:$0xff]  }
  0x86   : > { %647 = vst [vmem:[#allocation10 + $0x30] sm:$0xff] %v8707_v2  ;;  %648 = vst [vmem:[#allocation10 + $0x38] sm:$0xff] %v8707_v2  ;;  %7144 = vmatprep.mubr.msk.f32.mxu0 %vm681_vm1, %v659_v4  ;;  %v663_v9 = vld [vmem:[%s11077_s0 + $0x30] sm:$0xff]  ;;  %v7751_v10 = vld [vmem:[#allocation3 + $0x78] sm:$0xff]   ;;  %7165 = vmatprep.subr.bf16.mxu1 %v7750_v8 }
  0x87   : > { %649 = vst [vmem:[#allocation10 + $0x40] sm:$0xff] %v8707_v2  ;;  %650 = vst [vmem:[#allocation10 + $0x48] sm:$0xff] %v8707_v2  ;;  %v7752_v11 = vld [vmem:[#allocation3 + $0x30] sm:$0xff]   ;;  %7166 = vmatpush3.bf16.msra.mxu1 %v7750_v8  ;;  %7197 = vmatprep.subr.bf16.mxu0 %v7751_v10  ;;  %v7754_v13 = vld [vmem:[#allocation3 + $0x28] sm:$0xff]  }
  0x88   : > { %651 = vst [vmem:[#allocation10 + $0x50] sm:$0xff] %v8707_v2  ;;  %652 = vst [vmem:[#allocation10 + $0x58] sm:$0xff] %v8707_v2  ;;  %v7753_v12 = vld [vmem:[#allocation3 + $0x70] sm:$0xff]   ;;  %7198 = vmatpush3.bf16.msra.mxu0 %v7751_v10  ;;  %7167 = vmatprep.subr.bf16.mxu1 %v7752_v11  ;;  %v7755_v14 = vld [vmem:[#allocation3 + $0x68] sm:$0xff]  }
  0x89   : > { %653 = vst [vmem:[#allocation10 + $0x60] sm:$0xff] %v8707_v2  ;;  %654 = vst [vmem:[#allocation10 + $0x68] sm:$0xff] %v8707_v2  ;;  %7145 = vmatmul.mubr.msk.f32.gmra.mxu0 %vm681_vm1, %v660_v5  ;;  %7199 = vmatprep.subr.bf16.mxu0 %v7753_v12  ;;  %v664_v15 = vld [vmem:[%s11077_s0 + $0x38] sm:$0xff]  ;;  %v665_v16 = vld [vmem:[%s11077_s0 + $0x40] sm:$0xff] }
  0x8a   : > { %655 = vst [vmem:[#allocation10 + $0x70] sm:$0xff] %v8707_v2  ;;  %656 = vst [vmem:[#allocation10 + $0x78] sm:$0xff] %v8707_v2  ;;  %7147 = vmatprep.mubr.msk.f32.mxu0 %vm681_vm1, %v661_v6  ;;  %v666_v17 = vld [vmem:[%s11077_s0 + $0x48] sm:$0xff]  ;;  %v7756_v18 = vld [vmem:[#allocation3 + $0x20] sm:$0xff]  }
  0x8b   : > { %7168 = vmatpush3.bf16.msra.mxu1 %v7752_v11  ;;  %v667_v19 = vld [vmem:[%s11077_s0 + $0x50] sm:$0xff]  ;;  %v7757_v20 = vld [vmem:[#allocation3 + $0x60] sm:$0xff]   ;;  %v7758_v21 = vld [vmem:[#allocation3 + $0x18] sm:$0xff]  }
  0x8c   : > { %7200 = vmatpush3.bf16.msra.mxu0 %v7753_v12  ;;  %7169 = vmatprep.subr.bf16.mxu1 %v7754_v13  ;;  %v7759_v22 = vld [vmem:[#allocation3 + $0x58] sm:$0xff]   ;;  %v669_v24 = vld [vmem:[%s11077_s0 + $0x60] sm:$0xff]  ;;  %v7760_v25 = vld [vmem:[#allocation3 + $0x10] sm:$0xff]  }
  0x8d   : > { %7148 = vmatmul.mubr.msk.f32.gmra.mxu0 %vm681_vm1, %v662_v7  ;;  %7201 = vmatprep.subr.bf16.mxu0 %v7755_v14  ;;  %v668_v23 = vld [vmem:[%s11077_s0 + $0x58] sm:$0xff]  ;;  %v7761_v26 = vld [vmem:[#allocation3 + $0x50] sm:$0xff]   ;;  %v670_v27 = vld [vmem:[%s11077_s0 + $0x68] sm:$0xff] }
  0x8e   : > { %7150 = vmatprep.mubr.msk.f32.mxu0 %vm681_vm1, %v663_v9  ;;  %v671_v28 = vld [vmem:[%s11077_s0 + $0x70] sm:$0xff]  ;;  %v672_v29 = vld [vmem:[%s11077_s0 + $0x78] sm:$0xff]  ;;  %v7762_v30 = vld [vmem:[#allocation3 + $0x8] sm:$0xff]  }
  0x8f   : > { %7170 = vmatpush3.bf16.msra.mxu1 %v7754_v13  ;;  %v7763_v31 = vld [vmem:[#allocation3 + $0x48] sm:$0xff]   ;;  %v7764_v32 = vld [vmem:[#allocation3] sm:$0xff]   ;;  %v7766_v34 = vld [vmem:[#allocation3 + $0xb8] sm:$0xff]  }
  0x90   : > { %7202 = vmatpush3.bf16.msra.mxu0 %v7755_v14  ;;  %7171 = vmatprep.subr.bf16.mxu1 %v7756_v18  ;;  %v7765_v33 = vld [vmem:[#allocation3 + $0x40] sm:$0xff]   ;;  %v7767_v48 = vld [vmem:[#allocation3 + $0xb0] sm:$0xff]   ;;  %v7768_v54 = vld [vmem:[#allocation3 + $0xa8] sm:$0xff]  }
  0x91   : > { %7151 = vmatmul.mubr.msk.f32.gmra.mxu0 %vm681_vm1, %v664_v15  ;;  %7203 = vmatprep.subr.bf16.mxu0 %v7757_v20  ;;  %v9012_v35 = vld [vmem:[%s11079_s2] ss:$0 sm:$0xff]  ;;  %v7770_v2 = vld [vmem:[#allocation3 + $0x98] sm:$0xff]   ;;  %v7771_v8 = vld [vmem:[#allocation3 + $0x90] sm:$0xff]  }
  0x92   : > { %7153 = vmatprep.mubr.msk.f32.mxu0 %vm681_vm1, %v665_v16  ;;  %v7769_v60 = vld [vmem:[#allocation3 + $0xa0] sm:$0xff]   ;;  %v7772_v14 = vld [vmem:[#allocation3 + $0x88] sm:$0xff]  }
  0x93   : > { %7172 = vmatpush3.bf16.msra.mxu1 %v7756_v18  ;;  %v7773_v18 = vld [vmem:[#allocation3 + $0x80] sm:$0xff]  }
  0x94   : > { %7204 = vmatpush3.bf16.msra.mxu0 %v7757_v20  ;;  %7173 = vmatprep.subr.bf16.mxu1 %v7758_v21  ;;  %v9058_v20 = vld [vmem:[%s11081_s4 + $0x1] ss:$0 sm:$0xff] }
  0x95   : > { %7154 = vmatmul.mubr.msk.f32.gmra.mxu0 %vm681_vm1, %v666_v17  ;;  %7205 = vmatprep.subr.bf16.mxu0 %v7759_v22 }
  0x96   : > { %7156 = vmatprep.mubr.msk.f32.mxu0 %vm681_vm1, %v667_v19  ;;  %v9053_v19 = vld [vmem:[%s11081_s4] ss:$0 sm:$0xff] }
  0x97   : > { %7174 = vmatpush3.bf16.msra.mxu1 %v7758_v21 }
  0x98   : > { %7206 = vmatpush3.bf16.msra.mxu0 %v7759_v22  ;;  %7175 = vmatprep.subr.bf16.mxu1 %v7760_v25 }
  0x99   : > { %7157 = vmatmul.mubr.msk.f32.gmra.mxu0 %vm681_vm1, %v668_v23  ;;  %7207 = vmatprep.subr.bf16.mxu0 %v7761_v26 }
  0x9a   : > { %7159 = vmatprep.mubr.msk.f32.mxu0 %vm681_vm1, %v669_v24 }
  0x9b   : > { %7176 = vmatpush3.bf16.msra.mxu1 %v7760_v25 }
  0x9c   : > { %7208 = vmatpush3.bf16.msra.mxu0 %v7761_v26  ;;  %7177 = vmatprep.subr.bf16.mxu1 %v7762_v30 }
  0x9d   : > { %7160 = vmatmul.mubr.msk.f32.gmra.mxu0 %vm681_vm1, %v670_v27  ;;  %7209 = vmatprep.subr.bf16.mxu0 %v7763_v31 }
  0x9e   : > { %7162 = vmatprep.mubr.msk.f32.mxu0 %vm681_vm1, %v671_v28 }
  0x9f   : > { %7178 = vmatpush3.bf16.msra.mxu1 %v7762_v30 }
  0xa0   : > { %7210 = vmatpush3.bf16.msra.mxu0 %v7763_v31  ;;  %7179 = vmatprep.subr.bf16.mxu1 %v7764_v32 }
  0xa1   : > { %7163 = vmatmul.mubr.msk.f32.gmra.mxu0 %vm681_vm1, %v672_v29  ;;  %7211 = vmatprep.subr.bf16.mxu0 %v7765_v33 }
  0xa3   : > { %7180 = vmatpush3.bf16.msra.mxu1 %v7764_v32 }
  0xa4   : > { %7212 = vmatpush3.bf16.msra.mxu0 %v7765_v33  ;;  %7645 = vmatprep.subr.bf16.mxu1 %v7766_v34 }
  0xa5   : > { %7229 = vmatprep.subr.bf16.mxu0 %v7766_v34 }
 0x145   : > { %v7143_v36 = vpop.f32.mrf.mxu0 }
 0x146   : > { %v806_v37 = vadd.f32 %v7143_v36, %v9012_v35 }
 0x147   : > { %v800_v38 = vpop.f32.mrf.mxu0 }
 0x148   : > { %880 = vst [vmem:[#allocation9 + $0x8] sm:$0xff] %v806_v37  ;;  %v801_v39 = vadd.f32 %v9012_v35, %v800_v38 }
 0x149   : > { %v7146_v40 = vpop.f32.mrf.mxu0 }
 0x14a   : > { %879 = vst [vmem:[#allocation9] sm:$0xff] %v801_v39  ;;  %v9016_v41 = vpack.c.bf16 %v806_v37, %v801_v39  ;;  %v816_v42 = vadd.f32 %v7146_v40, %v9012_v35 }
 0x14b   : > { %v810_v43 = vpop.f32.mrf.mxu0 }
 0x14c   : > { %882 = vst [vmem:[#allocation9 + $0x18] sm:$0xff] %v816_v42  ;;  %v811_v44 = vadd.f32 %v9012_v35, %v810_v43  ;;  %7181 = vmatprep.mubr.bf16.mxu1 %v9016_v41  ;;  %7213 = vmatprep.mubr.bf16.mxu0 %v9016_v41 }
 0x14d   : > { %v7149_v45 = vpop.f32.mrf.mxu0 }
 0x14e   : > { %881 = vst [vmem:[#allocation9 + $0x10] sm:$0xff] %v811_v44  ;;  %v9022_v46 = vpack.c.bf16 %v816_v42, %v811_v44  ;;  %v826_v47 = vadd.f32 %v7149_v45, %v9012_v35 }
 0x14f   : > { %v820_v49 = vpop.f32.mrf.mxu0 }
 0x150   : > { %884 = vst [vmem:[#allocation9 + $0x28] sm:$0xff] %v826_v47  ;;  %v821_v50 = vadd.f32 %v9012_v35, %v820_v49  ;;  %7182 = vmatmul.mubr.bf16.vlgmr.msra.gmra.mxu1 %v9022_v46  ;;  %7214 = vmatmul.mubr.bf16.vlgmr.msra.gmra.mxu0 %v9022_v46 }
 0x151   : > { %7653 = vmatpush3.bf16.msra.mxu1 %v7766_v34  ;;  %v7152_v51 = vpop.f32.mrf.mxu0  ;;  %7230 = vmatpush3.bf16.msra.mxu0 %v7766_v34 }
 0x152   : > { %883 = vst [vmem:[#allocation9 + $0x20] sm:$0xff] %v821_v50  ;;  %v9028_v52 = vpack.c.bf16 %v826_v47, %v821_v50  ;;  %v836_v53 = vadd.f32 %v7152_v51, %v9012_v35  ;;  %7646 = vmatprep.subr.bf16.mxu1 %v7767_v48  ;;  %7231 = vmatprep.subr.bf16.mxu0 %v7767_v48 }
 0x153   : > { %v830_v55 = vpop.f32.mrf.mxu0 }
 0x154   : > { %886 = vst [vmem:[#allocation9 + $0x38] sm:$0xff] %v836_v53  ;;  %v831_v56 = vadd.f32 %v9012_v35, %v830_v55  ;;  %7185 = vmatprep.mubr.bf16.mxu1 %v9028_v52  ;;  %7217 = vmatprep.mubr.bf16.mxu0 %v9028_v52 }
 0x155   : > { %7654 = vmatpush3.bf16.msra.mxu1 %v7767_v48  ;;  %v7155_v57 = vpop.f32.mrf.mxu0  ;;  %7232 = vmatpush3.bf16.msra.mxu0 %v7767_v48 }
 0x156   : > { %885 = vst [vmem:[#allocation9 + $0x30] sm:$0xff] %v831_v56  ;;  %v9034_v58 = vpack.c.bf16 %v836_v53, %v831_v56  ;;  %v846_v59 = vadd.f32 %v7155_v57, %v9012_v35  ;;  %7647 = vmatprep.subr.bf16.mxu1 %v7768_v54  ;;  %7233 = vmatprep.subr.bf16.mxu0 %v7768_v54 }
 0x157   : > { %v840_v61 = vpop.f32.mrf.mxu0 }
 0x158   : > { %888 = vst [vmem:[#allocation9 + $0x48] sm:$0xff] %v846_v59  ;;  %v841_v62 = vadd.f32 %v9012_v35, %v840_v61  ;;  %7186 = vmatmul.mubr.bf16.gmra.mxu1 %v9034_v58  ;;  %7218 = vmatmul.mubr.bf16.gmra.mxu0 %v9034_v58 }
 0x159   : > { %7655 = vmatpush3.bf16.msra.mxu1 %v7768_v54  ;;  %v7158_v63 = vpop.f32.mrf.mxu0  ;;  %7234 = vmatpush3.bf16.msra.mxu0 %v7768_v54 }
 0x15a   : > { %887 = vst [vmem:[#allocation9 + $0x40] sm:$0xff] %v841_v62  ;;  %v899_v0 = vpack.c.bf16 %v846_v59, %v841_v62  ;;  %v856_v1 = vadd.f32 %v7158_v63, %v9012_v35  ;;  %7648 = vmatprep.subr.bf16.mxu1 %v7769_v60  ;;  %7235 = vmatprep.subr.bf16.mxu0 %v7769_v60 }
 0x15b   : > { %v850_v3 = vpop.f32.mrf.mxu0 }
 0x15c   : > { %890 = vst [vmem:[#allocation9 + $0x58] sm:$0xff] %v856_v1  ;;  %v851_v4 = vadd.f32 %v9012_v35, %v850_v3  ;;  %7189 = vmatprep.mubr.bf16.mxu1 %v899_v0  ;;  %7221 = vmatprep.mubr.bf16.mxu0 %v899_v0 }
 0x15d   : > { %7656 = vmatpush3.bf16.msra.mxu1 %v7769_v60  ;;  %v7161_v5 = vpop.f32.mrf.mxu0  ;;  %7236 = vmatpush3.bf16.msra.mxu0 %v7769_v60 }
 0x15e   : > { %889 = vst [vmem:[#allocation9 + $0x50] sm:$0xff] %v851_v4  ;;  %v900_v6 = vpack.c.bf16 %v856_v1, %v851_v4  ;;  %v866_v7 = vadd.f32 %v7161_v5, %v9012_v35  ;;  %7649 = vmatprep.subr.bf16.mxu1 %v7770_v2  ;;  %7237 = vmatprep.subr.bf16.mxu0 %v7770_v2 }
 0x15f   : > { %v860_v9 = vpop.f32.mrf.mxu0 }
 0x160   : > { %892 = vst [vmem:[#allocation9 + $0x68] sm:$0xff] %v866_v7  ;;  %v861_v10 = vadd.f32 %v9012_v35, %v860_v9  ;;  %7190 = vmatmul.mubr.bf16.gmra.mxu1 %v900_v6  ;;  %7222 = vmatmul.mubr.bf16.gmra.mxu0 %v900_v6 }
 0x161   : > { %7657 = vmatpush3.bf16.msra.mxu1 %v7770_v2  ;;  %v7164_v11 = vpop.f32.mrf.mxu0  ;;  %7238 = vmatpush3.bf16.msra.mxu0 %v7770_v2 }
 0x162   : > { %891 = vst [vmem:[#allocation9 + $0x60] sm:$0xff] %v861_v10  ;;  %v901_v12 = vpack.c.bf16 %v866_v7, %v861_v10  ;;  %v876_v13 = vadd.f32 %v7164_v11, %v9012_v35  ;;  %7650 = vmatprep.subr.bf16.mxu1 %v7771_v8  ;;  %7239 = vmatprep.subr.bf16.mxu0 %v7771_v8 }
 0x163   : > { %v870_v15 = vpop.f32.mrf.mxu0 }
 0x164   : > { %894 = vst [vmem:[#allocation9 + $0x78] sm:$0xff] %v876_v13  ;;  %v871_v16 = vadd.f32 %v9012_v35, %v870_v15  ;;  %7193 = vmatprep.mubr.bf16.mxu1 %v901_v12  ;;  %7225 = vmatprep.mubr.bf16.mxu0 %v901_v12 }
 0x165   : > { %7658 = vmatpush3.bf16.msra.mxu1 %v7771_v8  ;;  %7240 = vmatpush3.bf16.msra.mxu0 %v7771_v8 }
 0x166   : > { %893 = vst [vmem:[#allocation9 + $0x70] sm:$0xff] %v871_v16  ;;  %v902_v17 = vpack.c.bf16 %v876_v13, %v871_v16  ;;  %7651 = vmatprep.subr.bf16.mxu1 %v7772_v14  ;;  %7241 = vmatprep.subr.bf16.mxu0 %v7772_v14 }
 0x168   : > { %7194 = vmatmul.mubr.bf16.gmra.mxu1 %v902_v17  ;;  %7226 = vmatmul.mubr.bf16.gmra.mxu0 %v902_v17 }
 0x169   : > { %7659 = vmatpush3.bf16.msra.mxu1 %v7772_v14  ;;  %7242 = vmatpush3.bf16.msra.mxu0 %v7772_v14 }
 0x16a   : > { %7245 = vmatprep.mubr.bf16.mxu0 %v9016_v41  ;;  %7249 = vmatprep.mubr.bf16.mxu1 %v9028_v52 }
 0x16b   : > { %7652 = vmatprep.subr.bf16.mxu1 %v7773_v18  ;;  %7243 = vmatprep.subr.bf16.mxu0 %v7773_v18 }
 0x16d   : > { %7660 = vmatpush3.bf16.msra.mxu1 %v7773_v18  ;;  %7244 = vmatpush3.bf16.msra.mxu0 %v7773_v18 }
 0x170   : > { %7246 = vmatmul.mubr.bf16.vlgmr.msra.gmra.mxu0 %v9022_v46  ;;  %7250 = vmatmul.mubr.bf16.vlgmr.msra.gmra.mxu1 %v9034_v58 }
 0x171   : > { %7253 = vmatprep.mubr.bf16.mxu1 %v899_v0 }
 0x178   : > { %7254 = vmatmul.mubr.bf16.gmra.mxu1 %v900_v6 }
 0x179   : > { %7257 = vmatprep.mubr.bf16.mxu1 %v901_v12 }
 0x180   : > { %7258 = vmatmul.mubr.bf16.gmra.mxu1 %v902_v17 }
 0x210   : > { %v7183_v21 = vpop.f32.mrf.mxu1  ;;  %v7215_v22 = vpop.f32.mrf.mxu0 }
 0x211   : > { %v1017_v23 = vadd.f32 %v7183_v21, %v9053_v19  ;;  %v1203_v24 = vadd.f32 %v7215_v22, %v9058_v20  ;;  %v6459_v21 = vld [vmem:[%s11081_s4 + $0x2] ss:$0 sm:$0xff] }
 0x212   : > { %v1008_v25 = vpop.f32.mrf.mxu1  ;;  %v1194_v26 = vpop.f32.mrf.mxu0 }
 0x213   : > { %1073 = vst [vmem:[#allocation2 + $0x10] sm:$0xff] %v1017_v23  ;;  %1260 = vst [vmem:[#allocation2 + $0x138] sm:$0xff] %v1203_v24  ;;  %v1009_v27 = vadd.f32 %v9053_v19, %v1008_v25  ;;  %v1195_v28 = vadd.f32 %v9058_v20, %v1194_v26 }
 0x214   : > { %v7184_v29 = vpop.f32.mrf.mxu1  ;;  %v7216_v30 = vpop.f32.mrf.mxu0 }
 0x215   : > { %1071 = vst [vmem:[#allocation2 + $0xb0] sm:$0xff] %v1009_v27  ;;  %1258 = vst [vmem:[#allocation2 + $0x80] sm:$0xff] %v1195_v28  ;;  %v1020_v31 = vadd.f32 %v7184_v29, %v9053_v19  ;;  %v1206_v32 = vadd.f32 %v7216_v30, %v9058_v20 }
 0x216   : > { %v1011_v33 = vpop.f32.mrf.mxu1  ;;  %v1197_v34 = vpop.f32.mrf.mxu0 }
 0x217   : > { %1074 = vst [vmem:[#allocation2 + $0x48] sm:$0xff] %v1020_v31  ;;  %1261 = vst [vmem:[#allocation2 + $0x120] sm:$0xff] %v1206_v32  ;;  %v1012_v35 = vadd.f32 %v9053_v19, %v1011_v33  ;;  %v1198_v36 = vadd.f32 %v9058_v20, %v1197_v34 }
 0x218   : > { %v7187_v37 = vpop.f32.mrf.mxu1  ;;  %v7219_v38 = vpop.f32.mrf.mxu0 }
 0x219   : > { %1072 = vst [vmem:[#allocation2 + $0xd0] sm:$0xff] %v1012_v35  ;;  %1259 = vst [vmem:[#allocation2 + $0x130] sm:$0xff] %v1198_v36  ;;  %v1033_v39 = vadd.f32 %v7187_v37, %v9053_v19  ;;  %v1219_v40 = vadd.f32 %v7219_v38, %v9058_v20 }
 0x21a   : > { %v1024_v41 = vpop.f32.mrf.mxu1  ;;  %v1210_v42 = vpop.f32.mrf.mxu0 }
 0x21b   : > { %1077 = vst [vmem:[#allocation2 + $0x40] sm:$0xff] %v1033_v39  ;;  %1264 = vst [vmem:[#allocation2 + $0xb8] sm:$0xff] %v1219_v40  ;;  %v1025_v43 = vadd.f32 %v9053_v19, %v1024_v41  ;;  %v1211_v44 = vadd.f32 %v9058_v20, %v1210_v42 }
 0x21c   : > { %v7188_v45 = vpop.f32.mrf.mxu1  ;;  %v7220_v46 = vpop.f32.mrf.mxu0 }
 0x21d   : > { %1075 = vst [vmem:[#allocation2 + $0x160] sm:$0xff] %v1025_v43  ;;  %1262 = vst [vmem:[#allocation2 + $0xe0] sm:$0xff] %v1211_v44  ;;  %v1036_v47 = vadd.f32 %v7188_v45, %v9053_v19  ;;  %v1222_v48 = vadd.f32 %v7220_v46, %v9058_v20 }
 0x21e   : > { %v1027_v49 = vpop.f32.mrf.mxu1  ;;  %v1213_v50 = vpop.f32.mrf.mxu0 }
 0x21f   : > { %1078 = vst [vmem:[#allocation2 + $0x178] sm:$0xff] %v1036_v47  ;;  %1265 = vst [vmem:[#allocation2 + $0x168] sm:$0xff] %v1222_v48  ;;  %v1028_v51 = vadd.f32 %v9053_v19, %v1027_v49  ;;  %v1214_v52 = vadd.f32 %v9058_v20, %v1213_v50 }
 0x220   : > { %v7191_v53 = vpop.f32.mrf.mxu1  ;;  %v7223_v54 = vpop.f32.mrf.mxu0 }
 0x221   : > { %1076 = vst [vmem:[#allocation2 + $0x128] sm:$0xff] %v1028_v51  ;;  %1263 = vst [vmem:[#allocation2 + $0xa8] sm:$0xff] %v1214_v52  ;;  %v1049_v55 = vadd.f32 %v7191_v53, %v9053_v19  ;;  %v1235_v56 = vadd.f32 %v7223_v54, %v9058_v20 }
 0x222   : > { %v1040_v57 = vpop.f32.mrf.mxu1  ;;  %v1226_v58 = vpop.f32.mrf.mxu0 }
 0x223   : > { %1081 = vst [vmem:[#allocation2 + $0x90] sm:$0xff] %v1049_v55  ;;  %1268 = vst [vmem:[#allocation2 + $0x20] sm:$0xff] %v1235_v56  ;;  %v1041_v59 = vadd.f32 %v9053_v19, %v1040_v57  ;;  %v1227_v60 = vadd.f32 %v9058_v20, %v1226_v58 }
 0x224   : > { %v7192_v61 = vpop.f32.mrf.mxu1  ;;  %v7224_v62 = vpop.f32.mrf.mxu0 }
 0x225   : > { %1079 = vst [vmem:[#allocation2 + $0x108] sm:$0xff] %v1041_v59  ;;  %1266 = vst [vmem:[#allocation2 + $0xe8] sm:$0xff] %v1227_v60  ;;  %v1052_v63 = vadd.f32 %v7192_v61, %v9053_v19  ;;  %v1238_v0 = vadd.f32 %v7224_v62, %v9058_v20 }
 0x226   : > { %v1043_v1 = vpop.f32.mrf.mxu1  ;;  %v1229_v2 = vpop.f32.mrf.mxu0 }
 0x227   : > { %1082 = vst [vmem:[#allocation2 + $0x118] sm:$0xff] %v1052_v63  ;;  %1269 = vst [vmem:[#allocation2 + $0x88] sm:$0xff] %v1238_v0  ;;  %v1044_v3 = vadd.f32 %v9053_v19, %v1043_v1  ;;  %v1230_v4 = vadd.f32 %v9058_v20, %v1229_v2 }
 0x228   : > { %v7195_v5 = vpop.f32.mrf.mxu1  ;;  %v7227_v6 = vpop.f32.mrf.mxu0 }
 0x229   : > { %1080 = vst [vmem:[#allocation2 + $0x110] sm:$0xff] %v1044_v3  ;;  %1267 = vst [vmem:[#allocation2 + $0xf8] sm:$0xff] %v1230_v4  ;;  %v1065_v7 = vadd.f32 %v7195_v5, %v9053_v19  ;;  %v1251_v8 = vadd.f32 %v7227_v6, %v9058_v20 }
 0x22a   : > { %v1056_v9 = vpop.f32.mrf.mxu1  ;;  %v1242_v10 = vpop.f32.mrf.mxu0 }
 0x22b   : > { %1085 = vst [vmem:[#allocation2 + $0x58] sm:$0xff] %v1065_v7  ;;  %1272 = vst [vmem:[#allocation2 + $0xf0] sm:$0xff] %v1251_v8  ;;  %v1057_v11 = vadd.f32 %v9053_v19, %v1056_v9  ;;  %v1243_v12 = vadd.f32 %v9058_v20, %v1242_v10 }
 0x22c   : > { %v7196_v13 = vpop.f32.mrf.mxu1  ;;  %v7228_v14 = vpop.f32.mrf.mxu0 }
 0x22d   : > { %1083 = vst [vmem:[#allocation2 + $0x148] sm:$0xff] %v1057_v11  ;;  %1270 = vst [vmem:[#allocation2 + $0xa0] sm:$0xff] %v1243_v12  ;;  %v1068_v15 = vadd.f32 %v7196_v13, %v9053_v19  ;;  %v1254_v16 = vadd.f32 %v7228_v14, %v9058_v20 }
 0x22e   : > { %v1059_v17 = vpop.f32.mrf.mxu1  ;;  %v1245_v18 = vpop.f32.mrf.mxu0 }
 0x22f   : > { %1086 = vst [vmem:[#allocation2 + $0xd8] sm:$0xff] %v1068_v15  ;;  %1273 = vst [vmem:[#allocation2 + $0x140] sm:$0xff] %v1254_v16  ;;  %v1060_v22 = vadd.f32 %v9053_v19, %v1059_v17  ;;  %v1246_v23 = vadd.f32 %v9058_v20, %v1245_v18 }
 0x230   : > { %v7247_v24 = vpop.f32.mrf.mxu0  ;;  %v7251_v25 = vpop.f32.mrf.mxu1 }
 0x231   : > { %1084 = vst [vmem:[#allocation2 + $0x100] sm:$0xff] %v1060_v22  ;;  %1271 = vst [vmem:[#allocation2 + $0x170] sm:$0xff] %v1246_v23  ;;  %v1390_v26 = vadd.f32 %v7247_v24, %v6459_v21  ;;  %v1406_v27 = vadd.f32 %v7251_v25, %v6459_v21 }
 0x232   : > { %v1381_v28 = vpop.f32.mrf.mxu0  ;;  %v1397_v29 = vpop.f32.mrf.mxu1 }
 0x233   : > { %1447 = vst [vmem:[#allocation2 + $0x28] sm:$0xff] %v1390_v26  ;;  %1451 = vst [vmem:[#allocation2 + $0x98] sm:$0xff] %v1406_v27  ;;  %v1382_v30 = vadd.f32 %v6459_v21, %v1381_v28  ;;  %v1398_v31 = vadd.f32 %v6459_v21, %v1397_v29 }
 0x234   : > { %v7248_v32 = vpop.f32.mrf.mxu0  ;;  %v7252_v33 = vpop.f32.mrf.mxu1 }
 0x235   : > { %1445 = vst [vmem:[#allocation2 + $0x60] sm:$0xff] %v1382_v30  ;;  %1449 = vst [vmem:[#allocation2 + $0xc0] sm:$0xff] %v1398_v31  ;;  %v1393_v34 = vadd.f32 %v7248_v32, %v6459_v21  ;;  %v1409_v19 = vadd.f32 %v7252_v33, %v6459_v21 }
 0x236   : > { %v1384_v35 = vpop.f32.mrf.mxu0  ;;  %v1400_v20 = vpop.f32.mrf.mxu1 }
 0x237   : > { %1448 = vst [vmem:[#allocation2 + $0x38] sm:$0xff] %v1393_v34  ;;  %1452 = vst [vmem:[#allocation2 + $0x8] sm:$0xff] %v1409_v19  ;;  %v1385_v36 = vadd.f32 %v6459_v21, %v1384_v35  ;;  %v1401_v37 = vadd.f32 %v6459_v21, %v1400_v20 }
 0x238   : > { %v7255_v38 = vpop.f32.mrf.mxu1 }
 0x239   : > { %1446 = vst [vmem:[#allocation2 + $0xc8] sm:$0xff] %v1385_v36  ;;  %1450 = vst [vmem:[#allocation2 + $0x18] sm:$0xff] %v1401_v37  ;;  %v1422_v39 = vadd.f32 %v7255_v38, %v6459_v21 }
 0x23a   : > { %v1413_v40 = vpop.f32.mrf.mxu1 }
 0x23b   : > { %1455 = vst [vmem:[#allocation2 + $0x50] sm:$0xff] %v1422_v39  ;;  %v1414_v41 = vadd.f32 %v6459_v21, %v1413_v40 }
 0x23c   : > { %v7256_v42 = vpop.f32.mrf.mxu1 }
 0x23d   : > { %1453 = vst [vmem:[#allocation2] sm:$0xff] %v1414_v41  ;;  %v1425_v43 = vadd.f32 %v7256_v42, %v6459_v21 }
 0x23e   : > { %v1416_v44 = vpop.f32.mrf.mxu1 }
 0x23f   : > { %1456 = vst [vmem:[#allocation2 + $0x68] sm:$0xff] %v1425_v43  ;;  %v1417_v45 = vadd.f32 %v6459_v21, %v1416_v44 }
 0x240   : > { %v7259_v46 = vpop.f32.mrf.mxu1 }
 0x241   : > { %1454 = vst [vmem:[#allocation2 + $0x78] sm:$0xff] %v1417_v45  ;;  %v1438_v47 = vadd.f32 %v7259_v46, %v6459_v21 }
 0x242   : > { %v1429_v48 = vpop.f32.mrf.mxu1 }
 0x243   : > { %1459 = vst [vmem:[#allocation2 + $0x158] sm:$0xff] %v1438_v47  ;;  %v1430_v49 = vadd.f32 %v6459_v21, %v1429_v48 }
 0x244   : > { %v7260_v50 = vpop.f32.mrf.mxu1 }
 0x245   : > { %1457 = vst [vmem:[#allocation2 + $0x70] sm:$0xff] %v1430_v49  ;;  %v1441_v51 = vadd.f32 %v7260_v50, %v6459_v21 }
 0x246   : > { %v1432_v52 = vpop.f32.mrf.mxu1 }
 0x247   : > { %1460 = vst [vmem:[#allocation2 + $0x150] sm:$0xff] %v1441_v51  ;;  %v1433_v53 = vadd.f32 %v6459_v21, %v1432_v52 }
 0x249   : > { %1458 = vst [vmem:[#allocation2 + $0x30] sm:$0xff] %v1433_v53 }
 0x24a PF: > { %v7776_v54 = vld [vmem:[#allocation6 + $0x38] sm:$0xff]   ;;  %v7777_v55 = vld [vmem:[#allocation6 + $0x30] sm:$0xff]   ;;  %v7778_v56 = vld [vmem:[#allocation6 + $0x28] sm:$0xff]   ;;  %s11164_s23 = sld [smem:[#allocation57_spill]]  ;;  %p7696_p11 = scmp.eq.s32.totalorder %s8802_s29, 2 }
 0x24b   : > { %7261 = vmatprep.subr.bf16.mxu0 %v7776_v54  ;;  %v7779_v57 = vld [vmem:[#allocation6 + $0x20] sm:$0xff]   ;;  %v1462_v59 = vld [vmem:[#allocation10 + $0x8] sm:$0xff]  ;;  %v7780_v61 = vld [vmem:[#allocation6 + $0x18] sm:$0xff]   ;;  %s11168_s28 = sld [smem:[#allocation56_spill]] }
 0x24c   : > { %7262 = vmatpush3.bf16.msra.mxu0 %v7776_v54  ;;  %v1461_v58 = vld [vmem:[#allocation10] sm:$0xff]  ;;  %v7781_v62 = vld [vmem:[#allocation6 + $0x10] sm:$0xff]   ;;  %v7782_v63 = vld [vmem:[#allocation6 + $0x8] sm:$0xff]   ;;  %s11180_s7 = sld [smem:[#allocation58_spill]] }
 0x24d   : > { %7263 = vmatprep.subr.bf16.mxu0 %v7777_v55  ;;  %v9095_v60 = vpack.c.bf16 %v1462_v59, %v1461_v58  ;;  %v7783_v0 = vld [vmem:[#allocation6] sm:$0xff]   ;;  %v1463_v1 = vld [vmem:[#allocation10 + $0x10] sm:$0xff]  ;;  %v1464_v2 = vld [vmem:[#allocation10 + $0x18] sm:$0xff] }
 0x24e   : > { %v1465_v3 = vld [vmem:[#allocation10 + $0x20] sm:$0xff]  ;;  %v1466_v4 = vld [vmem:[#allocation10 + $0x28] sm:$0xff]  ;;  %v9098_v5 = vpack.c.bf16 %v1464_v2, %v1463_v1  ;;  %v1467_v7 = vld [vmem:[#allocation10 + $0x30] sm:$0xff] }
 0x24f   : > { %11156 = vst [vmem:[#allocation17_spill] sm:$0xff] %v9095_v60  ;;  %7277 = vmatprep.mubr.bf16.mxu0 %v9095_v60  ;;  %v9100_v6 = vpack.c.bf16 %v1466_v4, %v1465_v3  ;;  %v1468_v8 = vld [vmem:[#allocation10 + $0x38] sm:$0xff]  ;;  %v1469_v9 = vld [vmem:[#allocation10 + $0x40] sm:$0xff]  ;;  %v1470_v10 = vld [vmem:[#allocation10 + $0x48] sm:$0xff] }
 0x250   : > { %7264 = vmatpush3.bf16.msra.mxu0 %v7777_v55  ;;  %11157 = vst [vmem:[#allocation18_spill] sm:$0xff] %v9098_v5  ;;  %v9104_v11 = vpack.c.bf16 %v1468_v8, %v1467_v7  ;;  %v9106_v12 = vpack.c.bf16 %v1470_v10, %v1469_v9  ;;  %v1471_v13 = vld [vmem:[#allocation10 + $0x50] sm:$0xff]  ;;  %v1472_v14 = vld [vmem:[#allocation10 + $0x58] sm:$0xff]  ;;  %v1473_v15 = vld [vmem:[#allocation10 + $0x60] sm:$0xff] }
 0x251   : > { %7265 = vmatprep.subr.bf16.mxu0 %v7778_v56  ;;  %11158 = vst [vmem:[#allocation19_spill] sm:$0xff] %v9100_v6  ;;  %v1474_v16 = vld [vmem:[#allocation10 + $0x68] sm:$0xff]  ;;  %v9110_v17 = vpack.c.bf16 %v1472_v14, %v1471_v13  ;;  %v1475_v21 = vld [vmem:[#allocation10 + $0x70] sm:$0xff]  ;;  %v1476_v22 = vld [vmem:[#allocation10 + $0x78] sm:$0xff]  ;;  %s11169_s12 = smov %s11168_s28 }
 0x252   : > { %11159 = vst [vmem:[#allocation20_spill] sm:$0xff] %v9104_v11  ;;  %11160 = vst [vmem:[#allocation21_spill] sm:$0xff] %v9106_v12  ;;  %v9112_v18 = vpack.c.bf16 %v1474_v16, %v1473_v15  ;;  %v9116_v23 = vpack.c.bf16 %v1476_v22, %v1475_v21  ;;  %v9120_v24 = vld [vmem:[%s8924_s21] sm:$0xff]   ;;  %v7792_v25 = vld [vmem:[%s11083_s6 + $0xa8] ss:$12 sps:$4 sm:$0xff]  }
 0x253   : > { %11161 = vst [vmem:[#allocation22_spill] sm:$0xff] %v9110_v17  ;;  %7309 = vmatprep.mubr.bf16.mxu1 %v9120_v24  ;;  %v7794_v26 = vld [vmem:[%s11083_s6 + $0xac] ss:$12 sps:$4 sm:$0xff]   ;;  %v7798_v27 = vld [vmem:[%s11083_s6 + $0x94] ss:$12 sps:$4 sm:$0xff]  }
 0x254   : > { %7266 = vmatpush3.bf16.msra.mxu0 %v7778_v56  ;;  %11162 = vst [vmem:[#allocation23_spill] sm:$0xff] %v9112_v18  ;;  %11163 = vst [vmem:[#allocation24_spill] sm:$0xff] %v9116_v23  ;;  %v7796_v28 = vld [vmem:[%s11083_s6 + $0x90] ss:$12 sps:$4 sm:$0xff]   ;;  %v7800_v30 = vld [vmem:[%s11083_s6 + $0x78] ss:$12 sps:$4 sm:$0xff]  }
 0x255   : > { %7267 = vmatprep.subr.bf16.mxu0 %v7779_v57  ;;  %v7802_v29 = vld [vmem:[%s11083_s6 + $0x7c] ss:$12 sps:$4 sm:$0xff]   ;;  %v7806_v31 = vld [vmem:[%s11083_s6 + $0x64] ss:$12 sps:$4 sm:$0xff]   ;;  %v7804_v32 = vld [vmem:[%s11083_s6 + $0x60] ss:$12 sps:$4 sm:$0xff]  }
 0x256   : > { %v7810_v33 = vld [vmem:[%s11083_s6 + $0x4c] ss:$12 sps:$4 sm:$0xff]   ;;  %v7808_v34 = vld [vmem:[%s11083_s6 + $0x48] ss:$12 sps:$4 sm:$0xff]   ;;  %v7812_v35 = vld [vmem:[%s11083_s6 + $0x30] ss:$12 sps:$4 sm:$0xff]  }
 0x257   : > { %v7814_v19 = vld [vmem:[%s11083_s6 + $0x34] ss:$12 sps:$4 sm:$0xff]   ;;  %v1563_v48 = vld [vmem:[#allocation2 + $0x58] sm:$0xff]  ;;  %v1561_v51 = vld [vmem:[#allocation2 + $0x148] sm:$0xff] }
 0x258   : > { %7268 = vmatpush3.bf16.msra.mxu0 %v7779_v57  ;;  %v1564_v50 = vld [vmem:[#allocation2 + $0xd8] sm:$0xff]  ;;  %v1562_v53 = vld [vmem:[#allocation2 + $0x100] sm:$0xff]  ;;  %v1558_v1 = vld [vmem:[#allocation2 + $0x110] sm:$0xff] }
 0x259   : > { %7269 = vmatprep.subr.bf16.mxu0 %v7780_v61  ;;  %v1560_v56 = vld [vmem:[#allocation2 + $0x118] sm:$0xff]  ;;  %v1557_v3 = vld [vmem:[#allocation2 + $0x108] sm:$0xff]  ;;  %v1555_v10 = vld [vmem:[#allocation2 + $0x40] sm:$0xff] }
 0x25a   : > { %v1556_v8 = vld [vmem:[#allocation2 + $0x178] sm:$0xff]  ;;  %v1554_v15 = vld [vmem:[#allocation2 + $0x128] sm:$0xff]  ;;  %v1553_v21 = vld [vmem:[#allocation2 + $0x160] sm:$0xff] }
 0x25c   : > { %7270 = vmatpush3.bf16.msra.mxu0 %v7780_v61 }
 0x25d   : > { %7271 = vmatprep.subr.bf16.mxu0 %v7781_v62 }
 0x260   : > { %7272 = vmatpush3.bf16.msra.mxu0 %v7781_v62  ;;  %v1559_v62 = vld [vmem:[#allocation2 + $0x90] sm:$0xff] }
 0x261   : > { %7273 = vmatprep.subr.bf16.mxu0 %v7782_v63 }
 0x264   : > { %7274 = vmatpush3.bf16.msra.mxu0 %v7782_v63 }
 0x265   : > { %7275 = vmatprep.subr.bf16.mxu0 %v7783_v0 }
 0x268   : > { %7276 = vmatpush3.bf16.msra.mxu0 %v7783_v0 }
 0x269   : > { %2080 = vmatprep.subr.bf16.mxu0 %v7794_v26  ;;  %v1552_v26 = vld [vmem:[#allocation2 + $0x48] sm:$0xff] }
 0x26b   : > { %7278 = vmatmul.mubr.bf16.vlgmr.msra.gmra.mxu0 %v9098_v5 }
 0x26c   : > { %7281 = vmatprep.mubr.bf16.mxu0 %v9100_v6  ;;  %2081 = vmatpush1.bf16.msra.mxu0 %v7792_v25 }
 0x26d   : > { %2082 = vmatprep.subr.bf16.mxu0 %v7798_v27 }
 0x270   : > { %2083 = vmatpush1.bf16.msra.mxu0 %v7796_v28  ;;  %v1551_v28 = vld [vmem:[#allocation2 + $0x10] sm:$0xff] }
 0x271   : > { %2084 = vmatprep.subr.bf16.mxu0 %v7802_v29 }
 0x273   : > { %7282 = vmatmul.mubr.bf16.gmra.mxu0 %v9104_v11 }
 0x274   : > { %7285 = vmatprep.mubr.bf16.mxu0 %v9106_v12  ;;  %2085 = vmatpush1.bf16.msra.mxu0 %v7800_v30 }
 0x275   : > { %2086 = vmatprep.subr.bf16.mxu0 %v7806_v31  ;;  %v1550_v31 = vld [vmem:[#allocation2 + $0xd0] sm:$0xff] }
 0x278   : > { %2087 = vmatpush1.bf16.msra.mxu0 %v7804_v32 }
 0x279   : > { %2088 = vmatprep.subr.bf16.mxu0 %v7810_v33  ;;  %v1549_v33 = vld [vmem:[#allocation2 + $0xb0] sm:$0xff] }
 0x27b   : > { %7286 = vmatmul.mubr.bf16.gmra.mxu0 %v9110_v17 }
 0x27c   : > { %7289 = vmatprep.mubr.bf16.mxu0 %v9112_v18  ;;  %2089 = vmatpush1.bf16.msra.mxu0 %v7808_v34 }
 0x27d   : > { %2090 = vmatprep.subr.bf16.mxu0 %v7814_v19 }
 0x280   : > { %2091 = vmatpush1.bf16.msra.mxu0 %v7812_v35 }
 0x283   : > { %7290 = vmatmul.mubr.bf16.gmra.mxu0 %v9116_v23 }
 0x32b   : > { %v7279_v20 = vpop.f32.mrf.mxu0 }
 0x32c   : > { %v1728_v32 = vadd.f32 %v7279_v20, %v1551_v28  ;;  %v7786_v20 = vld [vmem:[%s8924_s21 + $0x10] sm:$0xff]  }
 0x32d   : > { %v9159_v36 = vpop.f32.mrf.mxu0 }
 0x32e   : > { %v1726_v35 = vadd.f32 %v9159_v36, %v1549_v33  ;;  %v7803_v36 = vld [vmem:[%s11083_s6 + $0x80] ss:$12 sps:$4 sm:$0xff]  }
 0x32f   : > { %v7280_v37 = vpop.f32.mrf.mxu0 }
 0x330   : > { %v1729_v29 = vadd.f32 %v7280_v37, %v1552_v26  ;;  %v7795_v37 = vld [vmem:[%s11083_s6 + $0xb0] ss:$12 sps:$4 sm:$0xff]  }
 0x331   : > { %v1666_v38 = vpop.f32.mrf.mxu0 }
 0x332   : > { %v1743_v34 = vpack.c.bf16 %v1729_v29, %v1728_v32  ;;  %v1727_v19 = vadd.f32 %v1666_v38, %v1550_v31  ;;  %v7799_v38 = vld [vmem:[%s11083_s6 + $0x98] ss:$12 sps:$4 sm:$0xff]   ;;  %v7851_v32 = vld [vmem:[%s11164_s23 + $0x68] ss:$12 sps:$4 sm:$0xff]  }
 0x333   : > { %v7283_v39 = vpop.f32.mrf.mxu0  ;;  %v7830_v29 = vld [vmem:[%s11164_s23 + $0x78] ss:$12 sps:$4 sm:$0xff]  }
 0x334   : > { %v1732_v16 = vadd.f32 %v7283_v39, %v1555_v10  ;;  %v1742_v39 = vpack.c.bf16 %v1727_v19, %v1726_v35  ;;  %v7849_v10 = vld [vmem:[%s11164_s23 + $0x98] ss:$12 sps:$4 sm:$0xff]   ;;  %v7833_v35 = vld [vmem:[%s11164_s23 + $0x60] ss:$12 sps:$4 sm:$0xff]  }
 0x335   : > { %v1679_v40 = vpop.f32.mrf.mxu0  ;;  %v7835_v31 = vld [vmem:[%s11164_s23 + $0x64] ss:$12 sps:$4 sm:$0xff]   ;;  %v1508_v19 = vld [vmem:[%s8936_s30 + $0x38] sm:$0xff] }
 0x336   : > { %v1730_v27 = vadd.f32 %v1679_v40, %v1553_v21  ;;  %v7785_v40 = vld [vmem:[%s8924_s21 + $0x8] sm:$0xff]  }
 0x337   : > { %v7284_v41 = vpop.f32.mrf.mxu0 }
 0x338   : > { %v1733_v13 = vadd.f32 %v7284_v41, %v1556_v8  ;;  %v7787_v41 = vld [vmem:[%s8924_s21 + $0x18] sm:$0xff]  }
 0x339   : > { %v1682_v42 = vpop.f32.mrf.mxu0 }
 0x33a   : > { %v1745_v22 = vpack.c.bf16 %v1733_v13, %v1732_v16  ;;  %v1731_v25 = vadd.f32 %v1682_v42, %v1554_v15  ;;  %v7788_v42 = vld [vmem:[%s8924_s21 + $0x20] sm:$0xff]   ;;  %v1506_v15 = vld [vmem:[%s8936_s30 + $0x28] sm:$0xff]  ;;  %v7827_v16 = vld [vmem:[%s11164_s23 + $0x90] ss:$12 sps:$4 sm:$0xff]  }
 0x33b   : > { %v7287_v43 = vpop.f32.mrf.mxu0 }
 0x33c   : > { %v1736_v2 = vadd.f32 %v7287_v43, %v1559_v62  ;;  %v1744_v30 = vpack.c.bf16 %v1731_v25, %v1730_v27  ;;  %v7807_v43 = vld [vmem:[%s11083_s6 + $0x68] ss:$12 sps:$4 sm:$0xff]   ;;  %v7850_v25 = vld [vmem:[%s11164_s23 + $0x80] ss:$12 sps:$4 sm:$0xff]  }
 0x33d   : > { %v1695_v44 = vpop.f32.mrf.mxu0 }
 0x33e   : > { %v1734_v9 = vadd.f32 %v1695_v44, %v1557_v3  ;;  %v7811_v44 = vld [vmem:[%s11083_s6 + $0x50] ss:$12 sps:$4 sm:$0xff]  }
 0x33f   : > { %v7288_v45 = vpop.f32.mrf.mxu0 }
 0x340   : > { %v1737_v63 = vadd.f32 %v7288_v45, %v1560_v56  ;;  %v7789_v45 = vld [vmem:[%s8924_s21 + $0x28] sm:$0xff]  }
 0x341   : > { %v1698_v46 = vpop.f32.mrf.mxu0  ;;  %v7826_v56 = vld [vmem:[%s11164_s23 + $0xac] ss:$12 sps:$4 sm:$0xff]  }
 0x342   : > { %v1747_v4 = vpack.c.bf16 %v1737_v63, %v1736_v2  ;;  %v1735_v7 = vadd.f32 %v1698_v46, %v1558_v1  ;;  %v7790_v46 = vld [vmem:[%s8924_s21 + $0x30] sm:$0xff]   ;;  %v1502_v63 = vld [vmem:[%s8936_s30 + $0x8] sm:$0xff] }
 0x343   : > { %v7291_v47 = vpop.f32.mrf.mxu0 }
 0x344   : > { %v1740_v54 = vadd.f32 %v7291_v47, %v1563_v48  ;;  %v1746_v14 = vpack.c.bf16 %v1735_v7, %v1734_v9  ;;  %v7815_v47 = vld [vmem:[%s11083_s6 + $0x38] ss:$12 sps:$4 sm:$0xff]   ;;  %v7829_v9 = vld [vmem:[%s11164_s23 + $0x94] ss:$12 sps:$4 sm:$0xff]  }
 0x345   : > { %v1711_v49 = vpop.f32.mrf.mxu0  ;;  %v7791_v48 = vld [vmem:[%s8924_s21 + $0x38] sm:$0xff]  }
 0x346   : > { %v1738_v58 = vadd.f32 %v1711_v49, %v1561_v51  ;;  %v7818_v49 = vld [vmem:[%s11083_s6 + $0x1c] ss:$12 sps:$4 sm:$0xff]   ;;  %v7819_v51 = vld [vmem:[%s11083_s6 + $0x20] ss:$12 sps:$4 sm:$0xff]  }
 0x347   : > { %v7292_v52 = vpop.f32.mrf.mxu0  ;;  %2092 = vmatprep.subr.bf16.mxu0 %v7818_v49  ;;  %v7844_v49 = vld [vmem:[%s11164_s23 + $0x1c] ss:$12 sps:$4 sm:$0xff]  }
 0x348   : > { %v1741_v55 = vadd.f32 %v7292_v52, %v1564_v50  ;;  %v7816_v50 = vld [vmem:[%s11083_s6 + $0x18] ss:$12 sps:$4 sm:$0xff]  }
 0x349   : > { %v1714_v57 = vpop.f32.mrf.mxu0  ;;  %2093 = vmatpush1.bf16.msra.mxu0 %v7816_v50  ;;  %v7822_v52 = vld [vmem:[%s11083_s6 + $0x4] ss:$12 sps:$4 sm:$0xff]   ;;  %v7854_v50 = vld [vmem:[%s11164_s23 + $0x20] ss:$12 sps:$4 sm:$0xff]  }
 0x34a   : > { %v1739_v59 = vadd.f32 %v1714_v57, %v1562_v53  ;;  %v1749_v61 = vpack.c.bf16 %v1741_v55, %v1740_v54  ;;  %v7820_v53 = vld [vmem:[%s11083_s6] ss:$12 sps:$4 sm:$0xff]   ;;  %v7823_v54 = vld [vmem:[%s11083_s6 + $0x8] ss:$12 sps:$4 sm:$0xff]   ;;  %2094 = vmatprep.subr.bf16.mxu0 %v7822_v52  ;;  %v11098_v55 = vmov 0  }
 0x34b   : > { %2112 = vmatprep.mubr.bf16.mxu0 %v11098_v55  ;;  %7774 = vset.pattern.permute.xlu0 %v11098_v55  ;;  %v7848_v57 = vld [vmem:[%s11164_s23 + $0xb0] ss:$12 sps:$4 sm:$0xff]  }
 0x34c   : > { %v1748_v0 = vpack.c.bf16 %v1739_v59, %v1738_v58  ;;  %7293 = vmatprep.subr.bf16.mxu1 %v1749_v61  ;;  %7775 = vset.pattern.permute.xlu1 %v11098_v55  ;;  %v1501_v59 = vld [vmem:[%s8936_s30] sm:$0xff] }
 0x34d   : > { %7294 = vmatpush3.bf16.msra.mxu1 %v1749_v61  ;;  %2095 = vmatpush1.bf16.msra.mxu0 %v7820_v53  ;;  %v1503_v61 = vld [vmem:[%s8936_s30 + $0x10] sm:$0xff] }
 0x34e   : > { %7295 = vmatprep.subr.bf16.mxu1 %v1748_v0  ;;  %7357 = vmatprep.subr.bf16.mxu0 %v7848_v57 }
 0x34f   : > { %3037 = vperm.xlu0 %7774, %v1501_v59   ;;  %3047 = vperm.xlu1 %7775, %v1503_v61   ;;  %v7856_v59 = vld [vmem:[#allocation6 + $0x78] sm:$0xff]   ;;  %v7857_v61 = vld [vmem:[#allocation6 + $0x70] sm:$0xff]  }
 0x351   : > { %7296 = vmatpush3.bf16.msra.mxu1 %v1748_v0  ;;  %v1504_v0 = vld [vmem:[%s8936_s30 + $0x18] sm:$0xff] }
 0x352   : > { %7297 = vmatprep.subr.bf16.mxu1 %v1747_v4 }
 0x353   : > { %3042 = vperm.xlu0 %7774, %v1502_v63   ;;  %3052 = vperm.xlu1 %7775, %v1504_v0   ;;  %v1510_v63 = vld [vmem:[%s8936_s30 + $0x48] sm:$0xff]  ;;  %v7859_v0 = vld [vmem:[#allocation6 + $0x60] sm:$0xff]  }
 0x355   : > { %7298 = vmatpush3.bf16.msra.mxu1 %v1747_v4  ;;  %v7824_v4 = vld [vmem:[%s11164_s23 + $0xa8] ss:$12 sps:$4 sm:$0xff]  }
 0x356   : > { %7299 = vmatprep.subr.bf16.mxu1 %v1746_v14 }
 0x357   : > { %3062 = vperm.xlu1 %7775, %v1506_v15  }
 0x359   : > { %7300 = vmatpush3.bf16.msra.mxu1 %v1746_v14  ;;  %v1505_v14 = vld [vmem:[%s8936_s30 + $0x20] sm:$0xff] }
 0x35a   : > { %7301 = vmatprep.subr.bf16.mxu1 %v1745_v22  ;;  %3057 = vperm.xlu0 %7774, %v1505_v14   ;;  %v1516_v14 = vld [vmem:[%s8936_s30 + $0x78] sm:$0xff] }
 0x35b   : > { %3072 = vperm.xlu1 %7775, %v1508_v19  }
 0x35d   : > { %7302 = vmatpush3.bf16.msra.mxu1 %v1745_v22  ;;  %v7832_v22 = vld [vmem:[%s11164_s23 + $0x7c] ss:$12 sps:$4 sm:$0xff]  }
 0x35e   : > { %7303 = vmatprep.subr.bf16.mxu1 %v1744_v30 }
 0x35f   : > { %3082 = vperm.xlu1 %7775, %v1510_v63  }
 0x361   : > { %7304 = vmatpush3.bf16.msra.mxu1 %v1744_v30 }
 0x362   : > { %7305 = vmatprep.subr.bf16.mxu1 %v1743_v34 }
 0x365   : > { %7306 = vmatpush3.bf16.msra.mxu1 %v1743_v34  ;;  %v1507_v34 = vld [vmem:[%s8936_s30 + $0x30] sm:$0xff] }
 0x366   : > { %7307 = vmatprep.subr.bf16.mxu1 %v1742_v39  ;;  %3067 = vperm.xlu0 %7774, %v1507_v34  }
 0x369   : > { %7308 = vmatpush3.bf16.msra.mxu1 %v1742_v39 }
 0x36a   : > { %7325 = vmatprep.subr.bf16.mxu1 %v7795_v37 }
 0x36c   : > { %7310 = vmatmul.mubr.bf16.vlgmr.msra.gmra.mxu1 %v7785_v40  ;;  %v7852_v40 = vld [vmem:[%s11164_s23 + $0x50] ss:$12 sps:$4 sm:$0xff]  }
 0x36d   : > { %7313 = vmatprep.mubr.bf16.mxu1 %v7786_v20  ;;  %7326 = vmatpush3.bf16.msra.mxu1 %v7795_v37  ;;  %v7838_v37 = vld [vmem:[%s11164_s23 + $0x4c] ss:$12 sps:$4 sm:$0xff]  }
 0x36e   : > { %7327 = vmatprep.subr.bf16.mxu1 %v7799_v38 }
 0x371   : > { %7328 = vmatpush3.bf16.msra.mxu1 %v7799_v38 }
 0x372   : > { %7329 = vmatprep.subr.bf16.mxu1 %v7803_v36 }
 0x374   : > { %7314 = vmatmul.mubr.bf16.gmra.mxu1 %v7787_v41  ;;  %v7836_v41 = vld [vmem:[%s11164_s23 + $0x48] ss:$12 sps:$4 sm:$0xff]  }
 0x375   : > { %7317 = vmatprep.mubr.bf16.mxu1 %v7788_v42  ;;  %7330 = vmatpush3.bf16.msra.mxu1 %v7803_v36 }
 0x376   : > { %7331 = vmatprep.subr.bf16.mxu1 %v7807_v43 }
 0x379   : > { %7332 = vmatpush3.bf16.msra.mxu1 %v7807_v43  ;;  %v7841_v43 = vld [vmem:[%s11164_s23 + $0x34] ss:$12 sps:$4 sm:$0xff]  }
 0x37a   : > { %7333 = vmatprep.subr.bf16.mxu1 %v7811_v44 }
 0x37c   : > { %7318 = vmatmul.mubr.bf16.gmra.mxu1 %v7789_v45 }
 0x37d   : > { %7321 = vmatprep.mubr.bf16.mxu1 %v7790_v46  ;;  %7334 = vmatpush3.bf16.msra.mxu1 %v7811_v44  ;;  %v7853_v44 = vld [vmem:[%s11164_s23 + $0x38] ss:$12 sps:$4 sm:$0xff]  }
 0x37e   : > { %7335 = vmatprep.subr.bf16.mxu1 %v7815_v47  ;;  %v1509_v46 = vld [vmem:[%s8936_s30 + $0x40] sm:$0xff] }
 0x37f   : > { %3077 = vperm.xlu0 %7774, %v1509_v46  }
 0x381   : > { %7336 = vmatpush3.bf16.msra.mxu1 %v7815_v47  ;;  %v7839_v47 = vld [vmem:[%s11164_s23 + $0x30] ss:$12 sps:$4 sm:$0xff]  }
 0x382   : > { %7337 = vmatprep.subr.bf16.mxu1 %v7819_v51 }
 0x384   : > { %7322 = vmatmul.mubr.bf16.gmra.mxu1 %v7791_v48 }
 0x385   : > { %7338 = vmatpush3.bf16.msra.mxu1 %v7819_v51 }
 0x386   : > { %7339 = vmatprep.subr.bf16.mxu1 %v7823_v54 }
 0x389   : > { %7340 = vmatpush3.bf16.msra.mxu1 %v7823_v54  ;;  %v7842_v54 = vld [vmem:[%s11164_s23 + $0x18] ss:$12 sps:$4 sm:$0xff]  }
 0x38a   : > { %2450 = vmatprep.subr.bf16.mxu1 %v7826_v56  ;;  %v7847_v56 = vld [vmem:[%s11164_s23 + $0x4] ss:$12 sps:$4 sm:$0xff]  }
 0x42c   : > { %v7311_v58 = vpop.f32.mrf.mxu1 }
 0x42e   : > { %v1832_v62 = vpop.f32.mrf.mxu1 }
 0x430   : > { %v7312_v1 = vpop.f32.mrf.mxu1 }
 0x431   : > { %v1896_v7 = vpack.c.bf16 %v7312_v1, %v7311_v58  ;;  %v7845_v58 = vld [vmem:[%s11164_s23] ss:$12 sps:$4 sm:$0xff]   ;;  %v1511_v1 = vld [vmem:[%s8936_s30 + $0x50] sm:$0xff] }
 0x432   : > { %v1835_v2 = vpop.f32.mrf.mxu1  ;;  %3087 = vperm.xlu0 %7774, %v1511_v1  }
 0x433   : > { %v1895_v3 = vpack.c.bf16 %v1835_v2, %v1832_v62  ;;  %v7858_v62 = vld [vmem:[#allocation6 + $0x68] sm:$0xff]   ;;  %v7860_v2 = vld [vmem:[#allocation6 + $0x58] sm:$0xff]  }
 0x434   : > { %v7315_v8 = vpop.f32.mrf.mxu1 }
 0x435   : > { %2113 = vmatmul.mubr.bf16.vlgmr.msra.gmra.mxu0 %v1895_v3  ;;  %7341 = vmatprep.mubr.bf16.mxu1 %v1895_v3  ;;  %v1512_v3 = vld [vmem:[%s8936_s30 + $0x58] sm:$0xff] }
 0x436   : > { %v1848_v13 = vpop.f32.mrf.mxu1  ;;  %7342 = vmatmul.mubr.bf16.vlgmr.msra.gmra.mxu1 %v1896_v7  ;;  %2122 = vmatprep.mubr.bf16.mxu0 %v11098_v55 }
 0x437   : > { %2451 = vmatpush1.bf16.msra.mxu1 %v7824_v4  ;;  %7358 = vmatpush3.bf16.msra.mxu0 %v7848_v57  ;;  %v7855_v57 = vld [vmem:[%s11164_s23 + $0x8] ss:$12 sps:$4 sm:$0xff]  }
 0x438   : > { %v7316_v21 = vpop.f32.mrf.mxu1  ;;  %2452 = vmatprep.subr.bf16.mxu1 %v7829_v9  ;;  %7359 = vmatprep.subr.bf16.mxu0 %v7849_v10  ;;  %v7861_v4 = vld [vmem:[#allocation6 + $0x50] sm:$0xff]   ;;  %v1514_v9 = vld [vmem:[%s8936_s30 + $0x68] sm:$0xff] }
 0x439   : > { %v1898_v26 = vpack.c.bf16 %v7316_v21, %v7315_v8  ;;  %3092 = vperm.xlu1 %7775, %v1512_v3   ;;  %v7862_v8 = vld [vmem:[#allocation6 + $0x48] sm:$0xff]  }
 0x43a   : > { %v1851_v27 = vpop.f32.mrf.mxu1 }
 0x43b   : > { %v1897_v28 = vpack.c.bf16 %v1851_v27, %v1848_v13  ;;  %2453 = vmatpush1.bf16.msra.mxu1 %v7827_v16  ;;  %7360 = vmatpush3.bf16.msra.mxu0 %v7849_v10  ;;  %v7863_v10 = vld [vmem:[#allocation6 + $0x40] sm:$0xff]   ;;  %v1515_v13 = vld [vmem:[%s8936_s30 + $0x70] sm:$0xff] }
 0x43c   : > { %v7319_v30 = vpop.f32.mrf.mxu1  ;;  %2454 = vmatprep.subr.bf16.mxu1 %v7832_v22  ;;  %7361 = vmatprep.subr.bf16.mxu0 %v7850_v25 }
 0x43d   : > { %2123 = vmatmul.mubr.bf16.gmra.mxu0 %v1896_v7  ;;  %7345 = vmatprep.mubr.bf16.mxu1 %v1897_v28  ;;  %v1513_v7 = vld [vmem:[%s8936_s30 + $0x60] sm:$0xff] }
 0x43e   : > { %v1864_v33 = vpop.f32.mrf.mxu1  ;;  %7346 = vmatmul.mubr.bf16.gmra.mxu1 %v1898_v26  ;;  %2132 = vmatprep.mubr.bf16.mxu0 %v11098_v55 }
 0x43f   : > { %2455 = vmatpush1.bf16.msra.mxu1 %v7830_v29  ;;  %7362 = vmatpush3.bf16.msra.mxu0 %v7850_v25 }
 0x440   : > { %v7320_v39 = vpop.f32.mrf.mxu1  ;;  %2456 = vmatprep.subr.bf16.mxu1 %v7835_v31  ;;  %7363 = vmatprep.subr.bf16.mxu0 %v7851_v32 }
 0x441   : > { %v1900_v20 = vpack.c.bf16 %v7320_v39, %v7319_v30  ;;  %3097 = vperm.xlu0 %7774, %v1513_v7   ;;  %3102 = vperm.xlu1 %7775, %v1514_v9  }
 0x442   : > { %v1867_v38 = vpop.f32.mrf.mxu1 }
 0x443   : > { %v1899_v36 = vpack.c.bf16 %v1867_v38, %v1864_v33  ;;  %2457 = vmatpush1.bf16.msra.mxu1 %v7833_v35  ;;  %7364 = vmatpush3.bf16.msra.mxu0 %v7851_v32  ;;  %v1937_v32 = vlaneseq }
 0x444   : > { %v7323_v42 = vpop.f32.mrf.mxu1  ;;  %2458 = vmatprep.subr.bf16.mxu1 %v7838_v37  ;;  %7365 = vmatprep.subr.bf16.mxu0 %v7852_v40 }
 0x445   : > { %2133 = vmatmul.mubr.bf16.gmra.mxu0 %v1897_v28  ;;  %7349 = vmatprep.mubr.bf16.mxu1 %v1899_v36  ;;  %v1938_v39 = vshrl.u32 %v1937_v32, 7 }
 0x446   : > { %v1880_v45 = vpop.f32.mrf.mxu1  ;;  %7350 = vmatmul.mubr.bf16.gmra.mxu1 %v1900_v20  ;;  %2142 = vmatprep.mubr.bf16.mxu0 %v11098_v55 }
 0x447   : > { %2459 = vmatpush1.bf16.msra.mxu1 %v7836_v41  ;;  %7366 = vmatpush3.bf16.msra.mxu0 %v7852_v40  ;;  %v9374_v46 = vsub.s32 0, %v1938_v39 }
 0x448   : > { %v7324_v48 = vpop.f32.mrf.mxu1  ;;  %2460 = vmatprep.subr.bf16.mxu1 %v7841_v43  ;;  %7367 = vmatprep.subr.bf16.mxu0 %v7853_v44 }
 0x449   : > { %v1902_v51 = vpack.c.bf16 %v7324_v48, %v7323_v42  ;;  %3107 = vperm.xlu0 %7774, %v1515_v13   ;;  %3112 = vperm.xlu1 %7775, %v1516_v14   ;;  %v1935_v42 = vld [vmem:[%s11168_s28] sm:$0x7]  ;;  %11171 = vst [vmem:[#allocation29_spill] sm:$0xff] %v9374_v46  ;;  %s8709_s28 = smov [#allocation9]  }
 0x44a   : > { %v1883_v52 = vpop.f32.mrf.mxu1  ;;  %s6281_s9 = sshll.u32 %s8709_s28, 4  ;;  %s6282_s9 = int_to_ptr.vmem [resolvable:$true] %s6281_s9 }
 0x44b   : > { %v1901_v53 = vpack.c.bf16 %v1883_v52, %v1880_v45  ;;  %2461 = vmatpush1.bf16.msra.mxu1 %v7839_v47  ;;  %7368 = vmatpush3.bf16.msra.mxu0 %v7853_v44  ;;  %s8602_s17 = scalar_lea.vmem %s6282_s9, 2048  ;;  %p8609_p7 = scmp.lt.s32.totalorder %s6282_s9, %s6282_s9 }
 0x44c   : > { %2462 = vmatprep.subr.bf16.mxu1 %v7844_v49  ;;  %7369 = vmatprep.subr.bf16.mxu0 %v7854_v50  ;;  %p8603_p3 = scmp.ne.s32.totalorder %s6282_s9, %s8602_s17  ;;  %p8610_p9 = scmp.lt.s32.totalorder %s8602_s17, %s8602_s17 }
 0x44d   : > { %2143 = vmatmul.mubr.bf16.gmra.mxu0 %v1898_v26  ;;  %7353 = vmatprep.mubr.bf16.mxu1 %v1901_v53 }
 0x44e   : > { %7354 = vmatmul.mubr.bf16.gmra.mxu1 %v1902_v51  ;;  %2152 = vmatprep.mubr.bf16.mxu0 %v11098_v55  ;;  %p8604_p8 = pnand %p8603_p3, %p7696_p11  ;;  %p8611_p12 = por %p8610_p9, %p8609_p7 }
 0x44f   : > { %2463 = vmatpush1.bf16.msra.mxu1 %v7842_v54  ;;  %2482 = vmatprep.mubr.bf16.mxu1 %v11098_v55  ;;  %v9391_v54 = vrot.slane %v1935_v42, %v9374_v46 }
 0x450   : > { %2464 = vmatprep.subr.bf16.mxu1 %v7847_v56  ;;  %7370 = vmatpush3.bf16.msra.mxu0 %v7854_v50  ;;  %v9381_v50 = vsub.s32 1, %v1938_v39  ;;  %p8605_p5 = pneg %p8604_p8 }
 0x451   : > { %7371 = vmatprep.subr.bf16.mxu0 %v7855_v57 }
 0x452   : > { %11172 = vst [vmem:[#allocation30_spill] sm:$0xff] %v9381_v50  ;;  %p8612_p1 = pnand %p8611_p12, %p8605_p5 }
 0x453   : > { %2465 = vmatpush1.bf16.msra.mxu1 %v7845_v58  ;;  %v9396_v58 = vrot.slane %v1935_v42, %v9381_v50 }
 0x454   : > { %7372 = vmatpush3.bf16.msra.mxu0 %v7855_v57 }
 0x455   : > { %2153 = vmatmul.mubr.bf16.gmra.mxu0 %v1899_v36  ;;  %7389 = vmatprep.subr.bf16.mxu0 %v7856_v59  ;;  %v9361_v36 = vsub.s32 2, %v1938_v39 }
 0x456   : > { %2483 = vmatmul.mubr.bf16.vlgmr.msra.gmra.mxu1 %v9095_v60  ;;  %2162 = vmatprep.mubr.bf16.mxu0 %v11098_v55 }
 0x457   : > { %2492 = vmatprep.mubr.bf16.mxu1 %v11098_v55  ;;  %11167 = vst [vmem:[#allocation27_spill] sm:$0xff] %v9361_v36  ;;  %v9377_v47 = vrot.slane %v1935_v42, %v9361_v36 }
 0x45d   : > { %2163 = vmatmul.mubr.bf16.gmra.mxu0 %v1900_v20 }
 0x45e   : > { %2493 = vmatmul.mubr.bf16.gmra.mxu1 %v9098_v5  ;;  %2172 = vmatprep.mubr.bf16.mxu0 %v11098_v55 }
 0x45f   : > { %2502 = vmatprep.mubr.bf16.mxu1 %v11098_v55 }
 0x465   : > { %2173 = vmatmul.mubr.bf16.gmra.mxu0 %v1901_v53 }
 0x466   : > { %2503 = vmatmul.mubr.bf16.gmra.mxu1 %v9100_v6  ;;  %2182 = vmatprep.mubr.bf16.mxu0 %v11098_v55 }
 0x467   : > { %2512 = vmatprep.mubr.bf16.mxu1 %v11098_v55 }
 0x46d   : > { %2183 = vmatmul.mubr.bf16.gmra.mxu0 %v1902_v51 }
 0x46e   : > { %2513 = vmatmul.mubr.bf16.gmra.mxu1 %v9104_v11  ;;  %7373 = vmatprep.mubr.bf16.mxu0 %v9095_v60 }
 0x46f   : > { %2522 = vmatprep.mubr.bf16.mxu1 %v11098_v55 }
 0x475   : > { %7374 = vmatmul.mubr.bf16.vlgmr.msra.gmra.mxu0 %v9098_v5 }
 0x476   : > { %2523 = vmatmul.mubr.bf16.gmra.mxu1 %v9106_v12  ;;  %7390 = vmatpush3.bf16.msra.mxu0 %v7856_v59 }
 0x477   : > { %7391 = vmatprep.subr.bf16.mxu0 %v7857_v61  ;;  %7377 = vmatprep.mubr.bf16.mxu0 %v9100_v6 }
 0x478   : > { %2532 = vmatprep.mubr.bf16.mxu1 %v11098_v55 }
 0x47a   : > { %7392 = vmatpush3.bf16.msra.mxu0 %v7857_v61 }
 0x47b   : > { %7393 = vmatprep.subr.bf16.mxu0 %v7858_v62 }
 0x47d   : > { %7378 = vmatmul.mubr.bf16.gmra.mxu0 %v9104_v11 }
 0x47e   : > { %2533 = vmatmul.mubr.bf16.gmra.mxu1 %v9110_v17  ;;  %7394 = vmatpush3.bf16.msra.mxu0 %v7858_v62 }
 0x47f   : > { %7395 = vmatprep.subr.bf16.mxu0 %v7859_v0  ;;  %7381 = vmatprep.mubr.bf16.mxu0 %v9106_v12 }
 0x480   : > { %2542 = vmatprep.mubr.bf16.mxu1 %v11098_v55 }
 0x482   : > { %7396 = vmatpush3.bf16.msra.mxu0 %v7859_v0 }
 0x483   : > { %7397 = vmatprep.subr.bf16.mxu0 %v7860_v2 }
 0x485   : > { %7382 = vmatmul.mubr.bf16.gmra.mxu0 %v9110_v17 }
 0x486   : > { %2543 = vmatmul.mubr.bf16.gmra.mxu1 %v9112_v18  ;;  %7398 = vmatpush3.bf16.msra.mxu0 %v7860_v2 }
 0x487   : > { %7399 = vmatprep.subr.bf16.mxu0 %v7861_v4  ;;  %7385 = vmatprep.mubr.bf16.mxu0 %v9112_v18 }
 0x488   : > { %2552 = vmatprep.mubr.bf16.mxu1 %v11098_v55 }
 0x48a   : > { %7400 = vmatpush3.bf16.msra.mxu0 %v7861_v4 }
 0x48b   : > { %7401 = vmatprep.subr.bf16.mxu0 %v7862_v8 }
 0x48d   : > { %7386 = vmatmul.mubr.bf16.gmra.mxu0 %v9116_v23 }
 0x48e   : > { %2553 = vmatmul.mubr.bf16.gmra.mxu1 %v9116_v23  ;;  %7402 = vmatpush3.bf16.msra.mxu0 %v7862_v8 }
 0x48f   : > { %7403 = vmatprep.subr.bf16.mxu0 %v7863_v10  ;;  %7405 = vmatprep.mubr.bf16.mxu0 %v9095_v60 }
 0x490   : > { %7437 = vmatprep.mubr.bf16.mxu1 %v9120_v24 }
 0x492   : > { %7404 = vmatpush3.bf16.msra.mxu0 %v7863_v10 }
 0x495   : > { %7406 = vmatmul.mubr.bf16.vlgmr.msra.gmra.mxu0 %v9098_v5 }
 0x496   : > { %7409 = vmatprep.mubr.bf16.mxu0 %v9100_v6 }
 0x49d   : > { %7410 = vmatmul.mubr.bf16.gmra.mxu0 %v9104_v11 }
 0x49e   : > { %7413 = vmatprep.mubr.bf16.mxu0 %v9106_v12 }
 0x4a5   : > { %7414 = vmatmul.mubr.bf16.gmra.mxu0 %v9110_v17 }
 0x4a6   : > { %7417 = vmatprep.mubr.bf16.mxu0 %v9112_v18 }
 0x4ad   : > { %7418 = vmatmul.mubr.bf16.gmra.mxu0 %v9116_v23 }
 0x4ae   : > { %3666 = vmatprep.mubr.bf16.mxu0 %v11098_v55 }
 0x4f5   : > { %v2114_v15 = vpop.f32.mrf.mxu0 }
 0x4f6   : > { %v9337_v24 = vpop.f32.mrf.mxu1  ;;  %v2115_v63 = vadd.f32 %v2114_v15, %v9391_v54 }
 0x4f7   : > { %v2116_v16 = vpop.f32.mrf.mxu0 }
 0x4f8   : > { %v9339_v21 = vpop.f32.mrf.mxu1  ;;  %v2117_v2 = vadd.f32 %v2116_v16, %v9396_v58 }
 0x4f9   : > { %v2118_v22 = vpop.f32.mrf.mxu0 }
 0x4fa   : > { %v9341_v25 = vpop.f32.mrf.mxu1  ;;  %v2119_v8 = vadd.f32 %v2118_v22, %v9391_v54 }
 0x4fb   : > { %v9343_v26 = vpop.f32.mrf.mxu0 }
 0x4fc   : > { %v9345_v27 = vpop.f32.mrf.mxu1 }
 0x4fd   : > { %11165 = vst [vmem:[#allocation25_spill] sm:$0xff] %v9345_v27  ;;  %v2124_v28 = vpop.f32.mrf.mxu0 }
 0x4fe   : > { %v9347_v29 = vpop.f32.mrf.mxu1  ;;  %v2125_v16 = vadd.f32 %v2124_v28, %v9391_v54 }
 0x4ff   : > { %v2126_v30 = vpop.f32.mrf.mxu0 }
 0x500   : > { %v9349_v31 = vpop.f32.mrf.mxu1 }
 0x501   : > { %v2128_v33 = vpop.f32.mrf.mxu0 }
 0x502   : > { %v9351_v34 = vpop.f32.mrf.mxu1 }
 0x503   : > { %v9353_v19 = vpop.f32.mrf.mxu0 }
 0x504   : > { %v9355_v35 = vpop.f32.mrf.mxu1 }
 0x505   : > { %11166 = vst [vmem:[#allocation26_spill] sm:$0xff] %v9355_v35  ;;  %v2134_v37 = vpop.f32.mrf.mxu0 }
 0x506   : > { %v9357_v40 = vpop.f32.mrf.mxu1 }
 0x507   : > { %v2136_v20 = vpop.f32.mrf.mxu0 }
 0x508   : > { %v9359_v38 = vpop.f32.mrf.mxu1 }
 0x509   : > { %v9363_v41 = vpop.f32.mrf.mxu0 }
 0x50a   : > { %v9368_v43 = vpop.f32.mrf.mxu1 }
 0x50b   : > { %v9370_v44 = vpop.f32.mrf.mxu0 }
 0x50c   : > { %11170 = vst [vmem:[#allocation28_spill] sm:$0xff] %v9370_v44  ;;  %v9372_v45 = vpop.f32.mrf.mxu1 }
 0x50d   : > { %v9379_v48 = vpop.f32.mrf.mxu0 }
 0x50e   : > { %v7355_v49 = vpop.f32.mrf.mxu1 }
 0x50f   : > { %v9384_v51 = vadd.f32 %v7355_v49, %v9377_v47  ;;  %v9386_v52 = vpop.f32.mrf.mxu0 }
 0x510   : > { %v9388_v53 = vpop.f32.mrf.mxu1 }
 0x511   : > { %v9393_v56 = vpop.f32.mrf.mxu0 }
 0x512   : > { %v7356_v57 = vpop.f32.mrf.mxu1 }
 0x513   : > { %v9399_v59 = vadd.f32 %v7356_v57, %v9377_v47  ;;  %v9401_v61 = vpop.f32.mrf.mxu0  ;;  %v2127_v57 = vadd.f32 %v2126_v30, %v9396_v58  ;;  %v2135_v30 = vadd.f32 %v2134_v37, %v9391_v54 }
 0x514   : > { %11173 = vst [vmem:[#allocation31_spill] sm:$0xff] %v9401_v61  ;;  %v9403_v62 = vpop.f32.mrf.mxu1 }
 0x515   : > { %11174 = vst [vmem:[#allocation32_spill] sm:$0xff] %v9403_v62  ;;  %v9406_v0 = vpop.f32.mrf.mxu0 }
 0x516   : > { %v2484_v1 = vpop.f32.mrf.mxu1 }
 0x517   : > { %v2660_v3 = vadd.f32 %v2484_v1, %v2115_v63  ;;  %v9409_v4 = vpop.f32.mrf.mxu0 }
 0x518   : > { %v2486_v7 = vpop.f32.mrf.mxu1 }
 0x519   : > { %v6532_v9 = vmul.f32 -1.442695, %v2660_v3  ;;  %v2661_v10 = vadd.f32 %v2486_v7, %v2117_v2  ;;  %v9412_v13 = vpop.f32.mrf.mxu0  ;;  %v2129_v2 = vadd.f32 %v2128_v33, %v9391_v54  ;;  %v2137_v33 = vadd.f32 %v2136_v20, %v9396_v58 }
 0x51a   : > { %v2488_v14 = vpop.f32.mrf.mxu1 }
 0x51b   : > { %8000 = vpow2.f32 %v6532_v9  ;;  %v9414_v32 = vadd.f32 %v2488_v14, %v2119_v8  ;;  %v9416_v15 = vpop.f32.mrf.mxu0  ;;  %v6533_v9 = vmul.f32 -1.442695, %v2661_v10 }
 0x51c   : > { %v9418_v39 = vpop.f32.mrf.mxu1 }
 0x51d   : > { %v9421_v42 = vpop.f32.mrf.mxu0 }
 0x51e   : > { %v2494_v49 = vpop.f32.mrf.mxu1 }
 0x51f   : > { %v2664_v22 = vadd.f32 %v2494_v49, %v2125_v16  ;;  %v9424_v63 = vpop.f32.mrf.mxu0 }
 0x520   : > { %v2496_v1 = vpop.f32.mrf.mxu1 }
 0x521   : > { %v6536_v3 = vmul.f32 -1.442695, %v2664_v22  ;;  %v2665_v7 = vadd.f32 %v2496_v1, %v2127_v57  ;;  %v9427_v8 = vpop.f32.mrf.mxu0 }
 0x522   : > { %v2498_v14 = vpop.f32.mrf.mxu1 }
 0x523   : > { %8002 = vpow2.f32 %v6536_v3  ;;  %v2666_v55 = vadd.f32 %v2498_v14, %v2129_v2  ;;  %v9429_v28 = vpop.f32.mrf.mxu0  ;;  %v2139_v2 = vadd.f32 %v9363_v41, %v9391_v54 }
 0x524   : > { %11175 = vst [vmem:[#allocation33_spill] sm:$0xff] %v9429_v28  ;;  %v9431_v50 = vpop.f32.mrf.mxu1  ;;  %8004 = vpow2.f32 %v6533_v9 }
 0x525   : > { %11176 = vst [vmem:[#allocation34_spill] sm:$0xff] %v9431_v50  ;;  %v6538_v16 = vmul.f32 -1.442695, %v2666_v55  ;;  %v9434_v49 = vpop.f32.mrf.mxu0 }
 0x526   : > { %v2504_v46 = vpop.f32.mrf.mxu1 }
 0x527   : > { %8006 = vpow2.f32 %v6538_v16  ;;  %v2668_v57 = vadd.f32 %v2504_v46, %v2135_v30  ;;  %v9437_v22 = vpop.f32.mrf.mxu0  ;;  %v2145_v46 = vadd.f32 %v9379_v48, %v9391_v54  ;;  %v6537_v30 = vmul.f32 -1.442695, %v2665_v7 }
 0x528   : > { %v8001_v10 = vpop.eup %8000  ;;  %v2506_v1 = vpop.f32.mrf.mxu1  ;;  %v2149_v7 = vadd.f32 %v9393_v56, %v9391_v54 }
 0x529   : > { %v2788_v3 = vadd.f32 1.0, %v8001_v10  ;;  %v6540_v14 = vmul.f32 -1.442695, %v2668_v57  ;;  %v2669_v62 = vadd.f32 %v2506_v1, %v2137_v33  ;;  %v9441_v37 = vpop.f32.mrf.mxu0  ;;  %v7864_v57 = vld [vmem:[%s11083_s6 + $0x168] ss:$12 sps:$4 sm:$0xff]   ;;  %v2147_v1 = vadd.f32 %v9386_v52, %v9396_v58 }
 0x52a   : > { %v2508_v55 = vpop.f32.mrf.mxu1  ;;  %v7866_v10 = vld [vmem:[%s11083_s6 + $0x16c] ss:$12 sps:$4 sm:$0xff]  }
 0x52b   : > { %8008 = vrcp.f32 %v2788_v3  ;;  %v9443_v9 = vadd.f32 %v2508_v55, %v2139_v2  ;;  %v9445_v36 = vpop.f32.mrf.mxu0  ;;  %3634 = vmatprep.subr.bf16.mxu0 %v7866_v10  ;;  %v6541_v56 = vmul.f32 -1.442695, %v2669_v62  ;;  %v7874_v10 = vld [vmem:[%s11083_s6 + $0x13c] ss:$12 sps:$4 sm:$0xff]   ;;  %v2155_v62 = vadd.f32 %v9406_v0, %v9391_v54  ;;  %v9496_v0 = vld [vmem:[%s11180_s7] ss:$0 sm:$0xff] }
 0x52c   : > { %11177 = vst [vmem:[#allocation35_spill] sm:$0xff] %v9445_v36  ;;  %8010 = vpow2.f32 %v6540_v14  ;;  %v9447_v20 = vpop.f32.mrf.mxu1  ;;  %3635 = vmatpush1.bf16.msra.mxu0 %v7864_v57 }
 0x52d   : > { %11178 = vst [vmem:[#allocation36_spill] sm:$0xff] %v9447_v20  ;;  %v2184_v16 = vpop.f32.mrf.mxu0  ;;  %8012 = vpow2.f32 %v6537_v30 }
 0x52e   : > { %v9452_v41 = vadd.f32 %v2184_v16, %v9391_v54  ;;  %v2514_v33 = vpop.f32.mrf.mxu1  ;;  %v7870_v16 = vld [vmem:[%s11083_s6 + $0x154] ss:$12 sps:$4 sm:$0xff]  }
 0x52f   : > { %v2672_v2 = vadd.f32 %v2514_v33, %v2145_v46  ;;  %v2186_v3 = vpop.f32.mrf.mxu0  ;;  %v7868_v46 = vld [vmem:[%s11083_s6 + $0x150] ss:$12 sps:$4 sm:$0xff]   ;;  %3636 = vmatprep.subr.bf16.mxu0 %v7870_v16  ;;  %v7872_v16 = vld [vmem:[%s11083_s6 + $0x138] ss:$12 sps:$4 sm:$0xff]  }
 0x530   : > { %v8003_v48 = vpop.eup %8002  ;;  %v9465_v14 = vadd.f32 %v2186_v3, %v9396_v58  ;;  %v2516_v55 = vpop.f32.mrf.mxu1  ;;  %3637 = vmatpush1.bf16.msra.mxu0 %v7868_v46 }
 0x531   : > { %v2792_v35 = vadd.f32 1.0, %v8003_v48  ;;  %v6544_v36 = vmul.f32 -1.442695, %v2672_v2  ;;  %v2673_v27 = vadd.f32 %v2516_v55, %v2147_v1  ;;  %v2188_v52 = vpop.f32.mrf.mxu0  ;;  %v8005_v48 = vpop.eup %8004  ;;  %3638 = vmatprep.subr.bf16.mxu0 %v7874_v10 }
 0x532   : > { %v9474_v33 = vadd.f32 %v2188_v52, %v9391_v54  ;;  %v2518_v3 = vpop.f32.mrf.mxu1  ;;  %v2789_v20 = vadd.f32 1.0, %v8005_v48 }
 0x533   : > { %8014 = vrcp.f32 %v2792_v35  ;;  %v2674_v30 = vadd.f32 %v2518_v3, %v2149_v7  ;;  %v9479_v1 = vpop.f32.mrf.mxu0  ;;  %v2157_v7 = vadd.f32 %v9409_v4, %v9396_v58  ;;  %v2159_v4 = vadd.f32 %v9412_v13, %v9391_v54 }
 0x534   : > { %v8007_v57 = vpop.eup %8006  ;;  %8016 = vpow2.f32 %v6544_v36  ;;  %v9481_v2 = vpop.f32.mrf.mxu1  ;;  %v7878_v36 = vld [vmem:[%s11083_s6 + $0x124] ss:$12 sps:$4 sm:$0xff]   ;;  %3639 = vmatpush1.bf16.msra.mxu0 %v7872_v16 }
 0x535   : > { %11179 = vst [vmem:[#allocation37_spill] sm:$0xff] %v9481_v2  ;;  %v2794_v55 = vadd.f32 1.0, %v8007_v57  ;;  %v6546_v52 = vmul.f32 -1.442695, %v2674_v30  ;;  %v7375_v28 = vpop.f32.mrf.mxu0  ;;  %8018 = vpow2.f32 %v6541_v56  ;;  %v2228_v57 = vadd.f32 %v9339_v21, %v9377_v47  ;;  %3640 = vmatprep.subr.bf16.mxu0 %v7878_v36  ;;  %v7882_v21 = vld [vmem:[%s11083_s6 + $0x10c] ss:$12 sps:$4 sm:$0xff]  }
 0x536   : > { %v2524_v35 = vpop.f32.mrf.mxu1 }
 0x537   : > { %8020 = vrcp.f32 %v2794_v55  ;;  %v2676_v46 = vadd.f32 %v2524_v35, %v2155_v62  ;;  %v2597_v3 = vpop.f32.mrf.mxu0  ;;  %v7876_v62 = vld [vmem:[%s11083_s6 + $0x120] ss:$12 sps:$4 sm:$0xff]   ;;  %v6545_v35 = vmul.f32 -1.442695, %v2673_v27  ;;  %v7880_v27 = vld [vmem:[%s11083_s6 + $0x108] ss:$12 sps:$4 sm:$0xff]  }
 0x538   : > { %v8009_v30 = vpop.eup %8008  ;;  %8022 = vpow2.f32 %v6546_v52  ;;  %v2891_v56 = vadd.f32 %v9496_v0, %v2597_v3  ;;  %v2526_v10 = vpop.f32.mrf.mxu1  ;;  %3641 = vmatpush1.bf16.msra.mxu0 %v7876_v62  ;;  %v2236_v62 = vadd.f32 %v9337_v24, %v9377_v47 }
 0x539   : > { %v8011_v48 = vpop.eup %8010  ;;  %v6548_v55 = vmul.f32 -1.442695, %v2676_v46  ;;  %v2677_v2 = vadd.f32 %v2526_v10, %v2157_v7  ;;  %v7376_v61 = vpop.f32.mrf.mxu0  ;;  %8024 = vrcp.f32 %v2789_v20  ;;  %v2165_v10 = vadd.f32 %v9421_v42, %v9391_v54  ;;  %3642 = vmatprep.subr.bf16.mxu0 %v7882_v21 }
 0x53a   : > { %v2796_v52 = vadd.f32 1.0, %v8011_v48  ;;  %v2907_v3 = vmul.f32 %v8009_v30, %v2891_v56  ;;  %v2528_v44 = vpop.f32.mrf.mxu1  ;;  %v8013_v36 = vpop.eup %8012  ;;  %v2167_v56 = vadd.f32 %v9424_v63, %v9396_v58  ;;  %v2893_v42 = vadd.f32 %v7375_v28, %v9496_v0  ;;  %v7884_v28 = vld [vmem:[%s11083_s6 + $0xf0] ss:$12 sps:$4 sm:$0xff]  }
 0x53b   : > { %8026 = vpow2.f32 %v6548_v55  ;;  %v2678_v13 = vadd.f32 %v2528_v44, %v2159_v4  ;;  %v9509_v46 = vpop.f32.mrf.mxu0  ;;  %v7886_v44 = vld [vmem:[%s11083_s6 + $0xf4] ss:$12 sps:$4 sm:$0xff]   ;;  %v2793_v21 = vadd.f32 1.0, %v8013_v36  ;;  %v2894_v50 = vadd.f32 %v7376_v61, %v9496_v0 }
 0x53c   : > { %11181 = vst [vmem:[#allocation38_spill] sm:$0xff] %v9509_v46  ;;  %8028 = vrcp.f32 %v2796_v52  ;;  %v2923_v16 = vadd.f32 %v2907_v3, %v2228_v57  ;;  %v2530_v7 = vpop.f32.mrf.mxu1  ;;  %v2169_v52 = vadd.f32 %v9427_v8, %v9391_v54  ;;  %3643 = vmatpush1.bf16.msra.mxu0 %v7880_v27 }
 0x53d   : > { %v6550_v20 = vmul.f32 -1.442695, %v2678_v13  ;;  %v9513_v48 = vpop.f32.mrf.mxu0  ;;  %8030 = vpow2.f32 %v6545_v35  ;;  %3644 = vmatprep.subr.bf16.mxu0 %v7886_v44  ;;  %v2175_v44 = vadd.f32 %v9434_v49, %v9391_v54 }
 0x53e   : > { %v2534_v30 = vpop.f32.mrf.mxu1  ;;  %8032 = vtanh.f32 %v2923_v16 }
 0x53f   : > { %v2680_v57 = vadd.f32 %v2534_v30, %v2165_v10  ;;  %v2613_v4 = vpop.f32.mrf.mxu0  ;;  %8034 = vpow2.f32 %v6550_v20  ;;  %v6549_v10 = vmul.f32 -1.442695, %v2677_v2  ;;  %v2161_v2 = vadd.f32 %v9416_v15, %v9396_v58 }
 0x540   : > { %v8015_v55 = vpop.eup %8014  ;;  %v2536_v35 = vpop.f32.mrf.mxu1  ;;  %3645 = vmatpush1.bf16.msra.mxu0 %v7884_v28  ;;  %v2895_v28 = vadd.f32 %v9496_v0, %v2613_v4 }
 0x541   : > { %v8017_v3 = vpop.eup %8016  ;;  %v2909_v13 = vmul.f32 %v8015_v55, %v2893_v42  ;;  %v9528_v46 = vadd.f32 %v2536_v35, %v2167_v56  ;;  %v9530_v63 = vpop.f32.mrf.mxu0  ;;  %v2239_v56 = vadd.f32 %v9341_v25, %v9377_v47  ;;  %v2679_v15 = vadd.f32 %v2530_v7, %v2161_v2 }
 0x542   : > { %v2800_v16 = vadd.f32 1.0, %v8017_v3  ;;  %v2538_v24 = vpop.f32.mrf.mxu1  ;;  %v8019_v30 = vpop.eup %8018  ;;  %v2244_v7 = vadd.f32 %v9349_v31, %v9377_v47 }
 0x543   : > { %v2925_v8 = vadd.f32 %v2909_v13, %v2236_v62  ;;  %v2682_v36 = vadd.f32 %v2538_v24, %v2169_v52  ;;  %v9536_v42 = vpop.f32.mrf.mxu0  ;;  %v2177_v52 = vadd.f32 %v9437_v22, %v9396_v58  ;;  %v2797_v35 = vadd.f32 1.0, %v8019_v30 }
 0x544   : > { %11182 = vst [vmem:[#allocation39_spill] sm:$0xff] %v9536_v42  ;;  %v8021_v20 = vpop.eup %8020  ;;  %8036 = vrcp.f32 %v2800_v16  ;;  %v9540_v27 = vpop.f32.mrf.mxu1  ;;  %v2179_v22 = vadd.f32 %v9441_v37, %v9391_v54 }
 0x545   : > { %v8023_v55 = vpop.eup %8022  ;;  %8038 = vrcp.f32 %v2793_v21  ;;  %v2910_v62 = vmul.f32 %v8021_v20, %v2894_v50  ;;  %v9546_v61 = vpop.f32.mrf.mxu0  ;;  %v6552_v50 = vmul.f32 -1.442695, %v2680_v57  ;;  %v6551_v57 = vmul.f32 -1.442695, %v2679_v15  ;;  %v8480_v15 = vld [vmem:[#allocation10] sm:$0xff] }
 0x546   : > { %v2802_v25 = vadd.f32 1.0, %v8023_v55  ;;  %8040 = vpow2.f32 %v6549_v10  ;;  %v2544_v3 = vpop.f32.mrf.mxu1  ;;  %v8025_v13 = vpop.eup %8024 }
 0x547   : > { %8042 = vtanh.f32 %v2925_v8  ;;  %v9550_v16 = vadd.f32 %v2910_v62, %v2239_v56  ;;  %v2684_v21 = vadd.f32 %v2544_v3, %v2175_v44  ;;  %v9552_v24 = vpop.f32.mrf.mxu0  ;;  %v2955_v62 = vsub.f32 1.0, %v8025_v13 }
 0x548   : > { %v8027_v49 = vpop.eup %8026  ;;  %8044 = vrcp.f32 %v2802_v25  ;;  %v2546_v20 = vpop.f32.mrf.mxu1 }
 0x549   : > { %11183 = vst [vmem:[#allocation40_spill] sm:$0xff] %v9550_v16  ;;  %v8029_v42 = vpop.eup %8028  ;;  %v2804_v10 = vadd.f32 1.0, %v8027_v49  ;;  %v9557_v30 = vadd.f32 %v2546_v20, %v2177_v52  ;;  %v9559_v8 = vpop.f32.mrf.mxu0  ;;  %8046 = vrcp.f32 %v2797_v35  ;;  %v6554_v52 = vmul.f32 -1.442695, %v2682_v36 }
 0x54a   : > { %v2911_v56 = vmul.f32 %v8029_v42, %v2895_v28  ;;  %v2548_v55 = vpop.f32.mrf.mxu1  ;;  %v8031_v2 = vpop.eup %8030  ;;  %v2987_v28 = vmul.f32 %v8480_v15, %v8025_v13  ;;  %v2897_v36 = vadd.f32 %v9513_v48, %v9496_v0 }
 0x54b   : > { %8048 = vrcp.f32 %v2804_v10  ;;  %v9563_v4 = vadd.f32 %v2548_v55, %v2179_v22  ;;  %v9565_v44 = vpop.f32.mrf.mxu0  ;;  %v8033_v54 = vpop.eup %8032  ;;  %v2801_v20 = vadd.f32 1.0, %v8031_v2 }
 0x54c   : > { %8050 = vpow2.f32 %v6552_v50  ;;  %v2927_v37 = vadd.f32 %v2911_v56, %v2244_v7  ;;  %v9567_v25 = vpop.f32.mrf.mxu1  ;;  %v2971_v49 = vmul.f32 %v8033_v54, %v2955_v62  ;;  %v8035_v31 = vpop.eup %8034  ;;  %v6556_v7 = vmul.f32 -1.442695, %v2684_v21 }
 0x54d   : > { %11184 = vst [vmem:[#allocation41_spill] sm:$0xff] %v9567_v25  ;;  %v7387_v3 = vpop.f32.mrf.mxu0  ;;  %v2806_v22 = vadd.f32 1.0, %v8035_v31  ;;  %v6553_v54 = vmul.f32 -1.442695, %v9528_v46 }
 0x54e   : > { %8052 = vtanh.f32 %v2927_v37  ;;  %v9570_v42 = vadd.f32 %v7387_v3, %v9496_v0  ;;  %v2554_v35 = vpop.f32.mrf.mxu1  ;;  %v9577_v55 = vadd.f32 %v2987_v28, %v2971_v49  ;;  %v2255_v28 = vadd.f32 %v9351_v34, %v9377_v47 }
 0x54f   : > { %8054 = vpow2.f32 %v6551_v57  ;;  %v2688_v10 = vadd.f32 %v2554_v35, %v9452_v41  ;;  %v9573_v50 = vpop.f32.mrf.mxu0  ;;  %v2252_v41 = vadd.f32 %v9347_v29, %v9377_v47  ;;  %v2260_v34 = vadd.f32 %v9359_v38, %v9377_v47 }
 0x550   : > { %8056 = vpow2.f32 %v6554_v52  ;;  %v2556_v56 = vpop.f32.mrf.mxu1  ;;  %11185 = vst [vmem:[#allocation42_spill] sm:$0xff] %v9577_v55  ;;  %v2900_v38 = vadd.f32 %v9496_v0, %v9565_v44  ;;  %v2191_v44 = vadd.f32 %v9479_v1, %v9396_v58 }
 0x551   : > { %v8037_v62 = vpop.eup %8036  ;;  %8058 = vrcp.f32 %v2806_v22  ;;  %v9581_v13 = vadd.f32 %v2556_v56, %v9465_v14  ;;  %v7388_v2 = vpop.f32.mrf.mxu0  ;;  %v2898_v14 = vadd.f32 %v9530_v63, %v9496_v0 }
 0x552   : > { %v8039_v57 = vpop.eup %8038  ;;  %v2913_v37 = vmul.f32 %v8037_v62, %v2897_v36  ;;  %v9586_v48 = vadd.f32 %v7388_v2, %v9496_v0  ;;  %v2558_v21 = vpop.f32.mrf.mxu1  ;;  %8060 = vrcp.f32 %v2801_v20  ;;  %v8481_v36 = vld [vmem:[#allocation10 + $0x10] sm:$0xff]  ;;  %v2899_v62 = vadd.f32 %v9496_v0, %v9552_v24 }
 0x553   : > { %v8041_v52 = vpop.eup %8040  ;;  %v2690_v3 = vadd.f32 %v2558_v21, %v9474_v33  ;;  %v9589_v49 = vpop.f32.mrf.mxu0  ;;  %8062 = vpow2.f32 %v6556_v7  ;;  %v2957_v15 = vsub.f32 1.0, %v8039_v57  ;;  %v2989_v33 = vmul.f32 %v8481_v36, %v8039_v57 }
 0x554   : > { %11186 = vst [vmem:[#allocation43_spill] sm:$0xff] %v9589_v49  ;;  %v8043_v46 = vpop.eup %8042  ;;  %v2929_v31 = vadd.f32 %v2913_v37, %v2252_v41  ;;  %8064 = vpow2.f32 %v6553_v54  ;;  %v2805_v22 = vadd.f32 1.0, %v8041_v52  ;;  %v6560_v2 = vmul.f32 -1.442695, %v2688_v10 }
 0x555   : > { %v8045_v35 = vpop.eup %8044  ;;  %v9593_v29 = vpop.f32.mrf.mxu0  ;;  %v2973_v7 = vmul.f32 %v8043_v46, %v2957_v15  ;;  %v6557_v24 = vmul.f32 -1.442695, %v9557_v30  ;;  %v6562_v36 = vmul.f32 -1.442695, %v2690_v3  ;;  %v8482_v30 = vld [vmem:[#allocation10 + $0x20] sm:$0xff] }
 0x556   : > { %v2914_v20 = vmul.f32 %v8045_v35, %v2898_v14  ;;  %v8047_v56 = vpop.eup %8046  ;;  %8066 = vtanh.f32 %v2929_v31 }
 0x557   : > { %v9599_v63 = vpop.f32.mrf.mxu0  ;;  %v9605_v52 = vadd.f32 %v2989_v33, %v2973_v7  ;;  %8068 = vrcp.f32 %v2805_v22  ;;  %v2959_v10 = vsub.f32 1.0, %v8047_v56  ;;  %v2991_v7 = vmul.f32 %v8482_v30, %v8047_v56 }
 0x558   : > { %v8049_v54 = vpop.eup %8048  ;;  %v9601_v41 = vadd.f32 %v2914_v20, %v2255_v28  ;;  %8070 = vpow2.f32 %v6560_v2 }
 0x559   : > { %v8051_v37 = vpop.eup %8050  ;;  %v2915_v21 = vmul.f32 %v8049_v54, %v2899_v62  ;;  %11188 = vst [vmem:[#allocation45_spill] sm:$0xff] %v9605_v52  ;;  %v9607_v57 = vpop.f32.mrf.mxu0 }
 0x55a   : > { %11187 = vst [vmem:[#allocation44_spill] sm:$0xff] %v9601_v41  ;;  %v2808_v31 = vadd.f32 1.0, %v8051_v37  ;;  %v2560_v37 = vpop.f32.mrf.mxu1  ;;  %v8485_v41 = vld [vmem:[#allocation10 + $0x48] sm:$0xff] }
 0x55b   : > { %v8053_v14 = vpop.eup %8052  ;;  %v2931_v35 = vadd.f32 %v2915_v21, %v2260_v34  ;;  %v9610_v46 = vpop.f32.mrf.mxu0 }
 0x55c   : > { %v8055_v15 = vpop.eup %8054  ;;  %8072 = vrcp.f32 %v2808_v31  ;;  %v2975_v28 = vmul.f32 %v8053_v14, %v2959_v10  ;;  %v2263_v31 = vadd.f32 %v9372_v45, %v9377_v47 }
 0x55d   : > { %v8057_v20 = vpop.eup %8056  ;;  %8074 = vtanh.f32 %v2931_v35  ;;  %v9614_v33 = vpop.f32.mrf.mxu0  ;;  %v2807_v54 = vadd.f32 1.0, %v8055_v15 }
 0x55e   : > { %v8059_v22 = vpop.eup %8058  ;;  %v2810_v62 = vadd.f32 1.0, %v8057_v20  ;;  %8076 = vpow2.f32 %v6557_v24  ;;  %v9622_v3 = vadd.f32 %v2991_v7, %v2975_v28  ;;  %v6561_v24 = vmul.f32 -1.442695, %v9581_v13  ;;  %v9631_v13 = vpop.permute.xlu1 %3047 }
 0x55f   : > { %v2916_v2 = vmul.f32 %v8059_v22, %v2900_v38  ;;  %v9616_v34 = vpop.f32.mrf.mxu0  ;;  %v8061_v21 = vpop.eup %8060  ;;  %v2691_v20 = vadd.f32 %v2560_v37, %v2191_v44  ;;  %11190 = vst [vmem:[#allocation47_spill] sm:$0xff] %v9631_v13 }
 0x560   : > { %8078 = vrcp.f32 %v2810_v62  ;;  %11189 = vst [vmem:[#allocation46_spill] sm:$0xff] %v9622_v3  ;;  %v8063_v10 = vpop.eup %8062  ;;  %v2961_v28 = vsub.f32 1.0, %v8061_v21  ;;  %v3162_v3 = vld [vmem:[#allocation2 + $0xf0] sm:$0xff] }
 0x561   : > { %8080 = vpow2.f32 %v6562_v36  ;;  %v9625_v56 = vpop.f32.mrf.mxu0  ;;  %v8065_v14 = vpop.eup %8064  ;;  %v2812_v35 = vadd.f32 1.0, %v8063_v10  ;;  %v2932_v15 = vadd.f32 %v2916_v2, %v2263_v31  ;;  %v6563_v62 = vmul.f32 -1.442695, %v2691_v20  ;;  %v8483_v2 = vld [vmem:[#allocation10 + $0x30] sm:$0xff] }
 0x562   : > { %8082 = vrcp.f32 %v2807_v54  ;;  %v2809_v22 = vadd.f32 1.0, %v8065_v14  ;;  %v2993_v37 = vmul.f32 %v8483_v2, %v8061_v21  ;;  %v2901_v31 = vadd.f32 %v9546_v61, %v9496_v0 }
 0x563   : > { %v9627_v38 = vpop.f32.mrf.mxu0  ;;  %v8067_v45 = vpop.eup %8066  ;;  %8084 = vrcp.f32 %v2812_v35  ;;  %v2902_v61 = vadd.f32 %v9559_v8, %v9496_v0  ;;  %v2271_v2 = vadd.f32 %v9368_v43, %v9377_v47 }
 0x564   : > { %8086 = vpow2.f32 %v6561_v24  ;;  %v8069_v36 = vpop.eup %8068  ;;  %v2977_v7 = vmul.f32 %v8067_v45, %v2961_v28 }
 0x565   : > { %v9629_v1 = vpop.f32.mrf.mxu0  ;;  %8088 = vtanh.f32 %v2932_v15  ;;  %v8071_v54 = vpop.eup %8070  ;;  %v2268_v15 = vadd.f32 %v9357_v40, %v9377_v47  ;;  %v2963_v21 = vsub.f32 1.0, %v8069_v36 }
 0x566   : > { %8090 = vrcp.f32 %v2809_v22  ;;  %v2816_v10 = vadd.f32 1.0, %v8071_v54  ;;  %v9637_v24 = vadd.f32 %v2993_v37, %v2977_v7  ;;  %v9645_v22 = vpop.permute.xlu1 %3052 }
 0x567   : > { %v9633_v30 = vpop.f32.mrf.mxu0  ;;  %8092 = vpow2.f32 %v6563_v62  ;;  %11192 = vst [vmem:[#allocation49_spill] sm:$0xff] %v9645_v22  ;;  %v2903_v22 = vadd.f32 %v9496_v0, %v9573_v50 }
 0x568   : > { %11191 = vst [vmem:[#allocation48_spill] sm:$0xff] %v9637_v24  ;;  %8094 = vrcp.f32 %v2816_v10 }
 0x569   : > { %v8073_v44 = vpop.eup %8072  ;;  %v7416_v14 = vpop.f32.mrf.mxu0 }
 0x56a   : > { %v8075_v35 = vpop.eup %8074  ;;  %v2917_v20 = vmul.f32 %v8073_v44, %v2901_v31  ;;  %v8484_v44 = vld [vmem:[#allocation10 + $0x40] sm:$0xff]  ;;  %v9653_v55 = vpop.permute.xlu1 %3062 }
 0x56b   : > { %v8077_v13 = vpop.eup %8076  ;;  %v9641_v45 = vpop.f32.mrf.mxu0  ;;  %v2979_v54 = vmul.f32 %v8075_v35, %v2963_v21  ;;  %v2995_v10 = vmul.f32 %v8484_v44, %v8069_v36  ;;  %11194 = vst [vmem:[#allocation51_spill] sm:$0xff] %v9653_v55  ;;  %v3160_v36 = vld [vmem:[#allocation2 + $0xa0] sm:$0xff]  ;;  %v3159_v44 = vld [vmem:[#allocation2 + $0x88] sm:$0xff] }
 0x56c   : > { %v2933_v28 = vadd.f32 %v2917_v20, %v2268_v15  ;;  %v2813_v62 = vadd.f32 1.0, %v8077_v13  ;;  %v3163_v20 = vld [vmem:[#allocation2 + $0x140] sm:$0xff]  ;;  %v2276_v13 = vadd.f32 %v9388_v53, %v9377_v47 }
 0x56d   : > { %v8079_v7 = vpop.eup %8078  ;;  %v7419_v37 = vpop.f32.mrf.mxu0  ;;  %v9655_v43 = vadd.f32 %v2995_v10, %v2979_v54 }
 0x56e   : > { %v8081_v40 = vpop.eup %8080  ;;  %8096 = vtanh.f32 %v2933_v28  ;;  %v2918_v31 = vmul.f32 %v8079_v7, %v2902_v61  ;;  %v3161_v28 = vld [vmem:[#allocation2 + $0x170] sm:$0xff]  ;;  %v9659_v54 = vpop.permute.xlu1 %3072 }
 0x56f   : > { %v2818_v24 = vadd.f32 1.0, %v8081_v40  ;;  %v3311_v15 = vpop.f32.mrf.mxu0  ;;  %v8083_v52 = vpop.eup %8082  ;;  %11195 = vst [vmem:[#allocation52_spill] sm:$0xff] %v9655_v43 }
 0x570   : > { %v9649_v8 = vadd.f32 %v2918_v31, %v2271_v2  ;;  %v8085_v35 = vpop.eup %8084  ;;  %v3340_v2 = vadd.f32 %v7419_v37, %v3162_v3  ;;  %v2964_v50 = vsub.f32 1.0, %v8083_v52  ;;  %v3338_v10 = vadd.f32 %v3311_v15, %v3160_v36 }
 0x571   : > { %8098 = vrcp.f32 %v2818_v24  ;;  %v7420_v21 = vpop.f32.mrf.mxu0  ;;  %v8087_v61 = vpop.eup %8086  ;;  %v2919_v7 = vmul.f32 %v8085_v35, %v2903_v22  ;;  %v3158_v24 = vld [vmem:[#allocation2 + $0x20] sm:$0xff]  ;;  %v2996_v16 = vmul.f32 %v8485_v41, %v8083_v52  ;;  %v3337_v22 = vadd.f32 %v7416_v14, %v3159_v44 }
 0x572   : > { %11193 = vst [vmem:[#allocation50_spill] sm:$0xff] %v9649_v8  ;;  %8100 = vrcp.f32 %v2813_v62  ;;  %v3341_v40 = vadd.f32 %v7420_v21, %v3163_v20  ;;  %v8089_v31 = vpop.eup %8088  ;;  %v2817_v53 = vadd.f32 1.0, %v8087_v61  ;;  %v3157_v62 = vld [vmem:[#allocation2 + $0xf8] sm:$0xff]  ;;  %v3083_v15 = vpop.permute.xlu1 %3082  ;;  %v3156_v21 = vld [vmem:[#allocation2 + $0xe8] sm:$0xff] }
 0x573   : > { %v3314_v0 = vpop.f32.mrf.mxu0  ;;  %v2935_v55 = vadd.f32 %v2919_v7, %v2276_v13  ;;  %v2980_v8 = vmul.f32 %v8089_v31, %v2964_v50  ;;  %v8091_v25 = vpop.eup %8090  ;;  %v3336_v13 = vadd.f32 %v9629_v1, %v3158_v24  ;;  %v3155_v7 = vld [vmem:[#allocation2 + $0x168] sm:$0xff]  ;;  %v3334_v1 = vadd.f32 %v9633_v30, %v3156_v21  ;;  %v3148_v21 = vld [vmem:[#allocation2 + $0x80] sm:$0xff] }
 0x574   : > { %v3349_v43 = vpack.c.bf16 %v3341_v40, %v3340_v2  ;;  %v3339_v49 = vadd.f32 %v3314_v0, %v3161_v28  ;;  %v8093_v37 = vpop.eup %8092  ;;  %v2965_v14 = vsub.f32 1.0, %v8091_v25  ;;  %v3333_v40 = vadd.f32 %v9625_v56, %v3155_v7 }
 0x575   : > { %8102 = vtanh.f32 %v2935_v55  ;;  %v3012_v20 = vadd.f32 %v2996_v16, %v2980_v8  ;;  %v8095_v35 = vpop.eup %8094  ;;  %v3347_v52 = vpack.c.bf16 %v3337_v22, %v3336_v13  ;;  %v3335_v55 = vadd.f32 %v9641_v45, %v3157_v62  ;;  %v8487_v62 = vld [vmem:[#allocation10 + $0x60] sm:$0xff] }
 0x576   : > { %v3348_v3 = vpack.c.bf16 %v3339_v49, %v3338_v10  ;;  %7421 = vmatprep.subr.bf16.mxu1 %v3349_v43  ;;  %v2921_v36 = vmul.f32 %v8095_v35, %v9570_v42  ;;  %8104 = vrcp.f32 %v2817_v53  ;;  %v2819_v61 = vadd.f32 1.0, %v8093_v37  ;;  %v3152_v10 = vld [vmem:[#allocation2 + $0xe0] sm:$0xff]  ;;  %v3150_v35 = vld [vmem:[#allocation2 + $0x138] sm:$0xff] }
 0x577   : > { %7422 = vmatpush3.bf16.msra.mxu1 %v3349_v43  ;;  %v3028_v28 = vsub.f32 %v3012_v20, %v8485_v41  ;;  %v9668_v43 = vld [vmem:[#allocation10 + $0x50] sm:$0xff]  ;;  %v3154_v41 = vld [vmem:[#allocation2 + $0xb8] sm:$0xff]  ;;  %v3346_v31 = vpack.c.bf16 %v3335_v55, %v3334_v1  ;;  %v3330_v37 = vadd.f32 %v9616_v34, %v3152_v10  ;;  %v8493_v10 = vld [vmem:[%s8924_s21 + $0x20] sm:$0xff]  }
 0x578   : > { %7423 = vmatprep.subr.bf16.mxu1 %v3348_v3  ;;  %v2937_v16 = vadd.f32 %v2921_v36, %v9384_v51  ;;  %v2997_v42 = vmul.f32 %v9668_v43, %v8091_v25  ;;  %v3153_v51 = vld [vmem:[#allocation2 + $0xa8] sm:$0xff]  ;;  %v3332_v30 = vadd.f32 %v9614_v33, %v3154_v41  ;;  %v3149_v36 = vld [vmem:[#allocation2 + $0x130] sm:$0xff]  ;;  %v8489_v41 = vld [vmem:[#allocation10 + $0x78] sm:$0xff] }
 0x579   : > { %v9664_v2 = vmul.f32 %v3083_v15, %v3028_v28  ;;  %v3331_v24 = vadd.f32 %v9627_v38, %v3153_v51  ;;  %v3328_v38 = vadd.f32 %v9593_v29, %v3150_v35  ;;  %v3327_v55 = vadd.f32 %v9610_v46, %v3149_v36  ;;  %v7867_v46 = vld [vmem:[%s11083_s6 + $0x170] ss:$12 sps:$4 sm:$0xff]   ;;  %v7879_v51 = vld [vmem:[%s11083_s6 + $0x128] ss:$12 sps:$4 sm:$0xff]   ;;  %v1517_v36 = vld [vmem:[%s8936_s30 + $0x80] sm:$0xff] }
 0x57a   : > { %8106 = vtanh.f32 %v2937_v16  ;;  %v3345_v53 = vpack.c.bf16 %v3333_v40, %v3332_v30  ;;  %v8492_v30 = vld [vmem:[%s8924_s21 + $0x18] sm:$0xff]   ;;  %v7895_v35 = vld [vmem:[%s11083_s6 + $0xc8] ss:$12 sps:$4 sm:$0xff]   ;;  %4593 = vperm.xlu0 %7774, %v1517_v36  }
 0x57b   : > { %v8097_v49 = vpop.eup %8096  ;;  %7424 = vmatpush3.bf16.msra.mxu1 %v3348_v3  ;;  %8108 = vrcp.f32 %v2819_v61  ;;  %v3151_v3 = vld [vmem:[#allocation2 + $0x120] sm:$0xff]  ;;  %v3344_v15 = vpack.c.bf16 %v3331_v24, %v3330_v37  ;;  %v8494_v24 = vld [vmem:[%s8924_s21 + $0x28] sm:$0xff]  }
 0x57c   : > { %v2981_v8 = vmul.f32 %v8097_v49, %v2965_v14  ;;  %7425 = vmatprep.subr.bf16.mxu1 %v3347_v52  ;;  %v3329_v13 = vadd.f32 %v9607_v57, %v3151_v3  ;;  %v8488_v49 = vld [vmem:[#allocation10 + $0x70] sm:$0xff]  ;;  %v3326_v57 = vadd.f32 %v9599_v63, %v3148_v21  ;;  %v7871_v63 = vld [vmem:[%s11083_s6 + $0x158] ss:$12 sps:$4 sm:$0xff]   ;;  %v7890_v37 = vld [vmem:[%s11083_s6 + $0xdc] ss:$12 sps:$4 sm:$0xff]  }
 0x57d   : > { %v7888_v3 = vld [vmem:[%s11083_s6 + $0xd8] ss:$12 sps:$4 sm:$0xff]   ;;  %3646 = vmatprep.subr.bf16.mxu0 %v7890_v37  ;;  %v7913_v36 = vld [vmem:[%s11164_s23 + $0xf4] ss:$12 sps:$4 sm:$0xff]  }
 0x57e   : > { %v8099_v45 = vpop.eup %8098  ;;  %v9672_v44 = vadd.f32 %v2997_v42, %v2981_v8  ;;  %v3343_v34 = vpack.c.bf16 %v3329_v13, %v3328_v38  ;;  %v3342_v29 = vpack.c.bf16 %v3327_v55, %v3326_v57  ;;  %3647 = vmatpush1.bf16.msra.mxu0 %v7888_v3  ;;  %v7920_v13 = vld [vmem:[%s11164_s23 + $0x170] ss:$12 sps:$4 sm:$0xff]   ;;  %v1518_v38 = vld [vmem:[%s8936_s30 + $0x88] sm:$0xff]  ;;  %v7901_v57 = vld [vmem:[%s11164_s23 + $0x154] ss:$12 sps:$4 sm:$0xff]  }
 0x57f   : > { %v8101_v0 = vpop.eup %8100  ;;  %v2922_v50 = vmul.f32 %v8099_v45, %v9586_v48  ;;  %7426 = vmatpush3.bf16.msra.mxu1 %v3347_v52  ;;  %4598 = vperm.xlu1 %7775, %v1518_v38   ;;  %v7905_v3 = vld [vmem:[%s11164_s23 + $0x120] ss:$12 sps:$4 sm:$0xff]   ;;  %v7925_v38 = vld [vmem:[%s11164_s23 + $0xf8] ss:$12 sps:$4 sm:$0xff]  }
 0x580   : > { %7427 = vmatprep.subr.bf16.mxu1 %v3346_v31  ;;  %v2967_v22 = vsub.f32 1.0, %v8101_v0  ;;  %v2999_v20 = vmul.f32 %v8487_v62, %v8101_v0  ;;  %v8491_v0 = vld [vmem:[%s8924_s21 + $0x10] sm:$0xff]   ;;  %v7892_v62 = vld [vmem:[%s11083_s6 + $0xc0] ss:$12 sps:$4 sm:$0xff]  }
 0x581   : > { %v2938_v25 = vadd.f32 %v2922_v50, %v9399_v59  ;;  %v7875_v50 = vld [vmem:[%s11083_s6 + $0x140] ss:$12 sps:$4 sm:$0xff]  }
 0x582   : > { %v8103_v56 = vpop.eup %8102 }
 0x583   : > { %7428 = vmatpush3.bf16.msra.mxu1 %v3346_v31  ;;  %8110 = vtanh.f32 %v2938_v25  ;;  %v2983_v48 = vmul.f32 %v8103_v56, %v2967_v22  ;;  %v8105_v33 = vpop.eup %8104  ;;  %v8490_v31 = vld [vmem:[%s8924_s21 + $0x8] sm:$0xff]   ;;  %v7883_v25 = vld [vmem:[%s11083_s6 + $0x110] ss:$12 sps:$4 sm:$0xff]  }
 0x584   : > { %7429 = vmatprep.subr.bf16.mxu1 %v3345_v53  ;;  %v2969_v28 = vsub.f32 1.0, %v8105_v33  ;;  %v3001_v61 = vmul.f32 %v8488_v49, %v8105_v33  ;;  %v8495_v22 = vld [vmem:[%s8924_s21 + $0x30] sm:$0xff]   ;;  %v8496_v56 = vld [vmem:[%s8924_s21 + $0x38] sm:$0xff]  }
 0x585   : > { %v9680_v59 = vadd.f32 %v2999_v20, %v2983_v48  ;;  %v7891_v48 = vld [vmem:[%s11083_s6 + $0xe0] ss:$12 sps:$4 sm:$0xff]   ;;  %v7894_v20 = vld [vmem:[%s11083_s6 + $0xc4] ss:$12 sps:$4 sm:$0xff]   ;;  %v7896_v49 = vld [vmem:[%s11164_s23 + $0x168] ss:$12 sps:$4 sm:$0xff]  }
 0x586   : > { %3648 = vmatprep.subr.bf16.mxu0 %v7894_v20  ;;  %v7898_v33 = vld [vmem:[%s11164_s23 + $0x16c] ss:$12 sps:$4 sm:$0xff]  }
 0x587   : > { %7430 = vmatpush3.bf16.msra.mxu1 %v3345_v53  ;;  %v8107_v52 = vpop.eup %8106  ;;  %v7887_v53 = vld [vmem:[%s11083_s6 + $0xf8] ss:$12 sps:$4 sm:$0xff]   ;;  %3649 = vmatpush1.bf16.msra.mxu0 %v7892_v62  ;;  %v7924_v62 = vld [vmem:[%s11164_s23 + $0x110] ss:$12 sps:$4 sm:$0xff]  }
 0x588   : > { %7431 = vmatprep.subr.bf16.mxu1 %v3344_v15  ;;  %v2985_v14 = vmul.f32 %v8107_v52, %v2969_v28  ;;  %v8109_v7 = vpop.eup %8108  ;;  %7485 = vmatprep.subr.bf16.mxu0 %v7920_v13  ;;  %v1519_v28 = vld [vmem:[%s8936_s30 + $0x90] sm:$0xff]  ;;  %v1520_v52 = vld [vmem:[%s8936_s30 + $0x98] sm:$0xff] }
 0x589   : > { %v2970_v1 = vsub.f32 1.0, %v8109_v7  ;;  %v3002_v45 = vmul.f32 %v8489_v41, %v8109_v7  ;;  %4603 = vperm.xlu0 %7774, %v1519_v28   ;;  %4608 = vperm.xlu1 %7775, %v1520_v52   ;;  %v7899_v41 = vld [vmem:[%s11164_s23 + $0x150] ss:$12 sps:$4 sm:$0xff]   ;;  %v1525_v28 = vld [vmem:[%s8936_s30 + $0xc0] sm:$0xff] }
 0x58a   : > { %v9685_v16 = vadd.f32 %v3001_v61, %v2985_v14  ;;  %v7911_v52 = vld [vmem:[%s11164_s23 + $0xf0] ss:$12 sps:$4 sm:$0xff]  }
 0x58b   : > { %7432 = vmatpush3.bf16.msra.mxu1 %v3344_v15 }
 0x58c   : > { %7433 = vmatprep.subr.bf16.mxu1 %v3343_v34  ;;  %11196 = vst [vmem:[#allocation53_spill] sm:$0xff] %v9685_v16  ;;  %v10004_v16 = vld [vmem:[#allocation10 + $0x38] sm:$0xff] }
 0x58f   : > { %7434 = vmatpush3.bf16.msra.mxu1 %v3343_v34 }
 0x590   : > { %v8111_v8 = vpop.eup %8110  ;;  %7435 = vmatprep.subr.bf16.mxu1 %v3342_v29 }
 0x591   : > { %v2986_v42 = vmul.f32 %v8111_v8, %v2970_v1  ;;  %v11198_v8 = vmov 0  }
 0x593   : > { %v9690_v40 = vadd.f32 %v3002_v45, %v2986_v42  ;;  %7436 = vmatpush3.bf16.msra.mxu1 %v3342_v29  ;;  %v7921_v29 = vld [vmem:[%s11164_s23 + $0x158] ss:$12 sps:$4 sm:$0xff]   ;;  %v1522_v42 = vld [vmem:[%s8936_s30 + $0xa8] sm:$0xff] }
 0x594   : > { %7453 = vmatprep.subr.bf16.mxu1 %v7867_v46  ;;  %4618 = vperm.xlu1 %7775, %v1522_v42   ;;  %v7928_v42 = vld [vmem:[#allocation6 + $0xb8] sm:$0xff]  }
 0x595   : > { %11197 = vst [vmem:[#allocation54_spill] sm:$0xff] %v9690_v40 }
 0x596   : > { %7438 = vmatmul.mubr.bf16.vlgmr.msra.gmra.mxu1 %v8490_v31  ;;  %v7922_v31 = vld [vmem:[%s11164_s23 + $0x140] ss:$12 sps:$4 sm:$0xff]  }
 0x597   : > { %7441 = vmatprep.mubr.bf16.mxu1 %v8491_v0  ;;  %7454 = vmatpush3.bf16.msra.mxu1 %v7867_v46  ;;  %v1521_v46 = vld [vmem:[%s8936_s30 + $0xa0] sm:$0xff] }
 0x598   : > { %7455 = vmatprep.subr.bf16.mxu1 %v7871_v63  ;;  %4613 = vperm.xlu0 %7774, %v1521_v46   ;;  %v7917_v46 = vld [vmem:[%s11164_s23 + $0xc0] ss:$12 sps:$4 sm:$0xff]  }
 0x59b   : > { %7456 = vmatpush3.bf16.msra.mxu1 %v7871_v63  ;;  %v7904_v63 = vld [vmem:[%s11164_s23 + $0x13c] ss:$12 sps:$4 sm:$0xff]  }
 0x59c   : > { %7457 = vmatprep.subr.bf16.mxu1 %v7875_v50 }
 0x59e   : > { %7442 = vmatmul.mubr.bf16.gmra.mxu1 %v8492_v30  ;;  %v7902_v30 = vld [vmem:[%s11164_s23 + $0x138] ss:$12 sps:$4 sm:$0xff]  }
 0x59f   : > { %7445 = vmatprep.mubr.bf16.mxu1 %v8493_v10  ;;  %7458 = vmatpush3.bf16.msra.mxu1 %v7875_v50 }
 0x5a0   : > { %7459 = vmatprep.subr.bf16.mxu1 %v7879_v51 }
 0x5a3   : > { %7460 = vmatpush3.bf16.msra.mxu1 %v7879_v51 }
 0x5a4   : > { %7461 = vmatprep.subr.bf16.mxu1 %v7883_v25 }
 0x5a6   : > { %7446 = vmatmul.mubr.bf16.gmra.mxu1 %v8494_v24 }
 0x5a7   : > { %7449 = vmatprep.mubr.bf16.mxu1 %v8495_v22  ;;  %7462 = vmatpush3.bf16.msra.mxu1 %v7883_v25  ;;  %v7907_v25 = vld [vmem:[%s11164_s23 + $0x124] ss:$12 sps:$4 sm:$0xff]  }
 0x5a8   : > { %7463 = vmatprep.subr.bf16.mxu1 %v7887_v53  ;;  %v1523_v22 = vld [vmem:[%s8936_s30 + $0xb0] sm:$0xff] }
 0x5a9   : > { %4623 = vperm.xlu0 %7774, %v1523_v22   ;;  %v1531_v22 = vld [vmem:[%s8936_s30 + $0xf0] sm:$0xff] }
 0x5ab   : > { %7464 = vmatpush3.bf16.msra.mxu1 %v7887_v53  ;;  %v7923_v53 = vld [vmem:[%s11164_s23 + $0x128] ss:$12 sps:$4 sm:$0xff]  }
 0x5ac   : > { %7465 = vmatprep.subr.bf16.mxu1 %v7891_v48 }
 0x5ad   : > { %4633 = vperm.xlu0 %7774, %v1525_v28   ;;  %v6558_v28 = vmul.f32 -1.442695, %v9563_v4  ;;  %v9882_v4 = vld [vmem:[%s11180_s7] ss:$0 sm:$0xff] }
 0x5ae   : > { %7450 = vmatmul.mubr.bf16.gmra.mxu1 %v8496_v56  ;;  %v1524_v56 = vld [vmem:[%s8936_s30 + $0xb8] sm:$0xff] }
 0x5af   : > { %7466 = vmatpush3.bf16.msra.mxu1 %v7891_v48  ;;  %v7910_v48 = vld [vmem:[%s11164_s23 + $0x10c] ss:$12 sps:$4 sm:$0xff]   ;;  %4628 = vperm.xlu1 %7775, %v1524_v56   ;;  %v8497_v56 = vld [vmem:[%s8924_s21] sm:$0xff]  }
 0x5b0   : > { %7467 = vmatprep.subr.bf16.mxu1 %v7895_v35 }
 0x5b3   : > { %7468 = vmatpush3.bf16.msra.mxu1 %v7895_v35 }
 0x5b4   : > { %4005 = vmatprep.subr.bf16.mxu1 %v7898_v33 }
 0x656   : > { %v7439_v15 = vpop.f32.mrf.mxu1 }
 0x658   : > { %v3384_v21 = vpop.f32.mrf.mxu1 }
 0x65a   : > { %v7440_v34 = vpop.f32.mrf.mxu1 }
 0x65b   : > { %v3448_v61 = vpack.c.bf16 %v7440_v34, %v7439_v15 }
 0x65c   : > { %v3387_v55 = vpop.f32.mrf.mxu1 }
 0x65d   : > { %v3447_v14 = vpack.c.bf16 %v3387_v55, %v3384_v21  ;;  %v7916_v55 = vld [vmem:[%s11164_s23 + $0xdc] ss:$12 sps:$4 sm:$0xff]  }
 0x65e   : > { %v7443_v7 = vpop.f32.mrf.mxu1 }
 0x65f   : > { %3667 = vmatmul.mubr.bf16.vlgmr.msra.gmra.mxu0 %v3447_v14  ;;  %7469 = vmatprep.mubr.bf16.mxu1 %v3447_v14  ;;  %v7926_v14 = vld [vmem:[%s11164_s23 + $0xe0] ss:$12 sps:$4 sm:$0xff]  }
 0x660   : > { %v3400_v1 = vpop.f32.mrf.mxu1  ;;  %7470 = vmatmul.mubr.bf16.vlgmr.msra.gmra.mxu1 %v3448_v61  ;;  %3676 = vmatprep.mubr.bf16.mxu0 %v11198_v8 }
 0x661   : > { %4006 = vmatpush1.bf16.msra.mxu1 %v7896_v49  ;;  %7486 = vmatpush3.bf16.msra.mxu0 %v7920_v13  ;;  %v7908_v13 = vld [vmem:[%s11164_s23 + $0x108] ss:$12 sps:$4 sm:$0xff]  }
 0x662   : > { %v7444_v45 = vpop.f32.mrf.mxu1  ;;  %4007 = vmatprep.subr.bf16.mxu1 %v7901_v57  ;;  %7487 = vmatprep.subr.bf16.mxu0 %v7921_v29  ;;  %v7914_v57 = vld [vmem:[%s11164_s23 + $0xd8] ss:$12 sps:$4 sm:$0xff]  }
 0x663   : > { %v3450_v0 = vpack.c.bf16 %v7444_v45, %v7443_v7  ;;  %v7930_v45 = vld [vmem:[#allocation6 + $0xa8] sm:$0xff]  }
 0x664   : > { %v3403_v50 = vpop.f32.mrf.mxu1 }
 0x665   : > { %v3449_v51 = vpack.c.bf16 %v3403_v50, %v3400_v1  ;;  %4008 = vmatpush1.bf16.msra.mxu1 %v7899_v41  ;;  %7488 = vmatpush3.bf16.msra.mxu0 %v7921_v29  ;;  %v7919_v29 = vld [vmem:[%s11164_s23 + $0xc4] ss:$12 sps:$4 sm:$0xff]   ;;  %v7927_v1 = vld [vmem:[%s11164_s23 + $0xc8] ss:$12 sps:$4 sm:$0xff]   ;;  %v7932_v50 = vld [vmem:[#allocation6 + $0x98] sm:$0xff]  }
 0x666   : > { %v7447_v10 = vpop.f32.mrf.mxu1  ;;  %4009 = vmatprep.subr.bf16.mxu1 %v7904_v63  ;;  %7489 = vmatprep.subr.bf16.mxu0 %v7922_v31  ;;  %v7929_v41 = vld [vmem:[#allocation6 + $0xb0] sm:$0xff]   ;;  %v1526_v63 = vld [vmem:[%s8936_s30 + $0xc8] sm:$0xff] }
 0x667   : > { %3677 = vmatmul.mubr.bf16.gmra.mxu0 %v3448_v61  ;;  %7473 = vmatprep.mubr.bf16.mxu1 %v3449_v51 }
 0x668   : > { %v3416_v24 = vpop.f32.mrf.mxu1  ;;  %7474 = vmatmul.mubr.bf16.gmra.mxu1 %v3450_v0  ;;  %3686 = vmatprep.mubr.bf16.mxu0 %v11198_v8 }
 0x669   : > { %4010 = vmatpush1.bf16.msra.mxu1 %v7902_v30  ;;  %7490 = vmatpush3.bf16.msra.mxu0 %v7922_v31  ;;  %v7931_v31 = vld [vmem:[#allocation6 + $0xa0] sm:$0xff]   ;;  %v7933_v30 = vld [vmem:[#allocation6 + $0x90] sm:$0xff]  }
 0x66a   : > { %v7448_v37 = vpop.f32.mrf.mxu1  ;;  %4011 = vmatprep.subr.bf16.mxu1 %v7907_v25  ;;  %7491 = vmatprep.subr.bf16.mxu0 %v7923_v53  ;;  %v7934_v25 = vld [vmem:[#allocation6 + $0x88] sm:$0xff]  }
 0x66b   : > { %v3452_v20 = vpack.c.bf16 %v7448_v37, %v7447_v10  ;;  %4638 = vperm.xlu1 %7775, %v1526_v63   ;;  %v1529_v10 = vld [vmem:[%s8936_s30 + $0xe0] sm:$0xff]  ;;  %v6534_v37 = vmul.f32 -1.442695, %v9414_v32 }
 0x66c   : > { %v3419_v35 = vpop.f32.mrf.mxu1 }
 0x66d   : > { %v3451_v33 = vpack.c.bf16 %v3419_v35, %v3416_v24  ;;  %4012 = vmatpush1.bf16.msra.mxu1 %v7905_v3  ;;  %7492 = vmatpush3.bf16.msra.mxu0 %v7923_v53  ;;  %v1530_v53 = vld [vmem:[%s8936_s30 + $0xe8] sm:$0xff]  ;;  %v7935_v24 = vld [vmem:[#allocation6 + $0x80] sm:$0xff]   ;;  %v1532_v3 = vld [vmem:[%s8936_s30 + $0xf8] sm:$0xff]  ;;  %8112 = vpow2.f32 %v6534_v37 }
 0x66e   : > { %v7451_v15 = vpop.f32.mrf.mxu1  ;;  %4013 = vmatprep.subr.bf16.mxu1 %v7910_v48  ;;  %7493 = vmatprep.subr.bf16.mxu0 %v7924_v62  ;;  %v6542_v48 = vmul.f32 -1.442695, %v9443_v9 }
 0x66f   : > { %3687 = vmatmul.mubr.bf16.gmra.mxu0 %v3449_v51  ;;  %7477 = vmatprep.mubr.bf16.mxu1 %v3451_v33  ;;  %v1528_v51 = vld [vmem:[%s8936_s30 + $0xd8] sm:$0xff] }
 0x670   : > { %v3432_v21 = vpop.f32.mrf.mxu1  ;;  %7478 = vmatmul.mubr.bf16.gmra.mxu1 %v3452_v20  ;;  %3696 = vmatprep.mubr.bf16.mxu0 %v11198_v8  ;;  %8114 = vpow2.f32 %v6542_v48 }
 0x671   : > { %4014 = vmatpush1.bf16.msra.mxu1 %v7908_v13  ;;  %7494 = vmatpush3.bf16.msra.mxu0 %v7924_v62  ;;  %v2121_v62 = vadd.f32 %v9343_v26, %v9396_v58  ;;  %v11201_v26 = vld [vmem:[#allocation31_spill] sm:$0xff] }
 0x672   : > { %v7452_v34 = vpop.f32.mrf.mxu1  ;;  %4015 = vmatprep.subr.bf16.mxu1 %v7913_v36  ;;  %7495 = vmatprep.subr.bf16.mxu0 %v7925_v38  ;;  %v11199_v36 = vld [vmem:[#allocation34_spill] sm:$0xff] }
 0x673   : > { %v3454_v49 = vpack.c.bf16 %v7452_v34, %v7451_v15  ;;  %4648 = vperm.xlu1 %7775, %v1528_v51   ;;  %v2663_v35 = vadd.f32 %v9418_v39, %v2121_v62  ;;  %v2151_v34 = vadd.f32 %v11201_v26, %v9396_v58  ;;  %v11202_v39 = vld [vmem:[#allocation36_spill] sm:$0xff] }
 0x674   : > { %v3435_v61 = vpop.f32.mrf.mxu1 }
 0x675   : > { %v3453_v7 = vpack.c.bf16 %v3435_v61, %v3432_v21  ;;  %4016 = vmatpush1.bf16.msra.mxu1 %v7911_v52  ;;  %7496 = vmatpush3.bf16.msra.mxu0 %v7925_v38  ;;  %v6535_v15 = vmul.f32 -1.442695, %v2663_v35  ;;  %v11200_v21 = vld [vmem:[#allocation28_spill] sm:$0xff]  ;;  %v11204_v61 = vld [vmem:[#allocation33_spill] sm:$0xff] }
 0x676   : > { %4017 = vmatprep.subr.bf16.mxu1 %v7916_v55  ;;  %7497 = vmatprep.subr.bf16.mxu0 %v7926_v14  ;;  %v2141_v9 = vadd.f32 %v11200_v21, %v9396_v58 }
 0x677   : > { %3697 = vmatmul.mubr.bf16.gmra.mxu0 %v3450_v0  ;;  %7481 = vmatprep.mubr.bf16.mxu1 %v3453_v7  ;;  %v1527_v0 = vld [vmem:[%s8936_s30 + $0xd0] sm:$0xff] }
 0x678   : > { %7482 = vmatmul.mubr.bf16.gmra.mxu1 %v3454_v49  ;;  %3706 = vmatprep.mubr.bf16.mxu0 %v11198_v8  ;;  %v2671_v55 = vadd.f32 %v11202_v39, %v2141_v9 }
 0x679   : > { %4018 = vmatpush1.bf16.msra.mxu1 %v7914_v57  ;;  %4037 = vmatprep.mubr.bf16.mxu1 %v11198_v8 }
 0x67a   : > { %4019 = vmatprep.subr.bf16.mxu1 %v7919_v29  ;;  %7498 = vmatpush3.bf16.msra.mxu0 %v7926_v14  ;;  %v6543_v57 = vmul.f32 -1.442695, %v2671_v55 }
 0x67b   : > { %7499 = vmatprep.subr.bf16.mxu0 %v7927_v1  ;;  %4643 = vperm.xlu0 %7774, %v1527_v0   ;;  %v11206_v0 = vld [vmem:[#allocation25_spill] sm:$0xff] }
 0x67c   : > { %4658 = vperm.xlu1 %7775, %v1530_v53  }
 0x67d   : > { %4020 = vmatpush1.bf16.msra.mxu1 %v7917_v46  ;;  %v11205_v46 = vld [vmem:[#allocation38_spill] sm:$0xff] }
 0x67e   : > { %7500 = vmatpush3.bf16.msra.mxu0 %v7927_v1 }
 0x67f   : > { %3707 = vmatmul.mubr.bf16.gmra.mxu0 %v3451_v33  ;;  %7517 = vmatprep.subr.bf16.mxu0 %v7928_v42  ;;  %v2131_v33 = vadd.f32 %v9353_v19, %v9396_v58  ;;  %v11203_v19 = vld [vmem:[#allocation37_spill] sm:$0xff] }
 0x680   : > { %4038 = vmatmul.mubr.bf16.vlgmr.msra.gmra.mxu1 %v9095_v60  ;;  %3716 = vmatprep.mubr.bf16.mxu0 %v11198_v8  ;;  %v2675_v14 = vadd.f32 %v11203_v19, %v2151_v34  ;;  %v11211_v34 = vld [vmem:[#allocation26_spill] sm:$0xff] }
 0x681   : > { %4047 = vmatprep.mubr.bf16.mxu1 %v11198_v8  ;;  %4653 = vperm.xlu0 %7774, %v1529_v10   ;;  %v2667_v38 = vadd.f32 %v11199_v36, %v2131_v33  ;;  %v2247_v39 = vadd.f32 %v11211_v34, %v9377_v47 }
 0x682   : > { %4668 = vperm.xlu1 %7775, %v1532_v3   ;;  %v6547_v29 = vmul.f32 -1.442695, %v2675_v14 }
 0x683   : > { %v6539_v32 = vmul.f32 -1.442695, %v2667_v38 }
 0x685   : > { %4663 = vperm.xlu0 %7774, %v1531_v22   ;;  %v11208_v22 = vld [vmem:[#allocation41_spill] sm:$0xff] }
 0x687   : > { %3717 = vmatmul.mubr.bf16.gmra.mxu0 %v3452_v20  ;;  %v8113_v20 = vpop.eup %8112 }
 0x688   : > { %4048 = vmatmul.mubr.bf16.gmra.mxu1 %v9098_v5  ;;  %3726 = vmatprep.mubr.bf16.mxu0 %v11198_v8  ;;  %v2790_v13 = vadd.f32 1.0, %v8113_v20  ;;  %v8115_v52 = vpop.eup %8114 }
 0x689   : > { %4057 = vmatprep.mubr.bf16.mxu1 %v11198_v8 }
 0x68a   : > { %8116 = vrcp.f32 %v2790_v13 }
 0x68b   : > { %8118 = vpow2.f32 %v6535_v15 }
 0x68c   : > { %8120 = vpow2.f32 %v6539_v32 }
 0x68d   : > { %8122 = vpow2.f32 %v6558_v28 }
 0x68f   : > { %3727 = vmatmul.mubr.bf16.gmra.mxu0 %v3453_v7  ;;  %v2171_v7 = vadd.f32 %v11204_v61, %v9396_v58 }
 0x690   : > { %4058 = vmatmul.mubr.bf16.gmra.mxu1 %v9100_v6  ;;  %3736 = vmatprep.mubr.bf16.mxu0 %v11198_v8 }
 0x691   : > { %4067 = vmatprep.mubr.bf16.mxu1 %v11198_v8  ;;  %v2683_v1 = vadd.f32 %v9540_v27, %v2171_v7  ;;  %v11207_v27 = vld [vmem:[#allocation35_spill] sm:$0xff] }
 0x692   : > { %v2181_v10 = vadd.f32 %v11207_v27, %v9396_v58  ;;  %v11209_v58 = vld [vmem:[#allocation39_spill] sm:$0xff] }
 0x693   : > { %v6555_v63 = vmul.f32 -1.442695, %v2683_v1  ;;  %v2896_v13 = vadd.f32 %v9882_v4, %v11209_v58  ;;  %v6605_v58 = vld [vmem:[%s11169_s12 + $0x3] sm:$0x7] }
 0x697   : > { %3737 = vmatmul.mubr.bf16.gmra.mxu0 %v3454_v49  ;;  %v2798_v49 = vadd.f32 1.0, %v8115_v52  ;;  %v11210_v52 = vld [vmem:[#allocation40_spill] sm:$0xff] }
 0x698   : > { %4068 = vmatmul.mubr.bf16.gmra.mxu1 %v9104_v11  ;;  %7501 = vmatprep.mubr.bf16.mxu0 %v9095_v60 }
 0x699   : > { %4077 = vmatprep.mubr.bf16.mxu1 %v11198_v8  ;;  %8124 = vrcp.f32 %v2798_v49 }
 0x69a   : > { %8126 = vpow2.f32 %v6543_v57 }
 0x69b   : > { %8128 = vpow2.f32 %v6547_v29 }
 0x69c   : > { %8130 = vpow2.f32 %v6555_v63 }
 0x69f   : > { %7502 = vmatmul.mubr.bf16.vlgmr.msra.gmra.mxu0 %v9098_v5 }
 0x6a0   : > { %4078 = vmatmul.mubr.bf16.gmra.mxu1 %v9106_v12  ;;  %7518 = vmatpush3.bf16.msra.mxu0 %v7928_v42  ;;  %v2892_v42 = vadd.f32 %v9882_v4, %v11205_v46 }
 0x6a1   : > { %7519 = vmatprep.subr.bf16.mxu0 %v7929_v41  ;;  %7505 = vmatprep.mubr.bf16.mxu0 %v9100_v6 }
 0x6a2   : > { %4087 = vmatprep.mubr.bf16.mxu1 %v11198_v8 }
 0x6a4   : > { %7520 = vmatpush3.bf16.msra.mxu0 %v7929_v41  ;;  %v8117_v41 = vpop.eup %8116 }
 0x6a5   : > { %7521 = vmatprep.subr.bf16.mxu0 %v7930_v45 }
 0x6a7   : > { %7506 = vmatmul.mubr.bf16.gmra.mxu0 %v9104_v11 }
 0x6a8   : > { %4088 = vmatmul.mubr.bf16.gmra.mxu1 %v9110_v17  ;;  %7522 = vmatpush3.bf16.msra.mxu0 %v7930_v45  ;;  %v8119_v45 = vpop.eup %8118 }
 0x6a9   : > { %7523 = vmatprep.subr.bf16.mxu0 %v7931_v31  ;;  %7509 = vmatprep.mubr.bf16.mxu0 %v9106_v12  ;;  %v2791_v51 = vadd.f32 1.0, %v8119_v45 }
 0x6aa   : > { %4097 = vmatprep.mubr.bf16.mxu1 %v11198_v8 }
 0x6ab   : > { %8132 = vrcp.f32 %v2791_v51 }
 0x6ac   : > { %7524 = vmatpush3.bf16.msra.mxu0 %v7931_v31  ;;  %v2908_v31 = vmul.f32 %v8117_v41, %v2892_v42 }
 0x6ad   : > { %7525 = vmatprep.subr.bf16.mxu0 %v7932_v50 }
 0x6af   : > { %7510 = vmatmul.mubr.bf16.gmra.mxu0 %v9110_v17 }
 0x6b0   : > { %4098 = vmatmul.mubr.bf16.gmra.mxu1 %v9112_v18  ;;  %7526 = vmatpush3.bf16.msra.mxu0 %v7932_v50  ;;  %v2231_v50 = vadd.f32 %v11206_v0, %v9377_v47  ;;  %v11213_v0 = vld [vmem:[#allocation44_spill] sm:$0xff] }
 0x6b1   : > { %7527 = vmatprep.subr.bf16.mxu0 %v7933_v30  ;;  %7513 = vmatprep.mubr.bf16.mxu0 %v9112_v18 }
 0x6b2   : > { %4107 = vmatprep.mubr.bf16.mxu1 %v11198_v8  ;;  %v2924_v53 = vadd.f32 %v2908_v31, %v2231_v50 }
 0x6b4   : > { %7528 = vmatpush3.bf16.msra.mxu0 %v7933_v30  ;;  %v8121_v30 = vpop.eup %8120  ;;  %8134 = vtanh.f32 %v2924_v53 }
 0x6b5   : > { %7529 = vmatprep.subr.bf16.mxu0 %v7934_v25  ;;  %v2795_v37 = vadd.f32 1.0, %v8121_v30 }
 0x6b7   : > { %7514 = vmatmul.mubr.bf16.gmra.mxu0 %v9116_v23  ;;  %8136 = vrcp.f32 %v2795_v37  ;;  %v11216_v37 = vld [vmem:[#allocation50_spill] sm:$0xff] }
 0x6b8   : > { %4108 = vmatmul.mubr.bf16.gmra.mxu1 %v9116_v23  ;;  %7530 = vmatpush3.bf16.msra.mxu0 %v7934_v25  ;;  %v8123_v25 = vpop.eup %8122 }
 0x6b9   : > { %7531 = vmatprep.subr.bf16.mxu0 %v7935_v24  ;;  %7533 = vmatprep.mubr.bf16.mxu0 %v9095_v60  ;;  %v2814_v62 = vadd.f32 1.0, %v8123_v25  ;;  %v8125_v35 = vpop.eup %8124 }
 0x6ba   : > { %7565 = vmatprep.mubr.bf16.mxu1 %v8497_v56  ;;  %v2687_v56 = vadd.f32 %v11208_v22, %v2181_v10  ;;  %v8127_v38 = vpop.eup %8126  ;;  %v2912_v9 = vmul.f32 %v8125_v35, %v2896_v13 }
 0x6bb   : > { %v8129_v21 = vpop.eup %8128  ;;  %8138 = vrcp.f32 %v2814_v62  ;;  %v2799_v55 = vadd.f32 1.0, %v8127_v38  ;;  %v11217_v62 = vld [vmem:[#allocation43_spill] sm:$0xff]  ;;  %v9947_v38 = vld [vmem:[#allocation10 + $0x8] sm:$0xff] }
 0x6bc   : > { %7532 = vmatpush3.bf16.msra.mxu0 %v7935_v24  ;;  %v6559_v15 = vmul.f32 -1.442695, %v2687_v56  ;;  %8140 = vtanh.f32 %v11210_v52  ;;  %v2803_v14 = vadd.f32 1.0, %v8129_v21  ;;  %v2928_v61 = vadd.f32 %v2912_v9, %v2247_v39  ;;  %v8131_v57 = vpop.eup %8130  ;;  %v3038_v52 = vpop.permute.xlu0 %3037 }
 0x6bd   : > { %v8133_v42 = vpop.eup %8132  ;;  %v2811_v41 = vadd.f32 1.0, %v8131_v57  ;;  %v2904_v35 = vadd.f32 %v9882_v4, %v11217_v62  ;;  %v11220_v4 = vld [vmem:[#allocation27_spill] sm:$0xff]  ;;  %v8500_v62 = vld [vmem:[#allocation10] sm:$0xff] }
 0x6be   : > { %8142 = vpow2.f32 %v6559_v15  ;;  %v2956_v51 = vsub.f32 1.0, %v8133_v42  ;;  %v2988_v21 = vmul.f32 %v9947_v38, %v8133_v42 }
 0x6bf   : > { %7534 = vmatmul.mubr.bf16.vlgmr.msra.gmra.mxu0 %v9098_v5  ;;  %8144 = vrcp.f32 %v2799_v55  ;;  %v11226_v5 = vld [vmem:[#allocation30_spill] sm:$0xff] }
 0x6c0   : > { %7537 = vmatprep.mubr.bf16.mxu0 %v9100_v6  ;;  %8146 = vrcp.f32 %v2803_v14  ;;  %v9979_v60 = vrot.slane %v6605_v58, %v11226_v5 }
 0x6c1   : > { %8148 = vtanh.f32 %v2928_v61  ;;  %v8135_v31 = vpop.eup %8134  ;;  %v9955_v61 = vrot.slane %v6605_v58, %v11220_v4  ;;  %v9967_v4 = vld [vmem:[#allocation10 + $0x18] sm:$0xff] }
 0x6c2   : > { %8150 = vtanh.f32 %v11213_v0  ;;  %v2972_v53 = vmul.f32 %v8135_v31, %v2956_v51 }
 0x6c3   : > { %8152 = vrcp.f32 %v2811_v41  ;;  %v11221_v41 = vld [vmem:[#allocation32_spill] sm:$0xff] }
 0x6c4   : > { %v8137_v27 = vpop.eup %8136  ;;  %8154 = vtanh.f32 %v11216_v37  ;;  %v3004_v14 = vadd.f32 %v2988_v21, %v2972_v53  ;;  %v2279_v31 = vadd.f32 %v11221_v41, %v9377_v47  ;;  %v3043_v41 = vpop.permute.xlu0 %3042 }
 0x6c5   : > { %v2958_v39 = vsub.f32 1.0, %v8137_v27 }
 0x6c7   : > { %7538 = vmatmul.mubr.bf16.gmra.mxu0 %v9104_v11 }
 0x6c8   : > { %7541 = vmatprep.mubr.bf16.mxu0 %v9106_v12  ;;  %v8139_v25 = vpop.eup %8138  ;;  %v3058_v5 = vpop.permute.xlu0 %3057 }
 0x6c9   : > { %v8141_v56 = vpop.eup %8140  ;;  %v2920_v34 = vmul.f32 %v8139_v25, %v2904_v35 }
 0x6ca   : > { %v2974_v51 = vmul.f32 %v8141_v56, %v2958_v39  ;;  %v3020_v56 = vsub.f32 %v3004_v14, %v9947_v38 }
 0x6cb   : > { %v8143_v15 = vpop.eup %8142  ;;  %v2936_v21 = vadd.f32 %v2920_v34, %v2279_v31 }
 0x6cc   : > { %v2815_v0 = vadd.f32 1.0, %v8143_v15  ;;  %v8145_v42 = vpop.eup %8144  ;;  %v11225_v15 = vld [vmem:[#allocation29_spill] sm:$0xff]  ;;  %v3116_v40 = vmul.f32 %v3043_v41, %v3020_v56 }
 0x6cd   : > { %v8147_v53 = vpop.eup %8146  ;;  %v9974_v39 = vrot.slane %v6605_v58, %v11225_v15  ;;  %v2960_v11 = vsub.f32 1.0, %v8145_v42  ;;  %v11229_v58 = vld [vmem:[#allocation45_spill] sm:$0xff] }
 0x6ce   : > { %v8149_v47 = vpop.eup %8148  ;;  %8156 = vrcp.f32 %v2815_v0  ;;  %v2962_v15 = vsub.f32 1.0, %v8147_v53 }
 0x6cf   : > { %7542 = vmatmul.mubr.bf16.gmra.mxu0 %v9110_v17  ;;  %v2990_v17 = vmul.f32 %v9967_v4, %v8137_v27  ;;  %v8151_v34 = vpop.eup %8150  ;;  %8158 = vtanh.f32 %v2936_v21  ;;  %v2976_v14 = vmul.f32 %v8149_v47, %v2960_v11 }
 0x6d0   : > { %7545 = vmatprep.mubr.bf16.mxu0 %v9112_v18  ;;  %v8153_v0 = vpop.eup %8152  ;;  %v2978_v21 = vmul.f32 %v8151_v34, %v2962_v15  ;;  %v10008_v34 = vadd.f32 %v9947_v38, %v3116_v40 }
 0x6d2   : > { %11233 = vst [vmem:[#allocation40_spill] sm:$0xff] %v10008_v34 }
 0x6d7   : > { %7546 = vmatmul.mubr.bf16.gmra.mxu0 %v9116_v23  ;;  %v11222_v23 = vld [vmem:[#allocation42_spill] sm:$0xff] }
 0x6d8   : > { %5222 = vmatprep.mubr.bf16.mxu0 %v11198_v8  ;;  %v3019_v18 = vsub.f32 %v11222_v23, %v8500_v62 }
 0x6da   : > { %v3115_v31 = vmul.f32 %v3038_v52, %v3019_v18  ;;  %v8502_v18 = vld [vmem:[#allocation10 + $0x10] sm:$0xff] }
 0x6db   : > { %v3021_v52 = vsub.f32 %v11229_v58, %v8502_v18  ;;  %v11232_v58 = vld [vmem:[#allocation46_spill] sm:$0xff] }
 0x71f   : > { %v9890_v24 = vpop.f32.mrf.mxu0 }
 0x720   : > { %v9893_v3 = vpop.f32.mrf.mxu1 }
 0x721   : > { %v9895_v48 = vpop.f32.mrf.mxu0 }
 0x722   : > { %v9897_v20 = vpop.f32.mrf.mxu1 }
 0x723   : > { %v9899_v33 = vpop.f32.mrf.mxu0 }
 0x724   : > { %v9903_v36 = vpop.f32.mrf.mxu1 }
 0x725   : > { %v9905_v32 = vpop.f32.mrf.mxu0 }
 0x726   : > { %v9907_v28 = vpop.f32.mrf.mxu1 }
 0x727   : > { %v9910_v26 = vpop.f32.mrf.mxu0 }
 0x728   : > { %v9914_v19 = vpop.f32.mrf.mxu1 }
 0x729   : > { %v9916_v49 = vpop.f32.mrf.mxu0 }
 0x72a   : > { %v9918_v7 = vpop.f32.mrf.mxu1 }
 0x72b   : > { %v9920_v29 = vpop.f32.mrf.mxu0 }
 0x72c   : > { %v9922_v1 = vpop.f32.mrf.mxu1 }
 0x72d   : > { %v9924_v46 = vpop.f32.mrf.mxu0 }
 0x72e   : > { %v9926_v45 = vpop.f32.mrf.mxu1 }
 0x72f   : > { %11212 = vst [vmem:[#allocation34_spill] sm:$0xff] %v9926_v45  ;;  %v9928_v63 = vpop.f32.mrf.mxu0 }
 0x730   : > { %v9931_v50 = vpop.f32.mrf.mxu1 }
 0x731   : > { %11214 = vst [vmem:[#allocation28_spill] sm:$0xff] %v9931_v50  ;;  %v9933_v30 = vpop.f32.mrf.mxu0 }
 0x732   : > { %v9935_v10 = vpop.f32.mrf.mxu1 }
 0x733   : > { %11215 = vst [vmem:[#allocation31_spill] sm:$0xff] %v9935_v10  ;;  %v9937_v22 = vpop.f32.mrf.mxu0 }
 0x734   : > { %v9945_v13 = vpop.f32.mrf.mxu1 }
 0x735   : > { %11218 = vst [vmem:[#allocation36_spill] sm:$0xff] %v9945_v13  ;;  %v9950_v9 = vpop.f32.mrf.mxu0  ;;  %v8504_v13 = vld [vmem:[#allocation10 + $0x20] sm:$0xff] }
 0x736   : > { %v9952_v55 = vpop.f32.mrf.mxu1  ;;  %v3023_v50 = vsub.f32 %v11232_v58, %v8504_v13  ;;  %v11235_v58 = vld [vmem:[#allocation49_spill] sm:$0xff] }
 0x737   : > { %11219 = vst [vmem:[#allocation37_spill] sm:$0xff] %v9952_v55  ;;  %v9957_v57 = vpop.f32.mrf.mxu0  ;;  %v2994_v55 = vmul.f32 %v10004_v16, %v8147_v53 }
 0x738   : > { %v7483_v37 = vpop.f32.mrf.mxu1 }
 0x739   : > { %v9963_v25 = vadd.f32 %v7483_v37, %v9955_v61  ;;  %v9965_v35 = vpop.f32.mrf.mxu0  ;;  %v3006_v37 = vadd.f32 %v2990_v17, %v2974_v51  ;;  %v3669_v17 = vadd.f32 %v9890_v24, %v9974_v39  ;;  %v3671_v24 = vadd.f32 %v9895_v48, %v9979_v60 }
 0x73a   : > { %v9970_v12 = vpop.f32.mrf.mxu1  ;;  %v3010_v10 = vadd.f32 %v2994_v55, %v2978_v21 }
 0x73b   : > { %11223 = vst [vmem:[#allocation33_spill] sm:$0xff] %v9963_v25  ;;  %11224 = vst [vmem:[#allocation38_spill] sm:$0xff] %v9970_v12  ;;  %v9976_v23 = vpop.f32.mrf.mxu0  ;;  %v9997_v12 = vadd.f32 %v8500_v62, %v3115_v31  ;;  %v3673_v62 = vadd.f32 %v9899_v33, %v9974_v39  ;;  %v3119_v33 = vmul.f32 %v3058_v5, %v3023_v50 }
 0x73c   : > { %v7484_v6 = vpop.f32.mrf.mxu1  ;;  %v3026_v50 = vsub.f32 %v3010_v10, %v10004_v16 }
 0x73d   : > { %v9982_v27 = vadd.f32 %v7484_v6, %v9955_v61  ;;  %v9984_v8 = vpop.f32.mrf.mxu0  ;;  %v3022_v6 = vsub.f32 %v3006_v37, %v9967_v4  ;;  %11230 = vst [vmem:[#allocation41_spill] sm:$0xff] %v9997_v12 }
 0x73e   : > { %v9986_v25 = vpop.f32.mrf.mxu1 }
 0x73f   : > { %11227 = vst [vmem:[#allocation25_spill] sm:$0xff] %v9982_v27  ;;  %11228 = vst [vmem:[#allocation35_spill] sm:$0xff] %v9986_v25  ;;  %v9990_v51 = vpop.f32.mrf.mxu0  ;;  %v9994_v27 = vld [vmem:[#allocation10 + $0x28] sm:$0xff]  ;;  %v8155_v25 = vpop.eup %8154 }
 0x740   : > { %v2992_v11 = vmul.f32 %v9994_v27, %v8145_v42  ;;  %v4039_v47 = vpop.f32.mrf.mxu1  ;;  %v2966_v42 = vsub.f32 1.0, %v8153_v0 }
 0x741   : > { %v4215_v56 = vadd.f32 %v4039_v47, %v3669_v17  ;;  %v10001_v41 = vpop.f32.mrf.mxu0  ;;  %v11234_v47 = vld [vmem:[#allocation47_spill] sm:$0xff] }
 0x742   : > { %11231 = vst [vmem:[#allocation39_spill] sm:$0xff] %v10001_v41  ;;  %v3008_v37 = vadd.f32 %v2992_v11, %v2976_v14  ;;  %v4041_v15 = vpop.f32.mrf.mxu1  ;;  %v3117_v12 = vmul.f32 %v11234_v47, %v3021_v52  ;;  %v3118_v14 = vmul.f32 %v11235_v58, %v3022_v6  ;;  %v3068_v11 = vpop.permute.xlu0 %3067  ;;  %v2982_v45 = vmul.f32 %v8155_v25, %v2966_v42  ;;  %v10022_v47 = vld [vmem:[#allocation10 + $0x58] sm:$0xff] }
 0x743   : > { %v6686_v48 = vmul.f32 -1.442695, %v4215_v56  ;;  %v4216_v31 = vadd.f32 %v4041_v15, %v3671_v24  ;;  %v10012_v17 = vpop.f32.mrf.mxu0  ;;  %v3675_v41 = vadd.f32 %v9905_v32, %v9979_v60  ;;  %v8506_v56 = vld [vmem:[#allocation10 + $0x30] sm:$0xff]  ;;  %v11236_v15 = vld [vmem:[#allocation48_spill] sm:$0xff]  ;;  %v2998_v55 = vmul.f32 %v10022_v47, %v8153_v0  ;;  %v8157_v0 = vpop.eup %8156 }
 0x744   : > { %v4043_v53 = vpop.f32.mrf.mxu1  ;;  %v3024_v24 = vsub.f32 %v3008_v37, %v9994_v27  ;;  %v3025_v52 = vsub.f32 %v11236_v15, %v8506_v56  ;;  %v3679_v6 = vadd.f32 %v9910_v26, %v9974_v39  ;;  %v10032_v5 = vadd.f32 %v9967_v4, %v3118_v14  ;;  %v8508_v14 = vld [vmem:[#allocation10 + $0x40] sm:$0xff] }
 0x745   : > { %8160 = vpow2.f32 %v6686_v48  ;;  %v6687_v40 = vmul.f32 -1.442695, %v4216_v31  ;;  %v4217_v38 = vadd.f32 %v4043_v53, %v3673_v62  ;;  %v10018_v34 = vpop.f32.mrf.mxu0  ;;  %v10029_v62 = vadd.f32 %v8502_v18, %v3117_v12  ;;  %v11237_v12 = vld [vmem:[#allocation51_spill] sm:$0xff] }
 0x746   : > { %v4045_v25 = vpop.f32.mrf.mxu1  ;;  %v3078_v37 = vpop.permute.xlu0 %3077  ;;  %v3014_v48 = vadd.f32 %v2998_v55, %v2982_v45  ;;  %v3681_v58 = vadd.f32 %v9916_v49, %v9979_v60  ;;  %v3120_v18 = vmul.f32 %v11237_v12, %v3024_v24  ;;  %v3121_v4 = vmul.f32 %v3068_v11, %v3025_v52 }
 0x747   : > { %8162 = vpow2.f32 %v6687_v40  ;;  %v6688_v32 = vmul.f32 -1.442695, %v4217_v38  ;;  %v4218_v21 = vadd.f32 %v4045_v25, %v3675_v41  ;;  %v10027_v42 = vpop.f32.mrf.mxu0  ;;  %v10039_v40 = vadd.f32 %v8504_v13, %v3119_v33  ;;  %v11238_v38 = vld [vmem:[#allocation52_spill] sm:$0xff]  ;;  %v8159_v45 = vpop.eup %8158 }
 0x748   : > { %v4049_v31 = vpop.f32.mrf.mxu1  ;;  %v3027_v10 = vsub.f32 %v11238_v38, %v8508_v14  ;;  %v3683_v55 = vadd.f32 %v9920_v29, %v9974_v39  ;;  %v3029_v33 = vsub.f32 %v9672_v44, %v9668_v43  ;;  %v3030_v11 = vsub.f32 %v3014_v48, %v10022_v47 }
 0x749   : > { %8164 = vpow2.f32 %v6688_v32  ;;  %v6689_v26 = vmul.f32 -1.442695, %v4218_v21  ;;  %v4219_v53 = vadd.f32 %v4049_v31, %v3679_v6  ;;  %v10037_v41 = vpop.f32.mrf.mxu0  ;;  %v3122_v6 = vmul.f32 %v9659_v54, %v3026_v50  ;;  %v3093_v21 = vpop.permute.xlu1 %3092 }
 0x74a   : > { %v4051_v15 = vpop.f32.mrf.mxu1  ;;  %v3088_v13 = vpop.permute.xlu0 %3087  ;;  %v2968_v24 = vsub.f32 1.0, %v8157_v0  ;;  %v3685_v31 = vadd.f32 %v9924_v46, %v9979_v60  ;;  %v10058_v54 = vadd.f32 %v8506_v56, %v3121_v4  ;;  %v3123_v50 = vmul.f32 %v3078_v37, %v3027_v10 }
 0x74b   : > { %8166 = vpow2.f32 %v6689_v26  ;;  %v6690_v49 = vmul.f32 -1.442695, %v4219_v53  ;;  %v4220_v25 = vadd.f32 %v4051_v15, %v3681_v58  ;;  %v10045_v32 = vpop.f32.mrf.mxu0  ;;  %v10056_v53 = vadd.f32 %v9994_v27, %v3120_v18  ;;  %v10067_v27 = vld [vmem:[#allocation10 + $0x68] sm:$0xff] }
 0x74c   : > { %v4053_v52 = vpop.f32.mrf.mxu1  ;;  %v2984_v43 = vmul.f32 %v8159_v45, %v2968_v24  ;;  %v3689_v48 = vadd.f32 %v9928_v63, %v9974_v39  ;;  %v10065_v15 = vadd.f32 %v10004_v16, %v3122_v6  ;;  %v3000_v56 = vmul.f32 %v10067_v27, %v8157_v0  ;;  %v8510_v16 = vld [vmem:[#allocation10 + $0x48] sm:$0xff] }
 0x74d   : > { %8168 = vpow2.f32 %v6690_v49  ;;  %v6691_v29 = vmul.f32 -1.442695, %v4220_v25  ;;  %v4221_v26 = vadd.f32 %v4053_v52, %v3683_v55  ;;  %v10053_v58 = vpop.f32.mrf.mxu0  ;;  %v3125_v55 = vmul.f32 %v3088_v13, %v3029_v33 }
 0x74e   : > { %v4055_v44 = vpop.f32.mrf.mxu1  ;;  %v3126_v49 = vmul.f32 %v3093_v21, %v3030_v11  ;;  %v3691_v18 = vadd.f32 %v9933_v30, %v9979_v60  ;;  %v10074_v25 = vadd.f32 %v8508_v14, %v3123_v50  ;;  %v10077_v6 = vadd.f32 %v8510_v16, %v9664_v2  ;;  %v10090_v2 = vld [vmem:[#allocation10 + $0x60] sm:$0xff] }
 0x74f   : > { %8170 = vpow2.f32 %v6691_v29  ;;  %v6692_v12 = vmul.f32 -1.442695, %v4221_v26  ;;  %v4222_v38 = vadd.f32 %v4055_v44, %v3685_v31  ;;  %v10062_v46 = vpop.f32.mrf.mxu0  ;;  %v10079_v13 = vadd.f32 %v3000_v56, %v2984_v43  ;;  %v8511_v31 = vld [vmem:[#allocation10 + $0x50] sm:$0xff] }
 0x750   : > { %v4059_v37 = vpop.f32.mrf.mxu1  ;;  %11239 = vst [vmem:[#allocation26_spill] sm:$0xff] %v10077_v6  ;;  %v3693_v0 = vadd.f32 %v9937_v22, %v9974_v39  ;;  %v10085_v14 = vadd.f32 %v8511_v31, %v3125_v55  ;;  %v10088_v29 = vadd.f32 %v10022_v47, %v3126_v49  ;;  %v3695_v22 = vadd.f32 %v9950_v9, %v9979_v60 }
 0x751   : > { %8172 = vpow2.f32 %v6692_v12  ;;  %v6693_v63 = vmul.f32 -1.442695, %v4222_v38  ;;  %v4223_v4 = vadd.f32 %v4059_v37, %v3689_v48  ;;  %v10072_v10 = vpop.f32.mrf.mxu0  ;;  %v10102_v55 = vadd.f32 %v9893_v3, %v9955_v61 }
 0x752   : > { %v8161_v45 = vpop.eup %8160  ;;  %v4061_v33 = vpop.f32.mrf.mxu1  ;;  %11240 = vst [vmem:[#allocation44_spill] sm:$0xff] %v10085_v14  ;;  %11241 = vst [vmem:[#allocation50_spill] sm:$0xff] %v10088_v29  ;;  %v3699_v49 = vadd.f32 %v9957_v57, %v9974_v39  ;;  %v3701_v16 = vadd.f32 %v9965_v35, %v9979_v60  ;;  %v10123_v35 = vadd.f32 %v9903_v36, %v9955_v61  ;;  %v7940_v36 = vld [vmem:[%s11083_s6 + $0x210] ss:$12 sps:$4 sm:$0xff]   ;;  %v11245_v14 = vld [vmem:[#allocation41_spill] sm:$0xff] }
 0x753   : > { %v4343_v11 = vadd.f32 1.0, %v8161_v45  ;;  %8174 = vpow2.f32 %v6693_v63  ;;  %v6694_v30 = vmul.f32 -1.442695, %v4223_v4  ;;  %v4224_v24 = vadd.f32 %v4061_v33, %v3691_v18  ;;  %v10083_v52 = vpop.f32.mrf.mxu0  ;;  %v7938_v33 = vld [vmem:[%s11083_s6 + $0x22c] ss:$12 sps:$4 sm:$0xff]  }
 0x754   : > { %v8163_v21 = vpop.eup %8162  ;;  %v4063_v50 = vpop.f32.mrf.mxu1  ;;  %v10108_v45 = vadd.f32 %v9897_v20, %v9955_v61  ;;  %v3703_v31 = vadd.f32 %v9976_v23, %v9974_v39  ;;  %5190 = vmatprep.subr.bf16.mxu0 %v7938_v33  ;;  %v10150_v33 = vadd.f32 %v9914_v19, %v9955_v61  ;;  %v7944_v19 = vld [vmem:[%s11083_s6 + $0x1f8] ss:$12 sps:$4 sm:$0xff]  }
 0x755   : > { %8176 = vrcp.f32 %v4343_v11  ;;  %v4344_v43 = vadd.f32 1.0, %v8163_v21  ;;  %v6695_v44 = vmul.f32 -1.442695, %v4224_v24  ;;  %v4225_v48 = vadd.f32 %v4063_v50, %v3693_v0  ;;  %v10096_v12 = vpop.f32.mrf.mxu0  ;;  %v7936_v0 = vld [vmem:[%s11083_s6 + $0x228] ss:$12 sps:$4 sm:$0xff]  }
 0x756   : > { %v8165_v38 = vpop.eup %8164  ;;  %8178 = vpow2.f32 %v6694_v30  ;;  %v4065_v9 = vpop.f32.mrf.mxu1  ;;  %5191 = vmatpush1.bf16.msra.mxu0 %v7936_v0 }
 0x757   : > { %8180 = vrcp.f32 %v4344_v43  ;;  %v4345_v56 = vadd.f32 1.0, %v8165_v38  ;;  %v6696_v37 = vmul.f32 -1.442695, %v4225_v48  ;;  %v4226_v18 = vadd.f32 %v4065_v9, %v3695_v22  ;;  %v3738_v63 = vpop.f32.mrf.mxu0  ;;  %v7942_v43 = vld [vmem:[%s11083_s6 + $0x214] ss:$12 sps:$4 sm:$0xff]  }
 0x758   : > { %v8167_v4 = vpop.eup %8166  ;;  %8182 = vpow2.f32 %v6695_v44  ;;  %v10113_v3 = vadd.f32 %v3738_v63, %v9974_v39  ;;  %v4069_v57 = vpop.f32.mrf.mxu1  ;;  %v10138_v9 = vadd.f32 %v9907_v28, %v9955_v61  ;;  %5192 = vmatprep.subr.bf16.mxu0 %v7942_v43  ;;  %v7946_v63 = vld [vmem:[%s11083_s6 + $0x1fc] ss:$12 sps:$4 sm:$0xff]   ;;  %v10168_v43 = vadd.f32 %v9922_v1, %v9955_v61 }
 0x759   : > { %8184 = vrcp.f32 %v4345_v56  ;;  %v4346_v11 = vadd.f32 1.0, %v8167_v4  ;;  %v6697_v20 = vmul.f32 -1.442695, %v4226_v18  ;;  %v4227_v30 = vadd.f32 %v4069_v57, %v3699_v49  ;;  %v3740_v24 = vpop.f32.mrf.mxu0 }
 0x75a   : > { %v8169_v21 = vpop.eup %8168  ;;  %8186 = vpow2.f32 %v6696_v37  ;;  %v10128_v22 = vadd.f32 %v3740_v24, %v9979_v60  ;;  %v4071_v50 = vpop.f32.mrf.mxu1  ;;  %v3705_v56 = vadd.f32 %v9984_v8, %v9979_v60  ;;  %v3709_v8 = vadd.f32 %v9990_v51, %v9974_v39  ;;  %5193 = vmatpush1.bf16.msra.mxu0 %v7940_v36 }
 0x75b   : > { %8188 = vrcp.f32 %v4346_v11  ;;  %v4347_v44 = vadd.f32 1.0, %v8169_v21  ;;  %v6698_v48 = vmul.f32 -1.442695, %v4227_v30  ;;  %v4228_v38 = vadd.f32 %v4071_v50, %v3701_v16  ;;  %v3742_v49 = vpop.f32.mrf.mxu0  ;;  %5194 = vmatprep.subr.bf16.mxu0 %v7946_v63  ;;  %v11244_v63 = vld [vmem:[#allocation31_spill] sm:$0xff] }
 0x75c   : > { %v8171_v23 = vpop.eup %8170  ;;  %8190 = vpow2.f32 %v6697_v20  ;;  %v10143_v37 = vadd.f32 %v3742_v49, %v9974_v39  ;;  %v4073_v18 = vpop.f32.mrf.mxu1  ;;  %v10164_v51 = vadd.f32 %v9918_v7, %v9955_v61  ;;  %v7950_v49 = vld [vmem:[%s11083_s6 + $0x1e4] ss:$12 sps:$4 sm:$0xff]   ;;  %v10178_v7 = vld [vmem:[%s11180_s7 + $0x1] ss:$0 sm:$0xff] }
 0x75d   : > { %8192 = vrcp.f32 %v4347_v44  ;;  %v4348_v4 = vadd.f32 1.0, %v8171_v23  ;;  %v6699_v16 = vmul.f32 -1.442695, %v4228_v38  ;;  %v4229_v57 = vadd.f32 %v4073_v18, %v3703_v31  ;;  %v3744_v0 = vpop.f32.mrf.mxu0  ;;  %v11242_v44 = vld [vmem:[#allocation39_spill] sm:$0xff] }
 0x75e   : > { %v8173_v28 = vpop.eup %8172  ;;  %8194 = vpow2.f32 %v6698_v48  ;;  %v10155_v11 = vadd.f32 %v3744_v0, %v9979_v60  ;;  %v4075_v20 = vpop.f32.mrf.mxu1  ;;  %v3711_v48 = vadd.f32 %v11242_v44, %v9979_v60  ;;  %5195 = vmatpush1.bf16.msra.mxu0 %v7944_v19  ;;  %v7948_v44 = vld [vmem:[%s11083_s6 + $0x1e0] ss:$12 sps:$4 sm:$0xff]   ;;  %v3719_v19 = vadd.f32 %v10027_v42, %v9974_v39 }
 0x75f   : > { %8196 = vrcp.f32 %v4348_v4  ;;  %v4349_v30 = vadd.f32 1.0, %v8173_v28  ;;  %v6700_v24 = vmul.f32 -1.442695, %v4229_v57  ;;  %v4230_v21 = vadd.f32 %v4075_v20, %v3705_v56  ;;  %v10157_v50 = vpop.f32.mrf.mxu0  ;;  %v11243_v4 = vld [vmem:[#allocation34_spill] sm:$0xff]  ;;  %5196 = vmatprep.subr.bf16.mxu0 %v7950_v49 }
 0x760   : > { %v8175_v31 = vpop.eup %8174  ;;  %8198 = vpow2.f32 %v6699_v16  ;;  %v4079_v38 = vpop.f32.mrf.mxu1  ;;  %v10182_v16 = vadd.f32 %v11243_v4, %v9955_v61  ;;  %v10186_v57 = vadd.f32 %v11244_v63, %v9955_v61 }
 0x761   : > { %8200 = vrcp.f32 %v4349_v30  ;;  %v4350_v36 = vadd.f32 1.0, %v8175_v31  ;;  %v6701_v23 = vmul.f32 -1.442695, %v4230_v21  ;;  %v4231_v1 = vadd.f32 %v4079_v38, %v3709_v8  ;;  %v4152_v56 = vpop.f32.mrf.mxu0 }
 0x762   : > { %v8177_v18 = vpop.eup %8176  ;;  %8202 = vpow2.f32 %v6700_v24  ;;  %v4447_v0 = vadd.f32 %v10178_v7, %v4152_v56  ;;  %v4081_v28 = vpop.f32.mrf.mxu1  ;;  %v3713_v30 = vadd.f32 %v10012_v17, %v9974_v39  ;;  %v3715_v24 = vadd.f32 %v10018_v34, %v9979_v60  ;;  %v7954_v17 = vld [vmem:[%s11083_s6 + $0x1cc] ss:$12 sps:$4 sm:$0xff]   ;;  %5197 = vmatpush1.bf16.msra.mxu0 %v7948_v44 }
 0x763   : > { %v8179_v20 = vpop.eup %8178  ;;  %8204 = vrcp.f32 %v4350_v36  ;;  %v6702_v8 = vmul.f32 -1.442695, %v4231_v1  ;;  %v4232_v21 = vadd.f32 %v4081_v28, %v3711_v48  ;;  %v7504_v31 = vpop.f32.mrf.mxu0  ;;  %5198 = vmatprep.subr.bf16.mxu0 %v7954_v17  ;;  %v3723_v44 = vadd.f32 %v10045_v32, %v9974_v39 }
 0x764   : > { %v10194_v38 = vpop.eup %8180  ;;  %v4351_v56 = vadd.f32 1.0, %v8179_v20  ;;  %8206 = vpow2.f32 %v6701_v23  ;;  %v4463_v4 = vmul.f32 %v8177_v18, %v4447_v0  ;;  %v4083_v63 = vpop.f32.mrf.mxu1 }
 0x765   : > { %v8183_v48 = vpop.eup %8182  ;;  %8208 = vpow2.f32 %v6702_v8  ;;  %v6703_v36 = vmul.f32 -1.442695, %v4232_v21  ;;  %v4233_v1 = vadd.f32 %v4083_v63, %v3713_v30  ;;  %v4155_v28 = vpop.f32.mrf.mxu0  ;;  %v10209_v42 = vmul.f32 %v10194_v38, %v11245_v14  ;;  %v7952_v30 = vld [vmem:[%s11083_s6 + $0x1c8] ss:$12 sps:$4 sm:$0xff]  }
 0x766   : > { %v8185_v47 = vpop.eup %8184  ;;  %8210 = vrcp.f32 %v4351_v56  ;;  %v4352_v34 = vadd.f32 1.0, %v8183_v48  ;;  %v4479_v23 = vadd.f32 %v4463_v4, %v10108_v45  ;;  %v4448_v18 = vadd.f32 %v10178_v7, %v4155_v28  ;;  %v4085_v49 = vpop.f32.mrf.mxu1  ;;  %v7958_v4 = vld [vmem:[%s11083_s6 + $0x1b4] ss:$12 sps:$4 sm:$0xff]   ;;  %5199 = vmatpush1.bf16.msra.mxu0 %v7952_v30 }
 0x767   : > { %v8187_v0 = vpop.eup %8186  ;;  %8212 = vpow2.f32 %v6703_v36  ;;  %v6704_v20 = vmul.f32 -1.442695, %v4233_v1  ;;  %v4234_v26 = vadd.f32 %v4085_v49, %v3715_v24  ;;  %v10205_v29 = vpop.f32.mrf.mxu0  ;;  %v3721_v45 = vadd.f32 %v10037_v41, %v9979_v60  ;;  %5200 = vmatprep.subr.bf16.mxu0 %v7958_v4 }
 0x768   : > { %v10214_v8 = vpop.eup %8188  ;;  %8214 = vrcp.f32 %v4352_v34  ;;  %v4353_v21 = vadd.f32 1.0, %v8187_v0  ;;  %v4464_v56 = vmul.f32 %v8185_v47, %v4448_v18  ;;  %v4089_v24 = vpop.f32.mrf.mxu1  ;;  %v4449_v48 = vadd.f32 %v10157_v50, %v10178_v7 }
 0x769   : > { %v8191_v63 = vpop.eup %8190  ;;  %8216 = vtanh.f32 %v4479_v23  ;;  %v4235_v36 = vadd.f32 %v4089_v24, %v3719_v19  ;;  %v4168_v1 = vpop.f32.mrf.mxu0  ;;  %v3725_v47 = vadd.f32 %v10053_v58, %v9979_v60  ;;  %v3729_v49 = vadd.f32 %v10062_v46, %v9974_v39  ;;  %v7956_v19 = vld [vmem:[%s11083_s6 + $0x1b0] ss:$12 sps:$4 sm:$0xff]  }
 0x76a   : > { %v8193_v41 = vpop.eup %8192  ;;  %8218 = vrcp.f32 %v4353_v21  ;;  %v4354_v17 = vadd.f32 1.0, %v8191_v63  ;;  %v4480_v28 = vadd.f32 %v4464_v56, %v10138_v9  ;;  %v4091_v34 = vpop.f32.mrf.mxu1  ;;  %v4450_v9 = vadd.f32 %v7504_v31, %v10178_v7  ;;  %v11246_v56 = vld [vmem:[#allocation40_spill] sm:$0xff]  ;;  %5201 = vmatpush1.bf16.msra.mxu0 %v7956_v19 }
 0x76b   : > { %v8195_v18 = vpop.eup %8194  ;;  %v4465_v32 = vmul.f32 %v8193_v41, %v4449_v48  ;;  %8220 = vpow2.f32 %v6704_v20  ;;  %v10230_v0 = vadd.f32 %v4091_v34, %v3721_v45  ;;  %v7508_v50 = vpop.f32.mrf.mxu0  ;;  %v10240_v46 = vmul.f32 %v10214_v8, %v11246_v56 }
 0x76c   : > { %v10235_v58 = vpop.eup %8196  ;;  %8222 = vrcp.f32 %v4354_v17  ;;  %v4355_v23 = vadd.f32 1.0, %v8195_v18  ;;  %v4093_v21 = vpop.f32.mrf.mxu1  ;;  %v6705_v30 = vmul.f32 -1.442695, %v4234_v26  ;;  %v3731_v41 = vadd.f32 %v10072_v10, %v9979_v60 }
 0x76d   : > { %v8199_v20 = vpop.eup %8198  ;;  %v4481_v45 = vadd.f32 %v4465_v32, %v10102_v55  ;;  %8224 = vtanh.f32 %v4480_v28  ;;  %v4237_v24 = vadd.f32 %v4093_v21, %v3723_v44  ;;  %v4171_v63 = vpop.f32.mrf.mxu0  ;;  %v3733_v31 = vadd.f32 %v10083_v52, %v9974_v39 }
 0x76e   : > { %v8201_v48 = vpop.eup %8200  ;;  %8226 = vrcp.f32 %v4355_v23  ;;  %v4356_v17 = vadd.f32 1.0, %v8199_v20  ;;  %v4095_v34 = vpop.f32.mrf.mxu1  ;;  %v3735_v4 = vadd.f32 %v10096_v12, %v9979_v60  ;;  %v4511_v39 = vsub.f32 1.0, %v10194_v38 }
 0x76f   : > { %v8203_v18 = vpop.eup %8202  ;;  %8228 = vtanh.f32 %v4481_v45  ;;  %v4466_v55 = vmul.f32 %v8201_v48, %v4450_v9  ;;  %v4238_v28 = vadd.f32 %v4095_v34, %v3725_v47  ;;  %v10249_v26 = vpop.f32.mrf.mxu0  ;;  %v10256_v52 = vmul.f32 %v10235_v58, %v10029_v62 }
 0x770   : > { %v10251_v44 = vpop.eup %8204  ;;  %8230 = vrcp.f32 %v4356_v17  ;;  %v4357_v10 = vadd.f32 1.0, %v8203_v18  ;;  %v4099_v32 = vpop.f32.mrf.mxu1  ;;  %v10261_v12 = vadd.f32 %v10205_v29, %v10178_v7  ;;  %v6706_v20 = vmul.f32 -1.442695, %v4235_v36 }
 0x771   : > { %v8207_v23 = vpop.eup %8206  ;;  %v4482_v60 = vadd.f32 %v4466_v55, %v10123_v35  ;;  %8232 = vpow2.f32 %v6705_v30  ;;  %v4239_v47 = vadd.f32 %v4099_v32, %v3729_v49  ;;  %v10263_v19 = vpop.f32.mrf.mxu0  ;;  %v4451_v38 = vadd.f32 %v10178_v7, %v4168_v1 }
 0x772   : > { %v8209_v9 = vpop.eup %8208  ;;  %8234 = vrcp.f32 %v4357_v10  ;;  %v4358_v21 = vadd.f32 1.0, %v8207_v23  ;;  %v4101_v45 = vpop.f32.mrf.mxu1  ;;  %v4512_v29 = vsub.f32 1.0, %v10214_v8  ;;  %v10272_v55 = vadd.f32 %v7508_v50, %v10178_v7 }
 0x773   : > { %v8211_v48 = vpop.eup %8210  ;;  %v10266_v17 = vpop.permute.xlu0 %3097  ;;  %v4359_v34 = vadd.f32 1.0, %v8209_v9  ;;  %8236 = vtanh.f32 %v4482_v60  ;;  %v4240_v35 = vadd.f32 %v4101_v45, %v3731_v41  ;;  %v10276_v1 = vmul.f32 %v10251_v44, %v10032_v5 }
 0x774   : > { %v10268_v30 = vpop.f32.mrf.mxu0  ;;  %v8213_v49 = vpop.eup %8212  ;;  %8238 = vrcp.f32 %v4358_v21  ;;  %v4467_v18 = vmul.f32 %v8211_v48, %v4451_v38  ;;  %v6707_v41 = vmul.f32 -1.442695, %v10230_v0  ;;  %v6708_v21 = vmul.f32 -1.442695, %v4237_v24 }
 0x775   : > { %11247 = vst [vmem:[#allocation43_spill] sm:$0xff] %v10268_v30  ;;  %v4103_v36 = vpop.f32.mrf.mxu1  ;;  %v10278_v10 = vpop.eup %8214  ;;  %8240 = vrcp.f32 %v4359_v34  ;;  %v4360_v32 = vadd.f32 1.0, %v8213_v49  ;;  %v4452_v38 = vadd.f32 %v10178_v7, %v4171_v63 }
 0x776   : > { %v4241_v23 = vadd.f32 %v4103_v36, %v3733_v31  ;;  %v10281_v60 = vpop.f32.mrf.mxu0  ;;  %v8217_v8 = vpop.eup %8216  ;;  %8242 = vpow2.f32 %v6706_v20  ;;  %v4483_v50 = vadd.f32 %v4467_v18, %v10164_v51  ;;  %v4513_v31 = vsub.f32 1.0, %v10235_v58 }
 0x777   : > { %v10283_v9 = vpop.permute.xlu1 %3102  ;;  %v4105_v45 = vpop.f32.mrf.mxu1  ;;  %8244 = vrcp.f32 %v4360_v32  ;;  %v4527_v0 = vmul.f32 %v8217_v8, %v4511_v39  ;;  %v10295_v24 = vmul.f32 %v10278_v10, %v10039_v40 }
 0x778   : > { %v8219_v48 = vpop.eup %8218  ;;  %v10287_v6 = vpop.permute.xlu0 %3107  ;;  %v4242_v34 = vadd.f32 %v4105_v45, %v3735_v4  ;;  %8246 = vtanh.f32 %v4483_v50  ;;  %v6709_v4 = vmul.f32 -1.442695, %v4238_v28 }
 0x779   : > { %11248 = vst [vmem:[#allocation32_spill] sm:$0xff] %v10287_v6  ;;  %v7515_v49 = vpop.f32.mrf.mxu0  ;;  %v8221_v36 = vpop.eup %8220  ;;  %v4468_v30 = vmul.f32 %v8219_v48, %v4452_v38  ;;  %8248 = vpow2.f32 %v6707_v41  ;;  %v6710_v38 = vmul.f32 -1.442695, %v4239_v47  ;;  %v4559_v48 = vadd.f32 %v10209_v42, %v4527_v0 }
 0x77a   : > { %v10291_v20 = vadd.f32 %v7515_v49, %v10178_v7  ;;  %v4109_v51 = vpop.f32.mrf.mxu1  ;;  %v10297_v63 = vpop.eup %8222  ;;  %v4361_v18 = vadd.f32 1.0, %v8221_v36  ;;  %8250 = vpow2.f32 %v6708_v21  ;;  %v4455_v42 = vadd.f32 %v10178_v7, %v10263_v19 }
 0x77b   : > { %v4243_v39 = vadd.f32 %v4109_v51, %v10113_v3  ;;  %v10300_v32 = vpop.f32.mrf.mxu0  ;;  %v8225_v58 = vpop.eup %8224  ;;  %v4484_v50 = vadd.f32 %v4468_v30, %v10182_v16  ;;  %v4575_v21 = vsub.f32 %v4559_v48, %v11245_v14  ;;  %v6713_v48 = vmul.f32 -1.442695, %v4242_v34 }
 0x77c   : > { %11249 = vst [vmem:[#allocation42_spill] sm:$0xff] %v10291_v20  ;;  %v10302_v8 = vpop.permute.xlu1 %3112  ;;  %v4111_v45 = vpop.f32.mrf.mxu1  ;;  %8252 = vrcp.f32 %v4361_v18  ;;  %v6711_v20 = vmul.f32 -1.442695, %v4240_v35  ;;  %v4528_v3 = vmul.f32 %v8225_v58, %v4512_v29  ;;  %v6712_v18 = vmul.f32 -1.442695, %v4241_v23 }
 0x77d   : > { %v8227_v49 = vpop.eup %8226  ;;  %v4244_v41 = vadd.f32 %v4111_v45, %v10128_v22  ;;  %v4594_v28 = vpop.permute.xlu0 %4593  ;;  %8254 = vtanh.f32 %v4484_v50  ;;  %v4514_v19 = vsub.f32 1.0, %v10251_v44  ;;  %v6714_v23 = vmul.f32 -1.442695, %v4243_v39 }
 0x77e   : > { %v7516_v36 = vpop.f32.mrf.mxu0  ;;  %v8229_v51 = vpop.eup %8228  ;;  %v4469_v6 = vmul.f32 %v8227_v49, %v10261_v12  ;;  %8256 = vpow2.f32 %v6709_v4  ;;  %v4560_v29 = vadd.f32 %v10240_v46, %v4528_v3  ;;  %v4671_v58 = vmul.f32 %v4594_v28, %v4575_v21 }
 0x77f   : > { %v10310_v16 = vadd.f32 %v7516_v36, %v10178_v7  ;;  %v4113_v47 = vpop.f32.mrf.mxu1  ;;  %v10312_v30 = vpop.eup %8230  ;;  %8258 = vpow2.f32 %v6710_v38  ;;  %v4529_v38 = vmul.f32 %v8229_v51, %v4513_v31  ;;  %v4515_v28 = vsub.f32 1.0, %v10278_v10 }
 0x780   : > { %v4245_v22 = vadd.f32 %v4113_v47, %v10143_v37  ;;  %v10317_v35 = vpop.f32.mrf.mxu0  ;;  %v8233_v12 = vpop.eup %8232  ;;  %v4485_v0 = vadd.f32 %v4469_v6, %v10150_v33  ;;  %8260 = vpow2.f32 %v6711_v20  ;;  %v10326_v46 = vadd.f32 %v4671_v58, %v11245_v14 }
 0x781   : > { %v8235_v50 = vpop.eup %8234  ;;  %v4362_v45 = vadd.f32 1.0, %v8233_v12  ;;  %v4599_v4 = vpop.permute.xlu1 %4598  ;;  %v4576_v6 = vsub.f32 %v4560_v29, %v11246_v56  ;;  %v4561_v29 = vadd.f32 %v10256_v52, %v4529_v38 }
 0x782   : > { %v10321_v49 = vpop.f32.mrf.mxu0  ;;  %v8237_v37 = vpop.eup %8236  ;;  %8262 = vtanh.f32 %v4485_v0  ;;  %v4470_v36 = vmul.f32 %v8235_v50, %v10272_v55  ;;  %v6715_v55 = vmul.f32 -1.442695, %v4244_v41 }
 0x783   : > { %v10329_v33 = vpop.eup %8238  ;;  %8264 = vrcp.f32 %v4362_v45  ;;  %v4115_v20 = vpop.f32.mrf.mxu1  ;;  %v4672_v21 = vmul.f32 %v4599_v4, %v4576_v6  ;;  %v4530_v39 = vmul.f32 %v8237_v37, %v4514_v19  ;;  %v4456_v45 = vadd.f32 %v10178_v7, %v10281_v60 }
 0x784   : > { %v10331_v34 = vpop.f32.mrf.mxu0  ;;  %v8241_v44 = vpop.eup %8240  ;;  %v4486_v3 = vadd.f32 %v4470_v36, %v10168_v43  ;;  %8266 = vpow2.f32 %v6712_v18  ;;  %v4246_v10 = vadd.f32 %v4115_v20, %v10155_v11  ;;  %v6716_v11 = vmul.f32 -1.442695, %v4245_v22 }
 0x785   : > { %v8243_v14 = vpop.eup %8242  ;;  %v4471_v47 = vmul.f32 %v8241_v44, %v4455_v42  ;;  %8268 = vpow2.f32 %v6713_v48  ;;  %v10342_v31 = vadd.f32 %v4672_v21, %v11246_v56  ;;  %v4604_v43 = vpop.permute.xlu0 %4603  ;;  %v4577_v42 = vsub.f32 %v4561_v29, %v10029_v62 }
 0x786   : > { %v10336_v12 = vpop.f32.mrf.mxu0  ;;  %v10338_v0 = vpop.eup %8244  ;;  %v4363_v58 = vadd.f32 1.0, %v8243_v14  ;;  %8270 = vtanh.f32 %v4486_v3  ;;  %v4562_v18 = vadd.f32 %v10276_v1, %v4530_v39  ;;  %v6717_v38 = vmul.f32 -1.442695, %v4246_v10 }
 0x787   : > { %v8247_v41 = vpop.eup %8246  ;;  %v4487_v51 = vadd.f32 %v4471_v47, %v10186_v57  ;;  %8272 = vpow2.f32 %v6714_v23  ;;  %v4609_v48 = vpop.permute.xlu1 %4608  ;;  %v4673_v37 = vmul.f32 %v4604_v43, %v4577_v42  ;;  %v11250_v23 = vld [vmem:[#allocation37_spill] sm:$0xff]  ;;  %v11251_v14 = vsub.f32 %v9680_v59, %v10090_v2 }
 0x788   : > { %v10346_v52 = vpop.f32.mrf.mxu0  ;;  %v8249_v50 = vpop.eup %8248  ;;  %8274 = vrcp.f32 %v4363_v58  ;;  %v4531_v56 = vmul.f32 %v8247_v41, %v4515_v28  ;;  %v4578_v57 = vsub.f32 %v4562_v18, %v10032_v5  ;;  %v3817_v1 = vadd.f32 %v11250_v23, %v9955_v61 }
 0x789   : > { %v8251_v4 = vpop.eup %8250  ;;  %v4364_v19 = vadd.f32 1.0, %v8249_v50  ;;  %8276 = vtanh.f32 %v4487_v51  ;;  %v10357_v22 = vadd.f32 %v4673_v37, %v10029_v62  ;;  %v3127_v47 = vmul.f32 %v10266_v17, %v11251_v14  ;;  %v4614_v43 = vpop.permute.xlu0 %4613 }
 0x78a   : > { %v10352_v36 = vpop.f32.mrf.mxu0  ;;  %v8253_v6 = vpop.eup %8252  ;;  %v4365_v20 = vadd.f32 1.0, %v8251_v4  ;;  %8278 = vpow2.f32 %v6715_v55  ;;  %v4674_v28 = vmul.f32 %v4609_v48, %v4578_v57  ;;  %v4563_v29 = vadd.f32 %v10295_v24, %v4531_v56 }
 0x78b   : > { %v8255_v44 = vpop.eup %8254  ;;  %8280 = vrcp.f32 %v4364_v19  ;;  %v4472_v60 = vmul.f32 %v8253_v6, %v4456_v45  ;;  %v4516_v55 = vsub.f32 1.0, %v10297_v63  ;;  %v11252_v59 = vsub.f32 %v10079_v13, %v10067_v27  ;;  %v10386_v13 = vld [vmem:[#allocation10 + $0x70] sm:$0xff] }
 0x78c   : > { %v10359_v3 = vpop.f32.mrf.mxu0  ;;  %v8257_v21 = vpop.eup %8256  ;;  %8282 = vrcp.f32 %v4365_v20  ;;  %v10368_v62 = vadd.f32 %v4674_v28, %v10032_v5  ;;  %v4579_v24 = vsub.f32 %v4563_v29, %v10039_v40  ;;  %v10384_v56 = vadd.f32 %v10090_v2, %v3127_v47  ;;  %v11254_v28 = vld [vmem:[#allocation28_spill] sm:$0xff] }
 0x78d   : > { %v8259_v39 = vpop.eup %8258  ;;  %v4366_v58 = vadd.f32 1.0, %v8257_v21  ;;  %v4488_v10 = vadd.f32 %v4472_v60, %v3817_v1  ;;  %8284 = vpow2.f32 %v6716_v11  ;;  %v3128_v17 = vmul.f32 %v10283_v9, %v11252_v59  ;;  %v11253_v9 = vld [vmem:[#allocation53_spill] sm:$0xff] }
 0x78e   : > { %v10370_v41 = vpop.f32.mrf.mxu0  ;;  %v8261_v51 = vpop.eup %8260  ;;  %v4367_v42 = vadd.f32 1.0, %v8259_v39  ;;  %8286 = vpow2.f32 %v6717_v38  ;;  %v4532_v5 = vmul.f32 %v8255_v44, %v4516_v55  ;;  %v4548_v11 = vmul.f32 %v10297_v63, %v10056_v53 }
 0x78f   : > { %v8263_v18 = vpop.eup %8262  ;;  %8288 = vrcp.f32 %v4366_v58  ;;  %v4368_v50 = vadd.f32 1.0, %v8261_v51  ;;  %v3033_v4 = vsub.f32 %v11253_v9, %v10386_v13  ;;  %v4675_v19 = vmul.f32 %v4614_v43, %v4579_v24  ;;  %v4619_v44 = vpop.permute.xlu1 %4618  ;;  %v11265_v9 = vld [vmem:[#allocation42_spill] sm:$0xff] }
 0x790   : > { %v10377_v45 = vpop.f32.mrf.mxu0  ;;  %v10381_v48 = vpop.eup %8264  ;;  %8290 = vrcp.f32 %v4367_v42  ;;  %v4564_v57 = vadd.f32 %v4548_v11, %v4532_v5  ;;  %v4517_v23 = vsub.f32 1.0, %v10312_v30  ;;  %v4549_v63 = vmul.f32 %v10312_v30, %v10058_v54  ;;  %v11255_v42 = vld [vmem:[#allocation36_spill] sm:$0xff] }
 0x791   : > { %v8267_v37 = vpop.eup %8266  ;;  %8292 = vrcp.f32 %v4368_v50  ;;  %v10396_v2 = vadd.f32 %v10067_v27, %v3128_v17  ;;  %v10399_v38 = vadd.f32 %v4675_v19, %v10039_v40  ;;  %v3822_v21 = vadd.f32 %v11254_v28, %v9955_v61  ;;  %v4624_v50 = vpop.permute.xlu0 %4623 }
 0x792   : > { %v10390_v6 = vpop.f32.mrf.mxu0  ;;  %v8269_v1 = vpop.eup %8268  ;;  %v4369_v20 = vadd.f32 1.0, %v8267_v37  ;;  %8294 = vtanh.f32 %v4488_v10  ;;  %v4580_v47 = vsub.f32 %v4564_v57, %v10056_v53  ;;  %v4533_v30 = vmul.f32 %v8263_v18, %v4517_v23 }
 0x793   : > { %v8271_v60 = vpop.eup %8270  ;;  %v4370_v14 = vadd.f32 1.0, %v8269_v1  ;;  %v4457_v27 = vadd.f32 %v10249_v26, %v10178_v7  ;;  %v4518_v39 = vsub.f32 1.0, %v10329_v33  ;;  %v4550_v40 = vmul.f32 %v10329_v33, %v10065_v15 }
 0x794   : > { %v10404_v29 = vpop.f32.mrf.mxu0  ;;  %v8273_v55 = vpop.eup %8272  ;;  %8296 = vrcp.f32 %v4369_v20  ;;  %v4676_v43 = vmul.f32 %v4619_v44, %v4580_v47  ;;  %v4565_v51 = vadd.f32 %v4549_v63, %v4533_v30  ;;  %v3825_v24 = vadd.f32 %v11255_v42, %v9955_v61  ;;  %v11256_v63 = vld [vmem:[#allocation38_spill] sm:$0xff]  ;;  %v11257_v44 = vld [vmem:[#allocation43_spill] sm:$0xff] }
 0x795   : > { %v8275_v58 = vpop.eup %8274  ;;  %8298 = vrcp.f32 %v4370_v14  ;;  %v4371_v10 = vadd.f32 1.0, %v8273_v55  ;;  %v4534_v26 = vmul.f32 %v8271_v60, %v4518_v39  ;;  %v4519_v5 = vsub.f32 1.0, %v10338_v0 }
 0x796   : > { %v10411_v59 = vpop.f32.mrf.mxu0  ;;  %v8277_v17 = vpop.eup %8276  ;;  %v4473_v18 = vmul.f32 %v8275_v58, %v4457_v27  ;;  %v10417_v33 = vadd.f32 %v4676_v43, %v10056_v53  ;;  %v4581_v19 = vsub.f32 %v4565_v51, %v10058_v54  ;;  %v4551_v57 = vmul.f32 %v10338_v0, %v10074_v25  ;;  %v11258_v53 = vld [vmem:[#allocation35_spill] sm:$0xff]  ;;  %v4718_v51 = vld [vmem:[#allocation2 + $0x158] sm:$0xff] }
 0x797   : > { %v8279_v11 = vpop.eup %8278  ;;  %8300 = vrcp.f32 %v4371_v10  ;;  %v3830_v1 = vadd.f32 %v11256_v63, %v9955_v61  ;;  %v4458_v60 = vadd.f32 %v11257_v44, %v10178_v7  ;;  %v10432_v47 = vadd.f32 %v11258_v53, %v9955_v61  ;;  %v4629_v43 = vpop.permute.xlu1 %4628 }
 0x798   : > { %v10420_v37 = vpop.f32.mrf.mxu0  ;;  %v10424_v23 = vpop.eup %8280  ;;  %v4489_v20 = vadd.f32 %v4473_v18, %v3822_v21  ;;  %v4372_v28 = vadd.f32 1.0, %v8279_v11  ;;  %v4677_v30 = vmul.f32 %v4624_v50, %v4581_v19  ;;  %v4566_v55 = vadd.f32 %v4550_v40, %v4534_v26  ;;  %v4719_v50 = vld [vmem:[#allocation2 + $0x150] sm:$0xff] }
 0x799   : > { %v8283_v14 = vpop.eup %8282  ;;  %v4535_v39 = vmul.f32 %v8277_v17, %v4519_v5  ;;  %v4459_v10 = vadd.f32 %v10178_v7, %v10300_v32  ;;  %v4460_v21 = vadd.f32 %v10178_v7, %v10317_v35  ;;  %v4716_v32 = vld [vmem:[#allocation2 + $0x70] sm:$0xff]  ;;  %v4520_v7 = vsub.f32 1.0, %v10381_v48  ;;  %v4634_v44 = vpop.permute.xlu0 %4633 }
 0x79a   : > { %v7547_v27 = vpop.f32.mrf.mxu0  ;;  %v8285_v0 = vpop.eup %8284  ;;  %8302 = vtanh.f32 %v4489_v20  ;;  %v4474_v58 = vmul.f32 %v8283_v14, %v4458_v60  ;;  %v10439_v61 = vadd.f32 %v4677_v30, %v10058_v54  ;;  %v4582_v40 = vsub.f32 %v4566_v55, %v10065_v15  ;;  %v4717_v54 = vld [vmem:[#allocation2 + $0x30] sm:$0xff] }
 0x79b   : > { %v8287_v42 = vpop.eup %8286  ;;  %8304 = vrcp.f32 %v4372_v28  ;;  %v4373_v18 = vadd.f32 1.0, %v8285_v0  ;;  %v4567_v19 = vadd.f32 %v4551_v57, %v4535_v39  ;;  %v4896_v20 = vadd.f32 %v7547_v27, %v4718_v51  ;;  %v11259_v28 = vld [vmem:[#allocation26_spill] sm:$0xff] }
 0x79c   : > { %v4867_v17 = vpop.f32.mrf.mxu0  ;;  %v10442_v26 = vpop.eup %8288  ;;  %v4490_v5 = vadd.f32 %v4474_v58, %v3825_v24  ;;  %v4374_v11 = vadd.f32 1.0, %v8287_v42  ;;  %v4678_v63 = vmul.f32 %v4629_v43, %v4582_v40  ;;  %v4552_v14 = vmul.f32 %v10381_v48, %v11259_v28  ;;  %v4715_v24 = vld [vmem:[#allocation2 + $0x68] sm:$0xff]  ;;  %v11260_v43 = vld [vmem:[#allocation44_spill] sm:$0xff] }
 0x79d   : > { %v8291_v35 = vpop.eup %8290  ;;  %8306 = vrcp.f32 %v4373_v18  ;;  %v4583_v55 = vsub.f32 %v4567_v19, %v10074_v25  ;;  %v4894_v27 = vadd.f32 %v4867_v17, %v4716_v32  ;;  %v4553_v51 = vmul.f32 %v10424_v23, %v11260_v43 }
 0x79e   : > { %v7548_v60 = vpop.f32.mrf.mxu0  ;;  %v10447_v53 = vpop.eup %8292  ;;  %8308 = vtanh.f32 %v4490_v5  ;;  %v4475_v30 = vmul.f32 %v8291_v35, %v4459_v10  ;;  %v10451_v0 = vadd.f32 %v4678_v63, %v10065_v15  ;;  %v4714_v10 = vld [vmem:[#allocation2 + $0x50] sm:$0xff]  ;;  %v4893_v35 = vadd.f32 %v10411_v59, %v4715_v24  ;;  %v11263_v59 = vld [vmem:[#allocation32_spill] sm:$0xff] }
 0x79f   : > { %v4897_v57 = vadd.f32 %v7548_v60, %v4719_v50  ;;  %v8295_v39 = vpop.eup %8294  ;;  %8310 = vrcp.f32 %v4374_v11  ;;  %v4679_v48 = vmul.f32 %v4634_v44, %v4583_v55  ;;  %v11261_v50 = vld [vmem:[#allocation50_spill] sm:$0xff]  ;;  %v10462_v15 = vmul.f32 %v10447_v53, %v10384_v56 }
 0x7a0   : > { %v4870_v58 = vpop.f32.mrf.mxu0  ;;  %v4491_v42 = vadd.f32 %v4475_v30, %v3830_v1  ;;  %v4536_v19 = vmul.f32 %v8295_v39, %v4520_v7  ;;  %v10458_v11 = vmul.f32 %v10442_v26, %v11261_v50  ;;  %v3129_v7 = vmul.f32 %v11263_v59, %v3033_v4  ;;  %v11264_v44 = vld [vmem:[#allocation54_spill] sm:$0xff]  ;;  %v4712_v4 = vld [vmem:[#allocation2] sm:$0xff] }
 0x7a1   : > { %v4905_v18 = vpack.c.bf16 %v4897_v57, %v4896_v20  ;;  %v4895_v40 = vadd.f32 %v4870_v58, %v4717_v54  ;;  %v8297_v5 = vpop.eup %8296  ;;  %v10467_v32 = vadd.f32 %v4679_v48, %v10074_v25  ;;  %v8514_v20 = vld [vmem:[#allocation10 + $0x78] sm:$0xff]  ;;  %v4892_v55 = vadd.f32 %v10390_v6, %v4714_v10  ;;  %v4639_v57 = vpop.permute.xlu1 %4638  ;;  %v4711_v58 = vld [vmem:[#allocation2 + $0x8] sm:$0xff] }
 0x7a2   : > { %v10464_v17 = vpop.eup %8298  ;;  %8312 = vtanh.f32 %v4491_v42  ;;  %v4476_v1 = vmul.f32 %v8297_v5, %v4460_v21  ;;  %v3034_v60 = vsub.f32 %v11264_v44, %v8514_v20  ;;  %v4713_v54 = vld [vmem:[#allocation2 + $0x78] sm:$0xff]  ;;  %v4568_v30 = vadd.f32 %v4552_v14, %v4536_v19  ;;  %v11266_v5 = vld [vmem:[#allocation33_spill] sm:$0xff] }
 0x7a3   : > { %11262 = vst [vmem:[#allocation45_spill] sm:$0xff] %v10467_v32  ;;  %v4904_v63 = vpack.c.bf16 %v4895_v40, %v4894_v27  ;;  %7549 = vmatprep.subr.bf16.mxu1 %v4905_v18  ;;  %v10476_v24 = vmul.f32 %v10464_v17, %v10396_v2  ;;  %v4903_v14 = vpack.c.bf16 %v4893_v35, %v4892_v55  ;;  %v4521_v48 = vsub.f32 1.0, %v10424_v23 }
 0x7a4   : > { %7550 = vmatpush3.bf16.msra.mxu1 %v4905_v18  ;;  %v8301_v21 = vpop.eup %8300  ;;  %v4492_v25 = vadd.f32 %v4476_v1, %v10432_v47  ;;  %v4584_v27 = vsub.f32 %v4568_v30, %v11259_v28  ;;  %v4891_v42 = vadd.f32 %v10420_v37, %v4713_v54  ;;  %v10485_v40 = vadd.f32 %v10386_v13, %v3129_v7  ;;  %v4710_v1 = vld [vmem:[#allocation2 + $0x98] sm:$0xff] }
 0x7a5   : > { %7551 = vmatprep.subr.bf16.mxu1 %v4904_v63  ;;  %v4477_v39 = vmul.f32 %v8301_v21, %v11265_v9  ;;  %v3130_v6 = vmul.f32 %v10302_v8, %v3034_v60  ;;  %v4890_v59 = vadd.f32 %v10404_v29, %v4712_v4  ;;  %v4889_v37 = vadd.f32 %v10370_v41, %v4711_v58  ;;  %v4709_v30 = vld [vmem:[#allocation2 + $0x18] sm:$0xff]  ;;  %v11268_v9 = vld [vmem:[#allocation25_spill] sm:$0xff] }
 0x7a6   : > { %8314 = vtanh.f32 %v4492_v25  ;;  %v4680_v47 = vmul.f32 %v4639_v57, %v4584_v27  ;;  %v4522_v44 = vsub.f32 1.0, %v10442_v26  ;;  %v4888_v41 = vadd.f32 %v10352_v36, %v4710_v1  ;;  %v4708_v57 = vld [vmem:[#allocation2 + $0xc0] sm:$0xff] }
 0x7a7   : > { %v8303_v18 = vpop.eup %8302  ;;  %v4493_v10 = vadd.f32 %v4477_v39, %v11266_v5  ;;  %v10501_v54 = vadd.f32 %v8514_v20, %v3130_v6  ;;  %v4707_v39 = vld [vmem:[#allocation2 + $0x38] sm:$0xff]  ;;  %v4523_v27 = vsub.f32 1.0, %v10447_v53 }
 0x7a8   : > { %7552 = vmatpush3.bf16.msra.mxu1 %v4904_v63  ;;  %v10489_v19 = vpop.eup %8304  ;;  %v4537_v35 = vmul.f32 %v8303_v18, %v4521_v48  ;;  %v10494_v23 = vadd.f32 %v4680_v47, %v11259_v28  ;;  %v4902_v63 = vpack.c.bf16 %v4891_v42, %v4890_v59  ;;  %v4644_v28 = vpop.permute.xlu0 %4643  ;;  %v4886_v42 = vadd.f32 %v10359_v3, %v4708_v57  ;;  %v4706_v47 = vld [vmem:[#allocation2 + $0x28] sm:$0xff] }
 0x7a9   : > { %7553 = vmatprep.subr.bf16.mxu1 %v4903_v14  ;;  %8316 = vtanh.f32 %v4493_v10  ;;  %v10498_v8 = vmul.f32 %v10489_v19, %v10485_v40  ;;  %v4524_v10 = vsub.f32 1.0, %v10464_v17  ;;  %v4705_v59 = vld [vmem:[#allocation2 + $0xc8] sm:$0xff]  ;;  %v4884_v3 = vadd.f32 %v10321_v49, %v4706_v47  ;;  %v8521_v47 = vld [vmem:[%s8924_s21 + $0x38] sm:$0xff]  }
 0x7aa   : > { %11267 = vst [vmem:[#allocation46_spill] sm:$0xff] %v10494_v23  ;;  %v8307_v13 = vpop.eup %8306  ;;  %v4569_v7 = vadd.f32 %v4553_v51, %v4537_v35  ;;  %v4901_v51 = vpack.c.bf16 %v4889_v37, %v4888_v41  ;;  %v4883_v17 = vadd.f32 %v10346_v52, %v4705_v59  ;;  %v7970_v59 = vld [vmem:[%s11164_s23 + $0x22c] ss:$12 sps:$4 sm:$0xff]  }
 0x7ab   : > { %v8309_v60 = vpop.eup %8308  ;;  %v4478_v29 = vmul.f32 %v8307_v13, %v10310_v16  ;;  %v4887_v16 = vadd.f32 %v10377_v45, %v4709_v30  ;;  %v4885_v45 = vadd.f32 %v10336_v12, %v4707_v39  ;;  %v4704_v12 = vld [vmem:[#allocation2 + $0x60] sm:$0xff] }
 0x7ac   : > { %7554 = vmatpush3.bf16.msra.mxu1 %v4903_v14  ;;  %v10505_v21 = vpop.eup %8310  ;;  %v4585_v25 = vsub.f32 %v4569_v7, %v11260_v43  ;;  %v4538_v55 = vmul.f32 %v8309_v60, %v4522_v44  ;;  %v4649_v14 = vpop.permute.xlu1 %4648  ;;  %v4882_v49 = vadd.f32 %v10331_v34, %v4704_v12  ;;  %v1535_v12 = vld [vmem:[%s8936_s30 + $0x110] sm:$0xff] }
 0x7ad   : > { %7555 = vmatprep.subr.bf16.mxu1 %v4902_v63  ;;  %v4494_v26 = vadd.f32 %v4478_v29, %v11268_v9  ;;  %v4558_v20 = vmul.f32 %v10505_v21, %v10501_v54  ;;  %v4900_v5 = vpack.c.bf16 %v4887_v16, %v4886_v42  ;;  %v4654_v35 = vpop.permute.xlu0 %4653  ;;  %v8515_v16 = vld [vmem:[%s8924_s21 + $0x8] sm:$0xff]   ;;  %v7955_v42 = vld [vmem:[%s11083_s6 + $0x1d0] ss:$12 sps:$4 sm:$0xff]  }
 0x7ae   : > { %v4681_v36 = vmul.f32 %v4644_v28, %v4585_v25  ;;  %v4570_v4 = vadd.f32 %v10458_v11, %v4538_v55  ;;  %v4898_v28 = vpack.c.bf16 %v4883_v17, %v4882_v49  ;;  %v1539_v17 = vld [vmem:[%s8936_s30 + $0x130] sm:$0xff]  ;;  %v1546_v49 = vld [vmem:[%s8936_s30 + $0x168] sm:$0xff] }
 0x7af   : > { %v8313_v58 = vpop.eup %8312  ;;  %8318 = vtanh.f32 %v4494_v26 }
 0x7b0   : > { %7556 = vmatpush3.bf16.msra.mxu1 %v4902_v63  ;;  %v10516_v48 = vadd.f32 %v4681_v36, %v11260_v43  ;;  %v4586_v18 = vsub.f32 %v4570_v4, %v11261_v50  ;;  %v4539_v6 = vmul.f32 %v8313_v58, %v4523_v27  ;;  %v4525_v63 = vsub.f32 1.0, %v10489_v19  ;;  %v4659_v29 = vpop.permute.xlu1 %4658  ;;  %v8516_v4 = vld [vmem:[%s8924_s21 + $0x10] sm:$0xff]   ;;  %v8517_v58 = vld [vmem:[%s8924_s21 + $0x18] sm:$0xff]  }
 0x7b1   : > { %7557 = vmatprep.subr.bf16.mxu1 %v4901_v51  ;;  %v4664_v55 = vpop.permute.xlu0 %4663  ;;  %v7951_v27 = vld [vmem:[%s11083_s6 + $0x1e8] ss:$12 sps:$4 sm:$0xff]  }
 0x7b2   : > { %11269 = vst [vmem:[#allocation47_spill] sm:$0xff] %v10516_v48  ;;  %v4682_v11 = vmul.f32 %v4649_v14, %v4586_v18  ;;  %v4571_v53 = vadd.f32 %v10462_v15, %v4539_v6  ;;  %v4899_v15 = vpack.c.bf16 %v4885_v45, %v4884_v3  ;;  %v8518_v14 = vld [vmem:[%s8924_s21 + $0x20] sm:$0xff]   ;;  %v8519_v18 = vld [vmem:[%s8924_s21 + $0x28] sm:$0xff]   ;;  %v8520_v6 = vld [vmem:[%s8924_s21 + $0x30] sm:$0xff]  }
 0x7b3   : > { %v8315_v1 = vpop.eup %8314  ;;  %v7960_v45 = vld [vmem:[%s11083_s6 + $0x198] ss:$12 sps:$4 sm:$0xff]   ;;  %v1534_v3 = vld [vmem:[%s8936_s30 + $0x108] sm:$0xff] }
 0x7b4   : > { %7558 = vmatpush3.bf16.msra.mxu1 %v4901_v51  ;;  %v10524_v43 = vadd.f32 %v4682_v11, %v11261_v50  ;;  %v4587_v37 = vsub.f32 %v4571_v53, %v10384_v56  ;;  %v4540_v13 = vmul.f32 %v8315_v1, %v4524_v10  ;;  %v4669_v39 = vpop.permute.xlu1 %4668  ;;  %v7963_v11 = vld [vmem:[%s11083_s6 + $0x1a0] ss:$12 sps:$4 sm:$0xff]   ;;  %v7966_v10 = vld [vmem:[%s11083_s6 + $0x184] ss:$12 sps:$4 sm:$0xff]   ;;  %v7967_v1 = vld [vmem:[%s11083_s6 + $0x188] ss:$12 sps:$4 sm:$0xff]   ;;  %6154 = vperm.xlu1 %7775, %v1534_v3  }
 0x7b5   : > { %7559 = vmatprep.subr.bf16.mxu1 %v4900_v5  ;;  %v7964_v53 = vld [vmem:[%s11083_s6 + $0x180] ss:$12 sps:$4 sm:$0xff]  }
 0x7b6   : > { %11270 = vst [vmem:[#allocation49_spill] sm:$0xff] %v10524_v43  ;;  %v8317_v7 = vpop.eup %8316  ;;  %v4683_v44 = vmul.f32 %v4654_v35, %v4587_v37  ;;  %v4572_v60 = vadd.f32 %v10476_v24, %v4540_v13  ;;  %v4526_v24 = vsub.f32 1.0, %v10505_v21  ;;  %v7992_v35 = vld [vmem:[%s11164_s23 + $0x230] ss:$12 sps:$4 sm:$0xff]   ;;  %v1533_v37 = vld [vmem:[%s8936_s30 + $0x100] sm:$0xff] }
 0x7b7   : > { %v4541_v41 = vmul.f32 %v8317_v7, %v4525_v63  ;;  %6149 = vperm.xlu0 %7774, %v1533_v37   ;;  %v1536_v13 = vld [vmem:[%s8936_s30 + $0x118] sm:$0xff]  ;;  %v1538_v63 = vld [vmem:[%s8936_s30 + $0x128] sm:$0xff]  ;;  %v1537_v7 = vld [vmem:[%s8936_s30 + $0x120] sm:$0xff] }
 0x7b8   : > { %7560 = vmatpush3.bf16.msra.mxu1 %v4900_v5  ;;  %v10532_v50 = vadd.f32 %v4683_v44, %v10384_v56  ;;  %v4588_v30 = vsub.f32 %v4572_v60, %v10396_v2  ;;  %v7939_v56 = vld [vmem:[%s11083_s6 + $0x230] ss:$12 sps:$4 sm:$0xff]   ;;  %6164 = vperm.xlu1 %7775, %v1536_v13   ;;  %v1542_v44 = vld [vmem:[%s8936_s30 + $0x148] sm:$0xff]  ;;  %v1541_v60 = vld [vmem:[%s8936_s30 + $0x140] sm:$0xff] }
 0x7b9   : > { %7561 = vmatprep.subr.bf16.mxu1 %v4899_v15  ;;  %v4573_v19 = vadd.f32 %v10498_v8, %v4541_v41  ;;  %v7962_v5 = vld [vmem:[%s11083_s6 + $0x19c] ss:$12 sps:$4 sm:$0xff]   ;;  %v1543_v41 = vld [vmem:[%s8936_s30 + $0x150] sm:$0xff]  ;;  %v7997_v13 = vld [vmem:[%s11164_s23 + $0x1b8] ss:$12 sps:$4 sm:$0xff]  }
 0x7ba   : > { %11271 = vst [vmem:[#allocation48_spill] sm:$0xff] %v10532_v50  ;;  %v4684_v25 = vmul.f32 %v4659_v29, %v4588_v30  ;;  %5202 = vmatprep.subr.bf16.mxu0 %v7962_v5  ;;  %v1544_v29 = vld [vmem:[%s8936_s30 + $0x158] sm:$0xff]  ;;  %v1545_v30 = vld [vmem:[%s8936_s30 + $0x160] sm:$0xff] }
 0x7bb   : > { %v4589_v52 = vsub.f32 %v4573_v19, %v10485_v40  ;;  %5203 = vmatpush1.bf16.msra.mxu0 %v7960_v45  ;;  %6159 = vperm.xlu0 %7774, %v1535_v12   ;;  %v1548_v19 = vld [vmem:[%s8936_s30 + $0x178] sm:$0xff]  ;;  %v7977_v45 = vld [vmem:[%s11164_s23 + $0x1e0] ss:$12 sps:$4 sm:$0xff]  }
 0x7bc   : > { %7562 = vmatpush3.bf16.msra.mxu1 %v4899_v15  ;;  %v8319_v57 = vpop.eup %8318  ;;  %v10539_v34 = vadd.f32 %v4684_v25, %v10396_v2  ;;  %v7943_v2 = vld [vmem:[%s11083_s6 + $0x218] ss:$12 sps:$4 sm:$0xff]   ;;  %5204 = vmatprep.subr.bf16.mxu0 %v7966_v10  ;;  %v7985_v37 = vld [vmem:[%s11164_s23 + $0x1b4] ss:$12 sps:$4 sm:$0xff]  }
 0x7bd   : > { %7563 = vmatprep.subr.bf16.mxu1 %v4898_v28  ;;  %v4685_v8 = vmul.f32 %v4664_v55, %v4589_v52  ;;  %v4542_v51 = vmul.f32 %v8319_v57, %v4526_v24  ;;  %6174 = vperm.xlu1 %7775, %v1538_v63   ;;  %v1540_v15 = vld [vmem:[%s8936_s30 + $0x138] sm:$0xff] }
 0x7be   : > { %11272 = vst [vmem:[#allocation51_spill] sm:$0xff] %v10539_v34  ;;  %v7983_v63 = vld [vmem:[%s11164_s23 + $0x1b0] ss:$12 sps:$4 sm:$0xff]  }
 0x7bf   : > { %v10545_v9 = vadd.f32 %v4685_v8, %v10485_v40  ;;  %v4574_v26 = vadd.f32 %v4558_v20, %v4542_v51  ;;  %v7947_v40 = vld [vmem:[%s11083_s6 + $0x200] ss:$12 sps:$4 sm:$0xff]   ;;  %5205 = vmatpush1.bf16.msra.mxu0 %v7964_v53  ;;  %6169 = vperm.xlu0 %7774, %v1537_v7   ;;  %v7996_v53 = vld [vmem:[%s11164_s23 + $0x1d0] ss:$12 sps:$4 sm:$0xff]  }
 0x7c0   : > { %7564 = vmatpush3.bf16.msra.mxu1 %v4898_v28  ;;  %7613 = vmatprep.subr.bf16.mxu0 %v7992_v35  ;;  %v1547_v28 = vld [vmem:[%s8936_s30 + $0x170] sm:$0xff] }
 0x7c1   : > { %11273 = vst [vmem:[#allocation52_spill] sm:$0xff] %v10545_v9  ;;  %7581 = vmatprep.subr.bf16.mxu1 %v7939_v56  ;;  %v4590_v21 = vsub.f32 %v4574_v26, %v10501_v54  ;;  %6184 = vperm.xlu1 %7775, %v1540_v15   ;;  %v7973_v26 = vld [vmem:[%s11164_s23 + $0x214] ss:$12 sps:$4 sm:$0xff]   ;;  %v7988_v15 = vld [vmem:[%s11164_s23 + $0x19c] ss:$12 sps:$4 sm:$0xff]  }
 0x7c3   : > { %7566 = vmatmul.mubr.bf16.vlgmr.msra.gmra.mxu1 %v8515_v16  ;;  %v4686_v36 = vmul.f32 %v4669_v39, %v4590_v21  ;;  %6179 = vperm.xlu0 %7774, %v1539_v17   ;;  %v7993_v39 = vld [vmem:[%s11164_s23 + $0x218] ss:$12 sps:$4 sm:$0xff]   ;;  %v11275_v21 = vmov 0   ;;  %v7971_v16 = vld [vmem:[%s11164_s23 + $0x210] ss:$12 sps:$4 sm:$0xff]  }
 0x7c4   : > { %7569 = vmatprep.mubr.bf16.mxu1 %v8516_v4  ;;  %7582 = vmatpush3.bf16.msra.mxu1 %v7939_v56  ;;  %v7968_v56 = vld [vmem:[%s11164_s23 + $0x228] ss:$12 sps:$4 sm:$0xff]   ;;  %v7998_v17 = vld [vmem:[%s11164_s23 + $0x1a0] ss:$12 sps:$4 sm:$0xff]  }
 0x7c5   : > { %7583 = vmatprep.subr.bf16.mxu1 %v7943_v2  ;;  %v10557_v20 = vadd.f32 %v4686_v36, %v10501_v54  ;;  %v7959_v54 = vld [vmem:[%s11083_s6 + $0x1b8] ss:$12 sps:$4 sm:$0xff]   ;;  %6194 = vperm.xlu1 %7775, %v1542_v44   ;;  %v7976_v4 = vld [vmem:[%s11164_s23 + $0x1fc] ss:$12 sps:$4 sm:$0xff]  }
 0x7c7   : > { %11274 = vst [vmem:[#allocation39_spill] sm:$0xff] %v10557_v20  ;;  %6189 = vperm.xlu0 %7774, %v1541_v60  }
 0x7c8   : > { %7584 = vmatpush3.bf16.msra.mxu1 %v7943_v2 }
 0x7c9   : > { %7585 = vmatprep.subr.bf16.mxu1 %v7947_v40  ;;  %6204 = vperm.xlu1 %7775, %v1544_v29   ;;  %v7986_v29 = vld [vmem:[%s11164_s23 + $0x198] ss:$12 sps:$4 sm:$0xff]  }
 0x7cb   : > { %7570 = vmatmul.mubr.bf16.gmra.mxu1 %v8517_v58  ;;  %6199 = vperm.xlu0 %7774, %v1543_v41  }
 0x7cc   : > { %7573 = vmatprep.mubr.bf16.mxu1 %v8518_v14  ;;  %7586 = vmatpush3.bf16.msra.mxu1 %v7947_v40  ;;  %v7994_v40 = vld [vmem:[%s11164_s23 + $0x200] ss:$12 sps:$4 sm:$0xff]   ;;  %v7974_v14 = vld [vmem:[%s11164_s23 + $0x1f8] ss:$12 sps:$4 sm:$0xff]  }
 0x7cd   : > { %7587 = vmatprep.subr.bf16.mxu1 %v7951_v27  ;;  %6214 = vperm.xlu1 %7775, %v1546_v49   ;;  %v7991_v49 = vld [vmem:[%s11164_s23 + $0x184] ss:$12 sps:$4 sm:$0xff]  }
 0x7cf   : > { %6209 = vperm.xlu0 %7774, %v1545_v30   ;;  %v7999_v30 = vld [vmem:[%s11164_s23 + $0x188] ss:$12 sps:$4 sm:$0xff]  }
 0x7d0   : > { %7588 = vmatpush3.bf16.msra.mxu1 %v7951_v27 }
 0x7d1   : > { %7589 = vmatprep.subr.bf16.mxu1 %v7955_v42  ;;  %6224 = vperm.xlu1 %7775, %v1548_v19   ;;  %v7989_v19 = vld [vmem:[%s11164_s23 + $0x180] ss:$12 sps:$4 sm:$0xff]  }
 0x7d3   : > { %7574 = vmatmul.mubr.bf16.gmra.mxu1 %v8519_v18  ;;  %6219 = vperm.xlu0 %7774, %v1547_v28   ;;  %v7979_v18 = vld [vmem:[%s11164_s23 + $0x1e4] ss:$12 sps:$4 sm:$0xff]  }
 0x7d4   : > { %7577 = vmatprep.mubr.bf16.mxu1 %v8520_v6  ;;  %7590 = vmatpush3.bf16.msra.mxu1 %v7955_v42  ;;  %v7995_v6 = vld [vmem:[%s11164_s23 + $0x1e8] ss:$12 sps:$4 sm:$0xff]   ;;  %v11276_v28 = vld [vmem:[#allocation17_spill] sm:$0xff] }
 0x7d5   : > { %7591 = vmatprep.subr.bf16.mxu1 %v7959_v54 }
 0x7d8   : > { %7592 = vmatpush3.bf16.msra.mxu1 %v7959_v54 }
 0x7d9   : > { %7593 = vmatprep.subr.bf16.mxu1 %v7963_v11 }
 0x7db   : > { %7578 = vmatmul.mubr.bf16.gmra.mxu1 %v8521_v47 }
 0x7dc   : > { %7594 = vmatpush3.bf16.msra.mxu1 %v7963_v11  ;;  %v7982_v11 = vld [vmem:[%s11164_s23 + $0x1cc] ss:$12 sps:$4 sm:$0xff]  }
 0x7dd   : > { %7595 = vmatprep.subr.bf16.mxu1 %v7967_v1 }
 0x7e0   : > { %7596 = vmatpush3.bf16.msra.mxu1 %v7967_v1 }
 0x7e1   : > { %5561 = vmatprep.subr.bf16.mxu1 %v7970_v59  ;;  %v7980_v59 = vld [vmem:[%s11164_s23 + $0x1c8] ss:$12 sps:$4 sm:$0xff]  }
 0x883   : > { %v7567_v25 = vpop.f32.mrf.mxu1 }
 0x885   : > { %v4940_v55 = vpop.f32.mrf.mxu1 }
 0x887   : > { %v7568_v52 = vpop.f32.mrf.mxu1 }
 0x888   : > { %v5004_v8 = vpack.c.bf16 %v7568_v52, %v7567_v25  ;;  %v11277_v25 = vld [vmem:[#allocation18_spill] sm:$0xff]  ;;  %v11279_v52 = vld [vmem:[#allocation20_spill] sm:$0xff] }
 0x889   : > { %v4943_v24 = vpop.f32.mrf.mxu1 }
 0x88a   : > { %v5003_v57 = vpack.c.bf16 %v4943_v24, %v4940_v55  ;;  %v11278_v55 = vld [vmem:[#allocation19_spill] sm:$0xff]  ;;  %v11280_v24 = vld [vmem:[#allocation21_spill] sm:$0xff] }
 0x88b   : > { %v7571_v51 = vpop.f32.mrf.mxu1 }
 0x88c   : > { %5223 = vmatmul.mubr.bf16.vlgmr.msra.gmra.mxu0 %v5003_v57  ;;  %7597 = vmatprep.mubr.bf16.mxu1 %v5003_v57  ;;  %v11281_v57 = vld [vmem:[#allocation22_spill] sm:$0xff] }
 0x88d   : > { %v4956_v2 = vpop.f32.mrf.mxu1  ;;  %7598 = vmatmul.mubr.bf16.vlgmr.msra.gmra.mxu1 %v5004_v8  ;;  %5232 = vmatprep.mubr.bf16.mxu0 %v11275_v21 }
 0x88e   : > { %5562 = vmatpush1.bf16.msra.mxu1 %v7968_v56  ;;  %7614 = vmatpush3.bf16.msra.mxu0 %v7992_v35  ;;  %v11282_v56 = vld [vmem:[#allocation23_spill] sm:$0xff] }
 0x88f   : > { %v7572_v36 = vpop.f32.mrf.mxu1  ;;  %5563 = vmatprep.subr.bf16.mxu1 %v7973_v26  ;;  %7615 = vmatprep.subr.bf16.mxu0 %v7993_v39 }
 0x890   : > { %v5006_v42 = vpack.c.bf16 %v7572_v36, %v7571_v51 }
 0x891   : > { %v4959_v27 = vpop.f32.mrf.mxu1 }
 0x892   : > { %v5005_v58 = vpack.c.bf16 %v4959_v27, %v4956_v2  ;;  %5564 = vmatpush1.bf16.msra.mxu1 %v7971_v16  ;;  %7616 = vmatpush3.bf16.msra.mxu0 %v7993_v39 }
 0x893   : > { %v7575_v54 = vpop.f32.mrf.mxu1  ;;  %5565 = vmatprep.subr.bf16.mxu1 %v7976_v4  ;;  %7617 = vmatprep.subr.bf16.mxu0 %v7994_v40 }
 0x894   : > { %5233 = vmatmul.mubr.bf16.gmra.mxu0 %v5004_v8  ;;  %7601 = vmatprep.mubr.bf16.mxu1 %v5005_v58  ;;  %v11283_v8 = vld [vmem:[#allocation24_spill] sm:$0xff] }
 0x895   : > { %v4972_v47 = vpop.f32.mrf.mxu1  ;;  %7602 = vmatmul.mubr.bf16.gmra.mxu1 %v5006_v42  ;;  %5242 = vmatprep.mubr.bf16.mxu0 %v11275_v21 }
 0x896   : > { %5566 = vmatpush1.bf16.msra.mxu1 %v7974_v14  ;;  %7618 = vmatpush3.bf16.msra.mxu0 %v7994_v40 }
 0x897   : > { %v7576_v5 = vpop.f32.mrf.mxu1  ;;  %5567 = vmatprep.subr.bf16.mxu1 %v7979_v18  ;;  %7619 = vmatprep.subr.bf16.mxu0 %v7995_v6 }
 0x898   : > { %v5008_v35 = vpack.c.bf16 %v7576_v5, %v7575_v54 }
 0x899   : > { %v4975_v10 = vpop.f32.mrf.mxu1 }
 0x89a   : > { %v5007_v1 = vpack.c.bf16 %v4975_v10, %v4972_v47  ;;  %5568 = vmatpush1.bf16.msra.mxu1 %v7977_v45  ;;  %7620 = vmatpush3.bf16.msra.mxu0 %v7995_v6  ;;  %v6760_v10 = vld [vmem:[%s11169_s12 + $0x6] sm:$0x7] }
 0x89b   : > { %v7579_v3 = vpop.f32.mrf.mxu1  ;;  %5569 = vmatprep.subr.bf16.mxu1 %v7982_v11  ;;  %7621 = vmatprep.subr.bf16.mxu0 %v7996_v53 }
 0x89c   : > { %5243 = vmatmul.mubr.bf16.gmra.mxu0 %v5005_v58  ;;  %7605 = vmatprep.mubr.bf16.mxu1 %v5007_v1 }
 0x89d   : > { %v4988_v12 = vpop.f32.mrf.mxu1  ;;  %7606 = vmatmul.mubr.bf16.gmra.mxu1 %v5008_v35  ;;  %5252 = vmatprep.mubr.bf16.mxu0 %v11275_v21 }
 0x89e   : > { %5570 = vmatpush1.bf16.msra.mxu1 %v7980_v59  ;;  %7622 = vmatpush3.bf16.msra.mxu0 %v7996_v53 }
 0x89f   : > { %v7580_v7 = vpop.f32.mrf.mxu1  ;;  %5571 = vmatprep.subr.bf16.mxu1 %v7985_v37  ;;  %7623 = vmatprep.subr.bf16.mxu0 %v7997_v13 }
 0x8a0   : > { %v5010_v41 = vpack.c.bf16 %v7580_v7, %v7579_v3  ;;  %v11284_v3 = vld [vmem:[#allocation27_spill] sm:$0xff] }
 0x8a1   : > { %v4991_v44 = vpop.f32.mrf.mxu1  ;;  %v10748_v37 = vrot.slane %v6760_v10, %v11284_v3 }
 0x8a2   : > { %v5009_v60 = vpack.c.bf16 %v4991_v44, %v4988_v12  ;;  %5572 = vmatpush1.bf16.msra.mxu1 %v7983_v63  ;;  %7624 = vmatpush3.bf16.msra.mxu0 %v7997_v13 }
 0x8a3   : > { %5573 = vmatprep.subr.bf16.mxu1 %v7988_v15  ;;  %7625 = vmatprep.subr.bf16.mxu0 %v7998_v17 }
 0x8a4   : > { %5253 = vmatmul.mubr.bf16.gmra.mxu0 %v5006_v42  ;;  %7609 = vmatprep.mubr.bf16.mxu1 %v5009_v60 }
 0x8a5   : > { %7610 = vmatmul.mubr.bf16.gmra.mxu1 %v5010_v41  ;;  %5262 = vmatprep.mubr.bf16.mxu0 %v11275_v21 }
 0x8a6   : > { %5574 = vmatpush1.bf16.msra.mxu1 %v7986_v29  ;;  %5593 = vmatprep.mubr.bf16.mxu1 %v11275_v21 }
 0x8a7   : > { %5575 = vmatprep.subr.bf16.mxu1 %v7991_v49  ;;  %7626 = vmatpush3.bf16.msra.mxu0 %v7998_v17  ;;  %v11286_v17 = vld [vmem:[#allocation29_spill] sm:$0xff] }
 0x8a8   : > { %7627 = vmatprep.subr.bf16.mxu0 %v7999_v30  ;;  %v10760_v44 = vrot.slane %v6760_v10, %v11286_v17 }
 0x8aa   : > { %5576 = vmatpush1.bf16.msra.mxu1 %v7989_v19 }
 0x8ab   : > { %7628 = vmatpush3.bf16.msra.mxu0 %v7999_v30 }
 0x8ac   : > { %5263 = vmatmul.mubr.bf16.gmra.mxu0 %v5007_v1 }
 0x8ad   : > { %5594 = vmatmul.mubr.bf16.vlgmr.msra.gmra.mxu1 %v11276_v28  ;;  %5272 = vmatprep.mubr.bf16.mxu0 %v11275_v21 }
 0x8ae   : > { %5603 = vmatprep.mubr.bf16.mxu1 %v11275_v21 }
 0x8b4   : > { %5273 = vmatmul.mubr.bf16.gmra.mxu0 %v5008_v35 }
 0x8b5   : > { %5604 = vmatmul.mubr.bf16.gmra.mxu1 %v11277_v25  ;;  %5282 = vmatprep.mubr.bf16.mxu0 %v11275_v21 }
 0x8b6   : > { %5613 = vmatprep.mubr.bf16.mxu1 %v11275_v21 }
 0x8bc   : > { %5283 = vmatmul.mubr.bf16.gmra.mxu0 %v5009_v60 }
 0x8bd   : > { %5614 = vmatmul.mubr.bf16.gmra.mxu1 %v11278_v55  ;;  %5292 = vmatprep.mubr.bf16.mxu0 %v11275_v21 }
 0x8be   : > { %5623 = vmatprep.mubr.bf16.mxu1 %v11275_v21 }
 0x8c4   : > { %5293 = vmatmul.mubr.bf16.gmra.mxu0 %v5010_v41  ;;  %v11287_v41 = vld [vmem:[#allocation30_spill] sm:$0xff] }
 0x8c5   : > { %5624 = vmatmul.mubr.bf16.gmra.mxu1 %v11279_v52  ;;  %7629 = vmatprep.mubr.bf16.mxu0 %v11276_v28  ;;  %v10765_v49 = vrot.slane %v6760_v10, %v11287_v41 }
 0x8c6   : > { %5633 = vmatprep.mubr.bf16.mxu1 %v11275_v21 }
 0x8cc   : > { %7630 = vmatmul.mubr.bf16.vlgmr.msra.gmra.mxu0 %v11277_v25 }
 0x8cd   : > { %5634 = vmatmul.mubr.bf16.gmra.mxu1 %v11280_v24  ;;  %7633 = vmatprep.mubr.bf16.mxu0 %v11278_v55 }
 0x8ce   : > { %5643 = vmatprep.mubr.bf16.mxu1 %v11275_v21 }
 0x8d4   : > { %7634 = vmatmul.mubr.bf16.gmra.mxu0 %v11279_v52 }
 0x8d5   : > { %5644 = vmatmul.mubr.bf16.gmra.mxu1 %v11281_v57  ;;  %7637 = vmatprep.mubr.bf16.mxu0 %v11280_v24 }
 0x8d6   : > { %5653 = vmatprep.mubr.bf16.mxu1 %v11275_v21 }
 0x8dc   : > { %7638 = vmatmul.mubr.bf16.gmra.mxu0 %v11281_v57 }
 0x8dd   : > { %5654 = vmatmul.mubr.bf16.gmra.mxu1 %v11282_v56  ;;  %7641 = vmatprep.mubr.bf16.mxu0 %v11282_v56 }
 0x8de   : > { %5663 = vmatprep.mubr.bf16.mxu1 %v11275_v21 }
 0x8e4   : > { %7642 = vmatmul.mubr.bf16.gmra.mxu0 %v11283_v8 }
 0x8e5   : > { %5664 = vmatmul.mubr.bf16.gmra.mxu1 %v11283_v8 }
 0x94c   : > { %v5224_v51 = vpop.f32.mrf.mxu0 }
 0x94d   : > { %v10710_v26 = vpop.f32.mrf.mxu1  ;;  %v5225_v25 = vadd.f32 %v5224_v51, %v10760_v44 }
 0x94e   : > { %v5226_v39 = vpop.f32.mrf.mxu0 }
 0x94f   : > { %v10712_v2 = vpop.f32.mrf.mxu1  ;;  %v5227_v24 = vadd.f32 %v5226_v39, %v10765_v49 }
 0x950   : > { %v5228_v16 = vpop.f32.mrf.mxu0 }
 0x951   : > { %v10714_v36 = vpop.f32.mrf.mxu1  ;;  %v5229_v10 = vadd.f32 %v5228_v16, %v10760_v44 }
 0x952   : > { %v5230_v4 = vpop.f32.mrf.mxu0 }
 0x953   : > { %v10716_v40 = vpop.f32.mrf.mxu1  ;;  %v5231_v41 = vadd.f32 %v5230_v4, %v10765_v49 }
 0x954   : > { %v5234_v27 = vpop.f32.mrf.mxu0 }
 0x955   : > { %v10718_v58 = vpop.f32.mrf.mxu1 }
 0x956   : > { %v5236_v21 = vpop.f32.mrf.mxu0 }
 0x957   : > { %v10720_v14 = vpop.f32.mrf.mxu1 }
 0x958   : > { %v5238_v42 = vpop.f32.mrf.mxu0 }
 0x959   : > { %v10722_v54 = vpop.f32.mrf.mxu1 }
 0x95a   : > { %v10724_v18 = vpop.f32.mrf.mxu0 }
 0x95b   : > { %v10726_v6 = vpop.f32.mrf.mxu1 }
 0x95c   : > { %v10728_v47 = vpop.f32.mrf.mxu0 }
 0x95d   : > { %v10730_v45 = vpop.f32.mrf.mxu1 }
 0x95e   : > { %v10732_v5 = vpop.f32.mrf.mxu0 }
 0x95f   : > { %v10734_v11 = vpop.f32.mrf.mxu1 }
 0x960   : > { %v10736_v53 = vpop.f32.mrf.mxu0 }
 0x961   : > { %v10741_v1 = vpop.f32.mrf.mxu1 }
 0x962   : > { %v10743_v59 = vpop.f32.mrf.mxu0 }
 0x963   : > { %v10745_v35 = vpop.f32.mrf.mxu1 }
 0x964   : > { %v10750_v13 = vpop.f32.mrf.mxu0 }
 0x965   : > { %v7611_v12 = vpop.f32.mrf.mxu1 }
 0x966   : > { %v10753_v63 = vadd.f32 %v7611_v12, %v10748_v37  ;;  %v10755_v7 = vpop.f32.mrf.mxu0 }
 0x967   : > { %v10757_v15 = vpop.f32.mrf.mxu1 }
 0x968   : > { %11285 = vst [vmem:[#allocation34_spill] sm:$0xff] %v10753_v63  ;;  %v10762_v60 = vpop.f32.mrf.mxu0 }
 0x969   : > { %v7612_v29 = vpop.f32.mrf.mxu1 }
 0x96a   : > { %v10768_v30 = vadd.f32 %v7612_v29, %v10748_v37  ;;  %v10770_v19 = vpop.f32.mrf.mxu0 }
 0x96b   : > { %v10772_v28 = vpop.f32.mrf.mxu1 }
 0x96c   : > { %11288 = vst [vmem:[#allocation31_spill] sm:$0xff] %v10768_v30  ;;  %11289 = vst [vmem:[#allocation41_spill] sm:$0xff] %v10772_v28  ;;  %v10775_v55 = vpop.f32.mrf.mxu0 }
 0x96d   : > { %v5595_v52 = vpop.f32.mrf.mxu1 }
 0x96e   : > { %v5771_v57 = vadd.f32 %v5595_v52, %v5225_v25  ;;  %v10778_v56 = vpop.f32.mrf.mxu0  ;;  %v5235_v25 = vadd.f32 %v5234_v27, %v10760_v44 }
 0x96f   : > { %v5597_v8 = vpop.f32.mrf.mxu1 }
 0x970   : > { %v6841_v3 = vmul.f32 -1.442695, %v5771_v57  ;;  %v5772_v12 = vadd.f32 %v5597_v8, %v5227_v24  ;;  %v10781_v17 = vpop.f32.mrf.mxu0  ;;  %v5237_v57 = vadd.f32 %v5236_v21, %v10765_v49 }
 0x971   : > { %v5599_v29 = vpop.f32.mrf.mxu1 }
 0x972   : > { %8320 = vpow2.f32 %v6841_v3  ;;  %v6842_v51 = vmul.f32 -1.442695, %v5772_v12  ;;  %v5773_v34 = vadd.f32 %v5599_v29, %v5229_v10  ;;  %v10784_v30 = vpop.f32.mrf.mxu0  ;;  %v5239_v3 = vadd.f32 %v5238_v42, %v10760_v44 }
 0x973   : > { %v5601_v39 = vpop.f32.mrf.mxu1 }
 0x974   : > { %8322 = vpow2.f32 %v6842_v51  ;;  %v6843_v52 = vmul.f32 -1.442695, %v5773_v34  ;;  %v5774_v20 = vadd.f32 %v5601_v39, %v5231_v41  ;;  %v10787_v16 = vpop.f32.mrf.mxu0 }
 0x975   : > { %v5605_v24 = vpop.f32.mrf.mxu1 }
 0x976   : > { %8324 = vpow2.f32 %v6843_v52  ;;  %v5775_v4 = vadd.f32 %v5605_v24, %v5235_v25  ;;  %v10790_v8 = vpop.f32.mrf.mxu0  ;;  %v6844_v27 = vmul.f32 -1.442695, %v5774_v20 }
 0x977   : > { %v5607_v10 = vpop.f32.mrf.mxu1 }
 0x978   : > { %v6845_v12 = vmul.f32 -1.442695, %v5775_v4  ;;  %v5776_v34 = vadd.f32 %v5607_v10, %v5237_v57  ;;  %v10794_v29 = vpop.f32.mrf.mxu0 }
 0x979   : > { %v5609_v41 = vpop.f32.mrf.mxu1 }
 0x97a   : > { %8615 = shalt.err (!%p8612_p1)
}
 0x97b   : > { %s8710_s21 = smov 128   ;;  %s8711_s18 = smov 8   ;;  %v5241_v20 = vadd.f32 %v10724_v18, %v10765_v49  ;;  %8326 = vpow2.f32 %v6845_v12  ;;  %v5777_v21 = vadd.f32 %v5609_v41, %v5239_v3  ;;  %v10808_v42 = vpop.f32.mrf.mxu0  ;;  %v6846_v51 = vmul.f32 -1.442695, %v5776_v34  ;;  %v5611_v39 = vpop.f32.mrf.mxu1 }
 0x97c   : > { %s11290_s14 = sld [smem:[#allocation59_spill]]  ;;  %v5245_v25 = vadd.f32 %v10728_v47, %v10760_v44  ;;  %8328 = vpow2.f32 %v6844_v27  ;;  %v5247_v10 = vadd.f32 %v10732_v5, %v10765_v49  ;;  %v5249_v34 = vadd.f32 %v10736_v53, %v10760_v44  ;;  %s8712_s13 = smov [#allocation10]  }
 0x97d   : > { %v6847_v52 = vmul.f32 -1.442695, %v5777_v21  ;;  %v5778_v24 = vadd.f32 %v5611_v39, %v5241_v20  ;;  %v10812_v57 = vpop.f32.mrf.mxu0  ;;  %v5615_v4 = vpop.f32.mrf.mxu1  ;;  %v5251_v5 = vadd.f32 %v10743_v59, %v10765_v49  ;;  %v5255_v53 = vadd.f32 %v10750_v13, %v10760_v44  ;;  %s6294_s25 = sshll.u32 %s8712_s13, 4  ;;  %s6295_s25 = int_to_ptr.vmem [resolvable:$true] %s6294_s25 }
 0x97e   : > { %v5779_v12 = vadd.f32 %v5615_v4, %v5245_v25  ;;  %v5259_v13 = vadd.f32 %v10762_v60, %v10760_v44  ;;  %s8626_s8 = scalar_lea.vmem %s6295_s25, 2048  ;;  %p8633_p0 = scmp.lt.s32.totalorder %s6295_s25, %s6295_s25 }
 0x97f   : > { %8330 = vpow2.f32 %v6847_v52  ;;  %v6848_v18 = vmul.f32 -1.442695, %v5778_v24  ;;  %v10816_v3 = vpop.f32.mrf.mxu0  ;;  %v8321_v41 = vpop.eup %8320  ;;  %p8627_p2 = scmp.ne.s32.totalorder %s6295_s25, %s8626_s8  ;;  %p8634_p6 = scmp.lt.s32.totalorder %s8626_s8, %s8626_s8 }
 0x980   : > { %8332 = vpow2.f32 %v6846_v51  ;;  %v5617_v47 = vpop.f32.mrf.mxu1  ;;  %v5899_v27 = vadd.f32 1.0, %v8321_v41  ;;  %v6849_v20 = vmul.f32 -1.442695, %v5779_v12 }
 0x981   : > { %8334 = vpow2.f32 %v6848_v18  ;;  %v5780_v21 = vadd.f32 %v5617_v47, %v5247_v10  ;;  %v10820_v39 = vpop.f32.mrf.mxu0  ;;  %v8323_v50 = vpop.eup %8322  ;;  %p8628_p13 = pnand %p8627_p2, %p7696_p11  ;;  %p8635_p10 = por %p8634_p6, %p8633_p0 }
 0x982   : > { %7673 = dma.vmem_to_hbm [thread:$0]  (%p7696_p11), %s6282_s9, 2048, %s11290_s14, [#allocation5], %s8710_s21, %s8710_s21, %s8711_s18   ;;  %v5619_v63 = vpop.f32.mrf.mxu1  ;;  %8336 = vrcp.f32 %v5899_v27  ;;  %v5900_v25 = vadd.f32 1.0, %v8323_v50  ;;  %v5257_v50 = vadd.f32 %v10755_v7, %v10765_v49 }
 0x983   : > { %v5781_v52 = vadd.f32 %v5619_v63, %v5249_v34  ;;  %v10824_v24 = vpop.f32.mrf.mxu0  ;;  %v8325_v4 = vpop.eup %8324  ;;  %8338 = vpow2.f32 %v6849_v20  ;;  %v6850_v10 = vmul.f32 -1.442695, %v5780_v21  ;;  %p8629_p4 = pneg %p8628_p13 }
 0x984   : > { %v5621_v51 = vpop.f32.mrf.mxu1  ;;  %v5901_v18 = vadd.f32 1.0, %v8325_v4  ;;  %8340 = vrcp.f32 %v5900_v25 }
 0x985   : > { %v6851_v12 = vmul.f32 -1.442695, %v5781_v52  ;;  %v5782_v41 = vadd.f32 %v5621_v51, %v5251_v5  ;;  %v10828_v47 = vpop.f32.mrf.mxu0  ;;  %p8636_p3 = pnand %p8635_p10, %p8629_p4 }
 0x986   : > { %v5625_v9 = vpop.f32.mrf.mxu1  ;;  %8342 = vrcp.f32 %v5901_v18 }
 0x987   : > { %v6852_v59 = vmul.f32 -1.442695, %v5782_v41  ;;  %v5783_v63 = vadd.f32 %v5625_v9, %v5255_v53  ;;  %v10832_v34 = vpop.f32.mrf.mxu0  ;;  %8344 = vpow2.f32 %v6851_v12  ;;  %v5261_v9 = vadd.f32 %v10770_v19, %v10765_v49  ;;  %v10847_v19 = vld [vmem:[%s11180_s7 + $0x2] ss:$0 sm:$0xff] }
 0x988   : > { %v8327_v27 = vpop.eup %8326  ;;  %v5627_v20 = vpop.f32.mrf.mxu1  ;;  %8346 = vpow2.f32 %v6850_v10  ;;  %v5265_v12 = vadd.f32 %v10775_v55, %v10760_v44 }
 0x989   : > { %v5903_v21 = vadd.f32 1.0, %v8327_v27  ;;  %v6853_v5 = vmul.f32 -1.442695, %v5783_v63  ;;  %v5784_v52 = vadd.f32 %v5627_v20, %v5257_v50  ;;  %v10836_v25 = vpop.f32.mrf.mxu0  ;;  %v8329_v4 = vpop.eup %8328  ;;  %8348 = vpow2.f32 %v6852_v59 }
 0x98a   : > { %v5629_v7 = vpop.f32.mrf.mxu1  ;;  %v5902_v50 = vadd.f32 1.0, %v8329_v4 }
 0x98b   : > { %8350 = vrcp.f32 %v5903_v21  ;;  %v6854_v53 = vmul.f32 -1.442695, %v5784_v52  ;;  %v5785_v51 = vadd.f32 %v5629_v7, %v5259_v13  ;;  %v10840_v18 = vpop.f32.mrf.mxu0  ;;  %v10851_v21 = vadd.f32 %v10710_v26, %v10748_v37 }
 0x98c   : > { %v8331_v60 = vpop.eup %8330  ;;  %8352 = vpow2.f32 %v6853_v5  ;;  %v5631_v10 = vpop.f32.mrf.mxu1  ;;  %v5338_v5 = vadd.f32 %v10712_v2, %v10748_v37 }
 0x98d   : > { %v8333_v41 = vpop.eup %8332  ;;  %v5905_v63 = vadd.f32 1.0, %v8331_v60  ;;  %v6855_v27 = vmul.f32 -1.442695, %v5785_v51  ;;  %v5786_v59 = vadd.f32 %v5631_v10, %v5261_v9  ;;  %v7631_v20 = vpop.f32.mrf.mxu0  ;;  %8354 = vpow2.f32 %v6854_v53 }
 0x98e   : > { %v8335_v13 = vpop.eup %8334  ;;  %v5635_v55 = vpop.f32.mrf.mxu1  ;;  %v5267_v51 = vadd.f32 %v10778_v56, %v10765_v49  ;;  %v5269_v60 = vadd.f32 %v10781_v17, %v10760_v44  ;;  %v5904_v43 = vadd.f32 1.0, %v8333_v41  ;;  %v10864_v56 = vadd.f32 %v10714_v36, %v10748_v37 }
 0x98f   : > { %8356 = vrcp.f32 %v5905_v63  ;;  %v6856_v52 = vmul.f32 -1.442695, %v5786_v59  ;;  %v5787_v4 = vadd.f32 %v5635_v55, %v5265_v12  ;;  %v5708_v7 = vpop.f32.mrf.mxu0  ;;  %v8337_v9 = vpop.eup %8336  ;;  %v5906_v48 = vadd.f32 1.0, %v8335_v13 }
 0x990   : > { %8358 = vpow2.f32 %v6855_v27  ;;  %v6003_v26 = vadd.f32 %v10847_v19, %v5708_v7  ;;  %v5637_v10 = vpop.f32.mrf.mxu1  ;;  %v8339_v53 = vpop.eup %8338  ;;  %v5341_v17 = vadd.f32 %v10716_v40, %v10748_v37  ;;  %v10870_v41 = vadd.f32 %v10718_v58, %v10748_v37 }
 0x991   : > { %8360 = vrcp.f32 %v5902_v50  ;;  %v6857_v2 = vmul.f32 -1.442695, %v5787_v4  ;;  %v7632_v63 = vpop.f32.mrf.mxu0  ;;  %v5907_v59 = vadd.f32 1.0, %v8339_v53  ;;  %v5788_v55 = vadd.f32 %v5637_v10, %v5267_v51  ;;  %v10860_v28 = vpop.eup %8340 }
 0x992   : > { %8362 = vpow2.f32 %v6856_v52  ;;  %v6019_v12 = vmul.f32 %v8337_v9, %v6003_v26  ;;  %v5639_v23 = vpop.f32.mrf.mxu1  ;;  %v10874_v13 = vadd.f32 %v10720_v14, %v10748_v37  ;;  %v10878_v9 = vadd.f32 %v10722_v54, %v10748_v37 }
 0x993   : > { %8364 = vpow2.f32 %v6857_v2  ;;  %v5711_v50 = vpop.f32.mrf.mxu0  ;;  %v8343_v27 = vpop.eup %8342  ;;  %v5789_v4 = vadd.f32 %v5639_v23, %v5269_v60  ;;  %v6005_v40 = vadd.f32 %v7631_v20, %v10847_v19  ;;  %v6858_v10 = vmul.f32 -1.442695, %v5788_v55 }
 0x994   : > { %8366 = vrcp.f32 %v5907_v59  ;;  %v6035_v52 = vadd.f32 %v6019_v12, %v5338_v5  ;;  %v5641_v7 = vpop.f32.mrf.mxu1  ;;  %v8345_v36 = vpop.eup %8344  ;;  %v6004_v58 = vadd.f32 %v10847_v19, %v5711_v50  ;;  %v10886_v5 = vadd.f32 %v10726_v6, %v10748_v37 }
 0x995   : > { %8368 = vrcp.f32 %v5904_v43  ;;  %v8347_v51 = vpop.eup %8346  ;;  %v5909_v26 = vadd.f32 1.0, %v8345_v36  ;;  %v6859_v14 = vmul.f32 -1.442695, %v5789_v4  ;;  %v10882_v2 = vpop.f32.mrf.mxu0  ;;  %v5271_v43 = vadd.f32 %v10784_v30, %v10765_v49 }
 0x996   : > { %8370 = vrcp.f32 %v5906_v48  ;;  %v5645_v53 = vpop.f32.mrf.mxu1  ;;  %v8349_v23 = vpop.eup %8348  ;;  %v6020_v54 = vmul.f32 %v8343_v27, %v6004_v58  ;;  %v5275_v48 = vadd.f32 %v10787_v16, %v10760_v44  ;;  %v5277_v60 = vadd.f32 %v10790_v8, %v10765_v49 }
 0x997   : > { %8372 = vtanh.f32 %v6035_v52  ;;  %v5279_v59 = vadd.f32 %v10794_v29, %v10760_v44  ;;  %v6006_v50 = vadd.f32 %v7632_v63, %v10847_v19  ;;  %v5908_v52 = vadd.f32 1.0, %v8347_v51  ;;  %v5724_v16 = vpop.f32.mrf.mxu0 }
 0x998   : > { %v8351_v20 = vpop.eup %8350  ;;  %8374 = vrcp.f32 %v5909_v26  ;;  %v5647_v12 = vpop.f32.mrf.mxu1  ;;  %v6036_v30 = vadd.f32 %v6020_v54, %v5341_v17  ;;  %v5790_v4 = vadd.f32 %v5641_v7, %v5271_v43  ;;  %v5281_v8 = vadd.f32 %v10808_v42, %v10765_v49 }
 0x999   : > { %v8353_v55 = vpop.eup %8352  ;;  %v6021_v6 = vmul.f32 %v8351_v20, %v6005_v40  ;;  %8376 = vpow2.f32 %v6859_v14  ;;  %v5910_v32 = vadd.f32 1.0, %v8349_v23  ;;  %v5285_v63 = vadd.f32 %v10812_v57, %v10760_v44 }
 0x99a   : > { %v5911_v27 = vadd.f32 1.0, %v8353_v55  ;;  %8378 = vpow2.f32 %v6858_v10  ;;  %v5649_v36 = vpop.f32.mrf.mxu1  ;;  %v8355_v58 = vpop.eup %8354  ;;  %v5287_v17 = vadd.f32 %v10816_v3, %v10765_v49  ;;  %v5791_v40 = vadd.f32 %v5645_v53, %v5275_v48 }
 0x99b   : > { %v6037_v29 = vadd.f32 %v6021_v6, %v10851_v21  ;;  %8380 = vtanh.f32 %v6036_v30  ;;  %v10906_v10 = vadd.f32 %v10820_v39, %v10760_v44  ;;  %v10910_v42 = vadd.f32 %v10824_v24, %v10765_v49  ;;  %v7636_v53 = vpop.f32.mrf.mxu0 }
 0x99c   : > { %v8357_v26 = vpop.eup %8356  ;;  %8382 = vrcp.f32 %v5911_v27  ;;  %v5651_v7 = vpop.f32.mrf.mxu1  ;;  %v5912_v57 = vadd.f32 1.0, %v8355_v58  ;;  %v6860_v3 = vmul.f32 -1.442695, %v5790_v4  ;;  %v5793_v39 = vadd.f32 %v5649_v36, %v5279_v59 }
 0x99d   : > { %v8359_v51 = vpop.eup %8358  ;;  %8384 = vtanh.f32 %v6037_v29  ;;  %v6022_v21 = vmul.f32 %v8357_v26, %v6006_v50  ;;  %v6007_v48 = vadd.f32 %v10847_v19, %v5724_v16  ;;  %v10918_v24 = vadd.f32 %v10828_v47, %v10760_v44  ;;  %v5727_v58 = vpop.f32.mrf.mxu0 }
 0x99e   : > { %v10912_v14 = vpop.eup %8360  ;;  %8386 = vrcp.f32 %v5908_v52  ;;  %v5913_v23 = vadd.f32 1.0, %v8359_v51  ;;  %v5655_v43 = vpop.f32.mrf.mxu1  ;;  %v6861_v6 = vmul.f32 -1.442695, %v5791_v40  ;;  %v5792_v50 = vadd.f32 %v5647_v12, %v5277_v60 }
 0x99f   : > { %v8363_v54 = vpop.eup %8362  ;;  %8388 = vrcp.f32 %v5910_v32  ;;  %v6038_v20 = vadd.f32 %v6022_v21, %v10864_v56  ;;  %v6067_v27 = vsub.f32 1.0, %v10860_v28  ;;  %v6099_v32 = vmul.f32 %v10860_v28, %v10326_v46 }
 0x9a0   : > { %v8365_v55 = vpop.eup %8364  ;;  %8390 = vrcp.f32 %v5913_v23  ;;  %v5657_v30 = vpop.f32.mrf.mxu1  ;;  %v5914_v4 = vadd.f32 1.0, %v8363_v54  ;;  %v6009_v36 = vadd.f32 %v10882_v2, %v10847_v19  ;;  %v5795_v47 = vadd.f32 %v5655_v43, %v5285_v63 }
 0x9a1   : > { %v8367_v52 = vpop.eup %8366  ;;  %8392 = vtanh.f32 %v6038_v20  ;;  %v5915_v59 = vadd.f32 1.0, %v8365_v55  ;;  %v6068_v60 = vsub.f32 1.0, %v10912_v14  ;;  %v6863_v12 = vmul.f32 -1.442695, %v5793_v39  ;;  %v10931_v54 = vpop.f32.mrf.mxu0 }
 0x9a2   : > { %v8369_v56 = vpop.eup %8368  ;;  %8394 = vrcp.f32 %v5912_v57  ;;  %v5659_v16 = vpop.f32.mrf.mxu1  ;;  %v6023_v26 = vmul.f32 %v8367_v52, %v6007_v48  ;;  %v6100_v28 = vmul.f32 %v10912_v14, %v10342_v31  ;;  %v6862_v51 = vmul.f32 -1.442695, %v5792_v50 }
 0x9a3   : > { %v10925_v29 = vpop.eup %8370  ;;  %8396 = vpow2.f32 %v6860_v3  ;;  %v5794_v21 = vadd.f32 %v5651_v7, %v5281_v8  ;;  %v6069_v63 = vsub.f32 1.0, %v8369_v56  ;;  %v6008_v43 = vadd.f32 %v10847_v19, %v5727_v58 }
 0x9a4   : > { %v8373_v40 = vpop.eup %8372  ;;  %8398 = vpow2.f32 %v6861_v6  ;;  %v5661_v57 = vpop.f32.mrf.mxu1  ;;  %v6101_v3 = vmul.f32 %v8369_v56, %v10357_v22  ;;  %v6865_v39 = vmul.f32 -1.442695, %v5795_v47  ;;  %v5796_v48 = vadd.f32 %v5657_v30, %v5287_v17 }
 0x9a5   : > { %v8375_v23 = vpop.eup %8374  ;;  %8400 = vrcp.f32 %v5914_v4  ;;  %v6083_v2 = vmul.f32 %v8373_v40, %v6067_v27  ;;  %v6039_v8 = vadd.f32 %v6023_v26, %v10874_v13  ;;  %v6864_v52 = vmul.f32 -1.442695, %v5794_v21  ;;  %v5740_v47 = vpop.f32.mrf.mxu0 }
 0x9a6   : > { %v8377_v20 = vpop.eup %8376  ;;  %8402 = vrcp.f32 %v5915_v59  ;;  %v5665_v7 = vpop.f32.mrf.mxu1  ;;  %v6010_v27 = vadd.f32 %v7636_v53, %v10847_v19  ;;  %v5797_v4 = vadd.f32 %v5659_v16, %v10906_v10  ;;  %v6024_v30 = vmul.f32 %v8375_v23, %v6008_v43 }
 0x9a7   : > { %v10934_v55 = vpop.eup %8378  ;;  %v6115_v14 = vadd.f32 %v6099_v32, %v6083_v2  ;;  %v5917_v6 = vadd.f32 1.0, %v8377_v20  ;;  %8404 = vpow2.f32 %v6863_v12  ;;  %v6070_v58 = vsub.f32 1.0, %v10925_v29  ;;  %v6150_v12 = vpop.permute.xlu0 %6149 }
 0x9a8   : > { %v8381_v50 = vpop.eup %8380  ;;  %8406 = vpow2.f32 %v6862_v51  ;;  %v6866_v26 = vmul.f32 -1.442695, %v5796_v48  ;;  %v5667_v10 = vpop.f32.mrf.mxu1  ;;  %v6867_v23 = vmul.f32 -1.442695, %v5797_v4  ;;  %v5798_v2 = vadd.f32 %v5661_v57, %v10910_v42 }
 0x9a9   : > { %v8383_v59 = vpop.eup %8382  ;;  %v6131_v56 = vsub.f32 %v6115_v14, %v10326_v46  ;;  %8408 = vrcp.f32 %v5917_v6  ;;  %v6084_v17 = vmul.f32 %v8381_v50, %v6068_v60  ;;  %v6040_v48 = vadd.f32 %v6024_v30, %v10886_v5  ;;  %v6155_v6 = vpop.permute.xlu1 %6154 }
 0x9aa   : > { %v8385_v32 = vpop.eup %8384  ;;  %v6025_v13 = vmul.f32 %v8383_v59, %v6009_v36  ;;  %8410 = vpow2.f32 %v6865_v39  ;;  %v6102_v14 = vmul.f32 %v10925_v29, %v10368_v62  ;;  %v5669_v5 = vpop.f32.mrf.mxu1  ;;  %v6868_v29 = vmul.f32 -1.442695, %v5798_v2 }
 0x9ab   : > { %v10941_v40 = vpop.eup %8386  ;;  %v6227_v51 = vmul.f32 %v6150_v12, %v6131_v56  ;;  %v6085_v53 = vmul.f32 %v8385_v32, %v6069_v63  ;;  %v6116_v21 = vadd.f32 %v6100_v28, %v6084_v17  ;;  %8412 = vtanh.f32 %v6039_v8  ;;  %v10950_v63 = vpop.f32.mrf.mxu0 }
 0x9ac   : > { %v10943_v16 = vpop.eup %8388  ;;  %8414 = vpow2.f32 %v6864_v52  ;;  %v6041_v60 = vadd.f32 %v6025_v13, %v10870_v41  ;;  %v5297_v41 = vadd.f32 %v10832_v34, %v10765_v49  ;;  %v6160_v52 = vpop.permute.xlu0 %6159  ;;  %v5799_v34 = vadd.f32 %v5665_v7, %v10918_v24 }
 0x9ad   : > { %v8391_v43 = vpop.eup %8390  ;;  %v6243_v36 = vadd.f32 %v6227_v51, %v10326_v46  ;;  %v6117_v20 = vadd.f32 %v6101_v3, %v6085_v53  ;;  %v6132_v39 = vsub.f32 %v6116_v21, %v10342_v31  ;;  %v5743_v30 = vpop.f32.mrf.mxu0  ;;  %v5301_v12 = vadd.f32 %v10840_v18, %v10765_v49 }
 0x9ae   : > { %v8393_v28 = vpop.eup %8392  ;;  %8416 = vtanh.f32 %v6041_v60  ;;  %v6026_v42 = vmul.f32 %v8391_v43, %v6010_v27  ;;  %v6011_v51 = vadd.f32 %v10847_v19, %v5740_v47  ;;  %v5916_v21 = vadd.f32 1.0, %v10934_v55  ;;  %v6165_v60 = vpop.permute.xlu1 %6164 }
 0x9af   : > { %v10956_v57 = vpop.eup %8394  ;;  %6259 = vst [vmem:[#allocation10] sm:$0xff] %v6243_v36  ;;  %v6133_v46 = vsub.f32 %v6117_v20, %v10357_v22  ;;  %v6086_v3 = vmul.f32 %v8393_v28, %v6070_v58  ;;  %v6228_v8 = vmul.f32 %v6155_v6, %v6132_v39  ;;  %8418 = vpow2.f32 %v6866_v26 }
 0x9b0   : > { %v8397_v50 = vpop.eup %8396  ;;  %v6042_v4 = vadd.f32 %v6026_v42, %v10878_v9  ;;  %8420 = vpow2.f32 %v6867_v23  ;;  %v5299_v58 = vadd.f32 %v10836_v25, %v10760_v44  ;;  %v5800_v26 = vadd.f32 %v5667_v10, %v5297_v41 }
 0x9b1   : > { %v8399_v59 = vpop.eup %8398  ;;  %v6229_v56 = vmul.f32 %v6160_v52, %v6133_v46  ;;  %v6118_v27 = vadd.f32 %v6102_v14, %v6086_v3  ;;  %v6244_v17 = vadd.f32 %v6228_v8, %v10342_v31  ;;  %8422 = vtanh.f32 %v6040_v48  ;;  %v5671_v31 = vpop.f32.mrf.mxu1 }
 0x9b2   : > { %v10962_v32 = vpop.eup %8400  ;;  %v5919_v9 = vadd.f32 1.0, %v8399_v59  ;;  %8424 = vtanh.f32 %v6042_v4  ;;  %v6869_v44 = vmul.f32 -1.442695, %v5799_v34  ;;  %v6012_v49 = vadd.f32 %v10847_v19, %v5743_v30  ;;  %v6170_v52 = vpop.permute.xlu0 %6169 }
 0x9b3   : > { %v8403_v13 = vpop.eup %8402  ;;  %v6245_v24 = vadd.f32 %v6229_v56, %v10357_v22  ;;  %v6134_v7 = vsub.f32 %v6118_v27, %v10368_v62  ;;  %6260 = vst [vmem:[#allocation10 + $0x8] sm:$0xff] %v6244_v17  ;;  %v5801_v22 = vadd.f32 %v5669_v5, %v5299_v58  ;;  %v5370_v10 = vadd.f32 %v10734_v11, %v10748_v37 }
 0x9b4   : > { %v8405_v53 = vpop.eup %8404  ;;  %8426 = vrcp.f32 %v5919_v9  ;;  %v5373_v47 = vadd.f32 %v10745_v35, %v10748_v37  ;;  %v6071_v55 = vsub.f32 1.0, %v10941_v40  ;;  %v5802_v43 = vadd.f32 %v5671_v31, %v5301_v12 }
 0x9b5   : > { %v8407_v25 = vpop.eup %8406  ;;  %6261 = vst [vmem:[#allocation10 + $0x10] sm:$0xff] %v6245_v24  ;;  %v6230_v18 = vmul.f32 %v6165_v60, %v6134_v7  ;;  %v5921_v23 = vadd.f32 1.0, %v8405_v53  ;;  %8428 = vpow2.f32 %v6868_v29  ;;  %v6870_v39 = vmul.f32 -1.442695, %v5800_v26  ;;  %v10986_v29 = vpop.f32.mrf.mxu0 }
 0x9b6   : > { %v8409_v2 = vpop.eup %8408  ;;  %v6027_v48 = vmul.f32 %v8403_v13, %v6011_v51  ;;  %v6103_v14 = vmul.f32 %v10941_v40, %v10399_v38  ;;  %v5918_v41 = vadd.f32 1.0, %v8397_v50  ;;  %v6871_v35 = vmul.f32 -1.442695, %v5801_v22  ;;  %v6175_v7 = vpop.permute.xlu1 %6174 }
 0x9b7   : > { %v8411_v36 = vpop.eup %8410  ;;  %v6246_v20 = vadd.f32 %v6230_v18, %v10368_v62  ;;  %8430 = vrcp.f32 %v5921_v23  ;;  %v6028_v46 = vmul.f32 %v8409_v2, %v6012_v49  ;;  %v6073_v3 = vsub.f32 1.0, %v10956_v57  ;;  %v5756_v51 = vpop.f32.mrf.mxu0 }
 0x9b8   : > { %v8413_v28 = vpop.eup %8412  ;;  %8432 = vrcp.f32 %v5916_v21  ;;  %v5923_v6 = vadd.f32 1.0, %v8411_v36  ;;  %v6872_v62 = vmul.f32 -1.442695, %v5802_v43  ;;  %v6013_v8 = vadd.f32 %v10931_v54, %v10847_v19 }
 0x9b9   : > { %v8415_v11 = vpop.eup %8414  ;;  %6262 = vst [vmem:[#allocation10 + $0x18] sm:$0xff] %v6246_v20  ;;  %v6087_v42 = vmul.f32 %v8413_v28, %v6071_v55  ;;  %8434 = vpow2.f32 %v6869_v44  ;;  %v6043_v40 = vadd.f32 %v6027_v48, %v5370_v10  ;;  %v6014_v50 = vadd.f32 %v10950_v63, %v10847_v19  ;;  %v6180_v44 = vpop.permute.xlu0 %6179 }
 0x9ba   : > { %8436 = vrcp.f32 %v5923_v6  ;;  %v6072_v59 = vsub.f32 1.0, %v10943_v16  ;;  %v6105_v56 = vmul.f32 %v10956_v57, %v10439_v61  ;;  %v6104_v54 = vmul.f32 %v10943_v16, %v10417_v33  ;;  %v11004_v36 = vpop.f32.mrf.mxu0 }
 0x9bb   : > { %v8417_v5 = vpop.eup %8416  ;;  %v6119_v4 = vadd.f32 %v6103_v14, %v6087_v42  ;;  %8438 = vpow2.f32 %v6870_v39  ;;  %v6044_v58 = vadd.f32 %v6028_v46, %v5373_v47  ;;  %v6074_v63 = vsub.f32 1.0, %v10962_v32 }
 0x9bc   : > { %v8419_v34 = vpop.eup %8418  ;;  %8440 = vrcp.f32 %v5918_v41  ;;  %v6089_v27 = vmul.f32 %v8417_v5, %v6073_v3  ;;  %v5920_v26 = vadd.f32 1.0, %v8407_v25  ;;  %v6106_v16 = vmul.f32 %v10962_v32, %v10451_v0  ;;  %v6185_v41 = vpop.permute.xlu1 %6184 }
 0x9bd   : > { %v8421_v17 = vpop.eup %8420  ;;  %v6135_v30 = vsub.f32 %v6119_v4, %v10399_v38  ;;  %8442 = vpow2.f32 %v6871_v35  ;;  %v5922_v49 = vadd.f32 1.0, %v8415_v11  ;;  %v5924_v2 = vadd.f32 1.0, %v8419_v34 }
 0x9be   : > { %v8423_v12 = vpop.eup %8422  ;;  %v6121_v9 = vadd.f32 %v6105_v56, %v6089_v27  ;;  %v5925_v13 = vadd.f32 1.0, %v8421_v17  ;;  %8444 = vpow2.f32 %v6872_v62  ;;  %v5378_v55 = vadd.f32 %v10730_v45, %v10748_v37  ;;  %v5759_v62 = vpop.f32.mrf.mxu0 }
 0x9bf   : > { %v8425_v24 = vpop.eup %8424  ;;  %v6231_v57 = vmul.f32 %v6170_v52, %v6135_v30  ;;  %v6088_v31 = vmul.f32 %v8423_v12, %v6072_v59  ;;  %8446 = vtanh.f32 %v6043_v40  ;;  %v5381_v32 = vadd.f32 %v10741_v1, %v10748_v37  ;;  %v11291_v30 = vld [vmem:[#allocation45_spill] sm:$0xff] }
 0x9c0   : > { %v6137_v53 = vsub.f32 %v6121_v9, %v10439_v61  ;;  %v6090_v21 = vmul.f32 %v8425_v24, %v6074_v63  ;;  %8448 = vrcp.f32 %v5925_v13  ;;  %v6015_v28 = vadd.f32 %v10847_v19, %v5756_v51  ;;  %v11292_v13 = vld [vmem:[#allocation41_spill] sm:$0xff] }
 0x9c1   : > { %v8427_v60 = vpop.eup %8426  ;;  %v6247_v18 = vadd.f32 %v6231_v57, %v10399_v38  ;;  %v6120_v23 = vadd.f32 %v6104_v54, %v6088_v31  ;;  %8450 = vtanh.f32 %v6044_v58  ;;  %v5386_v5 = vadd.f32 %v10757_v15, %v10748_v37 }
 0x9c2   : > { %v8429_v22 = vpop.eup %8428  ;;  %v6233_v25 = vmul.f32 %v6180_v44, %v6137_v53  ;;  %v6122_v10 = vadd.f32 %v6106_v16, %v6090_v21  ;;  %v6029_v47 = vmul.f32 %v8427_v60, %v6013_v8  ;;  %8452 = vrcp.f32 %v5920_v26  ;;  %v11293_v26 = vld [vmem:[#allocation46_spill] sm:$0xff] }
 0x9c3   : > { %6263 = vst [vmem:[#allocation10 + $0x20] sm:$0xff] %v6247_v18  ;;  %v6136_v43 = vsub.f32 %v6120_v23, %v10417_v33  ;;  %v5926_v48 = vadd.f32 1.0, %v8429_v22  ;;  %8454 = vrcp.f32 %v5922_v49  ;;  %v6016_v59 = vadd.f32 %v10847_v19, %v5759_v62  ;;  %v6190_v49 = vpop.permute.xlu0 %6189 }
 0x9c4   : > { %v8431_v38 = vpop.eup %8430  ;;  %v6249_v20 = vadd.f32 %v6233_v25, %v10439_v61  ;;  %v6138_v39 = vsub.f32 %v6122_v10, %v10451_v0  ;;  %v6045_v6 = vadd.f32 %v6029_v47, %v5378_v55  ;;  %8456 = vrcp.f32 %v5924_v2  ;;  %v6195_v2 = vpop.permute.xlu1 %6194  ;;  %v11294_v55 = vld [vmem:[#allocation47_spill] sm:$0xff] }
 0x9c5   : > { %v8433_v14 = vpop.eup %8432  ;;  %v6232_v45 = vmul.f32 %v6175_v7, %v6136_v43  ;;  %v6030_v1 = vmul.f32 %v8431_v38, %v6014_v50  ;;  %v5389_v24 = vadd.f32 %v11292_v13, %v10748_v37  ;;  %v6017_v10 = vadd.f32 %v10986_v29, %v10847_v19 }
 0x9c6   : > { %v8435_v11 = vpop.eup %8434  ;;  %6265 = vst [vmem:[#allocation10 + $0x30] sm:$0xff] %v6249_v20  ;;  %v6234_v42 = vmul.f32 %v6185_v41, %v6138_v39  ;;  %8458 = vtanh.f32 %v6045_v6  ;;  %v6075_v27 = vsub.f32 1.0, %v8433_v14  ;;  %v6107_v58 = vmul.f32 %v8433_v14, %v11291_v30 }
 0x9c7   : > { %v8437_v35 = vpop.eup %8436  ;;  %v6248_v46 = vadd.f32 %v6232_v45, %v10417_v33  ;;  %v5927_v3 = vadd.f32 1.0, %v8435_v11  ;;  %v6046_v61 = vadd.f32 %v6030_v1, %v5381_v32  ;;  %8460 = vrcp.f32 %v5926_v48  ;;  %v11295_v1 = vld [vmem:[#allocation49_spill] sm:$0xff] }
 0x9c8   : > { %v8439_v8 = vpop.eup %8438  ;;  %v6250_v52 = vadd.f32 %v6234_v42, %v10451_v0  ;;  %v6031_v4 = vmul.f32 %v8437_v35, %v6015_v28 }
 0x9c9   : > { %v8441_v40 = vpop.eup %8440  ;;  %6264 = vst [vmem:[#allocation10 + $0x28] sm:$0xff] %v6248_v46  ;;  %8462 = vrcp.f32 %v5927_v3  ;;  %v5928_v50 = vadd.f32 1.0, %v8439_v8  ;;  %v6200_v46 = vpop.permute.xlu0 %6199  ;;  %v11296_v3 = vld [vmem:[#allocation52_spill] sm:$0xff]  ;;  %v11297_v8 = vld [vmem:[#allocation34_spill] sm:$0xff] }
 0x9ca   : > { %v8443_v34 = vpop.eup %8442  ;;  %6266 = vst [vmem:[#allocation10 + $0x38] sm:$0xff] %v6250_v52  ;;  %8464 = vtanh.f32 %v6046_v61  ;;  %v6047_v33 = vadd.f32 %v6031_v4, %v5386_v5  ;;  %v6076_v12 = vsub.f32 1.0, %v8441_v40  ;;  %v6108_v57 = vmul.f32 %v8441_v40, %v11293_v26  ;;  %v11298_v40 = vld [vmem:[#allocation48_spill] sm:$0xff] }
 0x9cb   : > { %v8445_v56 = vpop.eup %8444  ;;  %8466 = vrcp.f32 %v5928_v50  ;;  %v5929_v17 = vadd.f32 1.0, %v8443_v34  ;;  %v6018_v52 = vadd.f32 %v11004_v36, %v10847_v19 }
 0x9cc   : > { %v8447_v54 = vpop.eup %8446  ;;  %v5930_v15 = vadd.f32 1.0, %v8445_v56  ;;  %8468 = vtanh.f32 %v6047_v33 }
 0x9cd   : > { %v8449_v0 = vpop.eup %8448  ;;  %8470 = vrcp.f32 %v5929_v17  ;;  %v6091_v63 = vmul.f32 %v8447_v54, %v6075_v27  ;;  %v11299_v17 = vld [vmem:[#allocation39_spill] sm:$0xff] }
 0x9ce   : > { %v8451_v9 = vpop.eup %8450  ;;  %8472 = vrcp.f32 %v5930_v15  ;;  %v6032_v7 = vmul.f32 %v8449_v0, %v6016_v59 }
 0x9cf   : > { %v6123_v31 = vadd.f32 %v6107_v58, %v6091_v63  ;;  %v6092_v51 = vmul.f32 %v8451_v9, %v6076_v12  ;;  %v8453_v16 = vpop.eup %8452  ;;  %v11300_v12 = vld [vmem:[#allocation31_spill] sm:$0xff] }
 0x9d0   : > { %v6048_v53 = vadd.f32 %v6032_v7, %v5389_v24  ;;  %v8455_v44 = vpop.eup %8454  ;;  %v6077_v23 = vsub.f32 1.0, %v8453_v16  ;;  %v6109_v32 = vmul.f32 %v8453_v16, %v11294_v55  ;;  %v6210_v24 = vpop.permute.xlu0 %6209  ;;  %v11301_v7 = vld [vmem:[#allocation51_spill] sm:$0xff] }
 0x9d1   : > { %v6139_v21 = vsub.f32 %v6123_v31, %v11291_v30  ;;  %v6124_v60 = vadd.f32 %v6108_v57, %v6092_v51  ;;  %v8457_v18 = vpop.eup %8456  ;;  %v6078_v48 = vsub.f32 1.0, %v8455_v44  ;;  %v6110_v11 = vmul.f32 %v8455_v44, %v11295_v1 }
 0x9d2   : > { %8474 = vtanh.f32 %v6048_v53  ;;  %v6079_v42 = vsub.f32 1.0, %v8457_v18  ;;  %v6111_v50 = vmul.f32 %v8457_v18, %v11298_v40 }
 0x9d3   : > { %v6235_v22 = vmul.f32 %v6190_v49, %v6139_v21  ;;  %v6140_v25 = vsub.f32 %v6124_v60, %v11293_v26  ;;  %v8459_v37 = vpop.eup %8458 }
 0x9d4   : > { %v8461_v47 = vpop.eup %8460  ;;  %v6093_v43 = vmul.f32 %v8459_v37, %v6077_v23 }
 0x9d5   : > { %v6251_v38 = vadd.f32 %v6235_v22, %v11291_v30  ;;  %v6236_v20 = vmul.f32 %v6195_v2, %v6140_v25  ;;  %v6205_v30 = vpop.permute.xlu1 %6204  ;;  %v6080_v19 = vsub.f32 1.0, %v8461_v47 }
 0x9d6   : > { %v8463_v39 = vpop.eup %8462  ;;  %v6125_v14 = vadd.f32 %v6109_v32, %v6093_v43 }
 0x9d7   : > { %v8465_v28 = vpop.eup %8464  ;;  %6267 = vst [vmem:[#allocation10 + $0x40] sm:$0xff] %v6251_v38  ;;  %v6252_v41 = vadd.f32 %v6236_v20, %v11293_v26  ;;  %v6033_v45 = vmul.f32 %v8463_v39, %v6017_v10  ;;  %v6112_v26 = vmul.f32 %v8461_v47, %v11301_v7 }
 0x9d8   : > { %v8467_v6 = vpop.eup %8466  ;;  %v6094_v29 = vmul.f32 %v8465_v28, %v6078_v48  ;;  %v6141_v62 = vsub.f32 %v6125_v14, %v11294_v55 }
 0x9d9   : > { %v8469_v35 = vpop.eup %8468  ;;  %v6113_v61 = vmul.f32 %v8467_v6, %v11296_v3  ;;  %6268 = vst [vmem:[#allocation10 + $0x48] sm:$0xff] %v6252_v41  ;;  %v6049_v5 = vadd.f32 %v6033_v45, %v11297_v8  ;;  %v6215_v60 = vpop.permute.xlu1 %6214  ;;  %v6081_v49 = vsub.f32 1.0, %v8467_v6 }
 0x9da   : > { %v8471_v4 = vpop.eup %8470  ;;  %v6126_v34 = vadd.f32 %v6110_v11, %v6094_v29  ;;  %v6095_v33 = vmul.f32 %v8469_v35, %v6079_v42  ;;  %v6237_v56 = vmul.f32 %v6200_v46, %v6141_v62 }
 0x9db   : > { %v8473_v59 = vpop.eup %8472  ;;  %8476 = vtanh.f32 %v6049_v5  ;;  %v6034_v27 = vmul.f32 %v8471_v4, %v6018_v52 }
 0x9dc   : > { %v6114_v54 = vmul.f32 %v8473_v59, %v11299_v17  ;;  %v6142_v15 = vsub.f32 %v6126_v34, %v11295_v1  ;;  %v6127_v0 = vadd.f32 %v6111_v50, %v6095_v33  ;;  %v6253_v58 = vadd.f32 %v6237_v56, %v11294_v55  ;;  %v6220_v55 = vpop.permute.xlu0 %6219 }
 0x9dd   : > { %v6050_v63 = vadd.f32 %v6034_v27, %v11300_v12  ;;  %v6082_v25 = vsub.f32 1.0, %v8473_v59  ;;  %v6225_v39 = vpop.permute.xlu1 %6224 }
 0x9de   : > { %v6238_v36 = vmul.f32 %v6205_v30, %v6142_v15  ;;  %v6143_v9 = vsub.f32 %v6127_v0, %v11298_v40  ;;  %6269 = vst [vmem:[#allocation10 + $0x50] sm:$0xff] %v6253_v58 }
 0x9df   : > { %v8475_v13 = vpop.eup %8474  ;;  %8478 = vtanh.f32 %v6050_v63 }
 0x9e0   : > { %v6254_v57 = vadd.f32 %v6238_v36, %v11295_v1  ;;  %v6239_v31 = vmul.f32 %v6210_v24, %v6143_v9  ;;  %v6096_v51 = vmul.f32 %v8475_v13, %v6080_v19 }
 0x9e2   : > { %6270 = vst [vmem:[#allocation10 + $0x58] sm:$0xff] %v6254_v57  ;;  %v6255_v16 = vadd.f32 %v6239_v31, %v11298_v40  ;;  %v6128_v53 = vadd.f32 %v6112_v26, %v6096_v51 }
 0x9e4   : > { %6271 = vst [vmem:[#allocation10 + $0x60] sm:$0xff] %v6255_v16  ;;  %v6144_v21 = vsub.f32 %v6128_v53, %v11301_v7 }
 0x9e6   : > { %v6240_v44 = vmul.f32 %v6215_v60, %v6144_v21 }
 0x9e8   : > { %v8477_v18 = vpop.eup %8476  ;;  %v6256_v23 = vadd.f32 %v6240_v44, %v11301_v7 }
 0x9e9   : > { %v6097_v22 = vmul.f32 %v8477_v18, %v6081_v49 }
 0x9ea   : > { %6272 = vst [vmem:[#allocation10 + $0x68] sm:$0xff] %v6256_v23 }
 0x9eb   : > { %v6129_v37 = vadd.f32 %v6113_v61, %v6097_v22 }
 0x9ec   : > { %v8479_v2 = vpop.eup %8478 }
 0x9ed   : > { %v6145_v10 = vsub.f32 %v6129_v37, %v11296_v3  ;;  %v6098_v47 = vmul.f32 %v8479_v2, %v6082_v25 }
 0x9ef   : > { %v6241_v32 = vmul.f32 %v6220_v55, %v6145_v10  ;;  %v6130_v43 = vadd.f32 %v6114_v54, %v6098_v47 }
 0x9f1   : > { %v6257_v38 = vadd.f32 %v6241_v32, %v11296_v3  ;;  %v6146_v20 = vsub.f32 %v6130_v43, %v11299_v17 }
 0x9f3   : > { %6273 = vst [vmem:[#allocation10 + $0x70] sm:$0xff] %v6257_v38  ;;  %v6242_v48 = vmul.f32 %v6225_v39, %v6146_v20 }
 0x9f5   : > { %v6258_v28 = vadd.f32 %v6242_v48, %v11299_v17 }
 0x9f7   : > { %6274 = vst [vmem:[#allocation10 + $0x78] sm:$0xff] %v6258_v28 }
 0x9f8   : > { %8639 = shalt.err (!%p8636_p3)
}
 0x9f9   : > { %s11302_s28 = sld [smem:[#allocation60_spill]] }
 0x9ff   : > { %7675 = dma.vmem_to_hbm [thread:$0]  (%p7696_p11), %s6295_s25, 2048, %s11302_s28, [#allocation11], %s8710_s21, %s8710_s21, %s8711_s18  }
 0xa00   : > { %8679 = dma.done.wait (%p7696_p11), [#allocation5], 2048  }
 0xa01   : > { %8681 = vsyncadd (%p7696_p11), [#allocation5], 4294965248 }
 0xa02   : > { %8683 = dma.done.wait (%p7696_p11), [#allocation11], 2048  }
 0xa03   : > { %8685 = vsyncadd (%p7696_p11), [#allocation11], 4294965248 }
 0xa04 PF: > { %p25_p8 = scmp.ge.s32.totalorder %s8849_s15, 5   ;;  %s11303_s25 = smov %s8692_s26 }
 0xa05   : > { %s11304_s26 = smov %s8696_s27  ;;  %s11305_s27 = smov %s8910_s16 }
 0xa06   : > { %s11306_s28 = smov %s8849_s15  ;;  %27 = sbr.rel (!%p25_p8) target bundleno = 12 (0xc), region = 145 }
 0xa0b   :  { %6314 = vsyncpa [#allocation4], 1 }
 0xa0c   :  { %6316 = vsyncpa [#allocation4 + $0x1], 1 }
 0xa0d   :  { %6317 = vsyncpa [#allocation7], 1 }
 0xa0e   :  { %6318 = vsyncpa [#allocation5], 1 }
 0xa0f   :  { %6320 = vsyncpa [#allocation5 + $0x1], 1 }
 0xa10   :  { %6321 = vsyncpa [#allocation11], 1 }

</bundles_post_ra>
